<compile_context>
chip_gen: v6e
topology: v6e:2x2x1
jax: 0.10.0
libtpu: 0.0.40
codegen_flags: <defaults>
</compile_context>

<pallas_src>
import functools
import math

import jax
import jax.numpy as jnp
from jax import lax
from jax.experimental import pallas as pl
from jax.experimental.pallas import tpu as pltpu


def _dot(a, b):
    return jnp.dot(a, b, preferred_element_type=jnp.float32)


def _ln(x, g, b, *, eps, d):
    # Custom R-Transformer LayerNorm: unbiased std (d-1) and eps added to std.
    mean = jnp.mean(x, axis=-1, keepdims=True)
    var = jnp.sum((x - mean) ** 2, axis=-1, keepdims=True) / (d - 1)
    return g * (x - mean) / (jnp.sqrt(var) + eps) + b


def _rt_fused_kernel(
    x_ref, enc_w_ref, enc_b_ref,
    ln1_g_ref, ln1_b_ref,
    gwih_ref, gwhh_ref, gbih_ref, gbhh_ref,
    outw_ref, outb_ref,
    lnag_ref, lnab_ref, wqkv_ref, bqkv_ref, wo_ref, bo_ref,
    lnfg_ref, lnfb_ref, ff1w_ref, ff1b_ref, ff2w_ref, ff2b_ref,
    decw_ref, decb_ref,
    o_ref,
    *, n_level, n_local, nh, ksize, d, dk, eps):
  f32 = jnp.float32
  L = x_ref.shape[1]
  x = x_ref[0]                                     # (L, input_size)

  # ---------------- encoder ----------------
  h = _dot(x, enc_w_ref[...]) + enc_b_ref[...]     # (L, d)

  # Hoisted constants shared by all levels/layers (avoid per-iter broadcasts).
  rows = lax.broadcasted_iota(jnp.int32, (L, L), 0)
  cols = lax.broadcasted_iota(jnp.int32, (L, L), 1)
  causal = cols <= rows
  rowv = lax.broadcasted_iota(jnp.int32, (L, 1), 0)
  shift_mat = {}
  pad_mask = {}
  for sh in range(1, ksize):
    # (S @ g)[i] = g[i - sh] for i >= sh, 0 otherwise.
    shift_mat[sh] = (rows - cols == sh).astype(f32)
    pad_mask[sh] = (rowv < sh).astype(f32)         # rows that consumed zero-pad
  scale = 1.0 / math.sqrt(dk)

  for lev in range(n_level):
    # ------------- local-window GRU layers (pre-norm residual) -------------
    for j in range(n_local):
      li = lev * n_local + j
      xn = _ln(h, ln1_g_ref[li], ln1_b_ref[li], eps=eps, d=d)

      w_ih = [gwih_ref[li * 3 + g] for g in range(3)]   # gate order r, z, n
      w_hh = [gwhh_ref[li * 3 + g] for g in range(3)]
      b_ih = [gbih_ref[li * 3 + g] for g in range(3)]
      b_hh = [gbhh_ref[li * 3 + g] for g in range(3)]

      # Hoisted input->gate projections over the full sequence: (L, d) each.
      gi = [_dot(xn, w_ih[g]) + b_ih[g] for g in range(3)]

      def shifted(g_all, bias, sh):
        # Window step input for position i is x[i - sh] (zero-padded on the
        # left); zero input => gates equal the input bias.
        if sh == 0:
          return g_all
        return _dot(shift_mat[sh], g_all) + pad_mask[sh] * bias

      h_loc = jnp.zeros((L, d), f32)
      for t in range(ksize):
        sh = ksize - 1 - t
        gr = shifted(gi[0], b_ih[0], sh)
        gz = shifted(gi[1], b_ih[1], sh)
        gn = shifted(gi[2], b_ih[2], sh)
        ghr = _dot(h_loc, w_hh[0]) + b_hh[0]
        ghz = _dot(h_loc, w_hh[1]) + b_hh[1]
        ghn = _dot(h_loc, w_hh[2]) + b_hh[2]
        r = jax.nn.sigmoid(gr + ghr)
        z = jax.nn.sigmoid(gz + ghz)
        c = jnp.tanh(gn + r * ghn)
        h_loc = (1.0 - z) * c + z * h_loc

      hr = _dot(h_loc, outw_ref[li]) + outb_ref[li]
      h = h + jnp.maximum(hr, 0.0)

    # ------------- causal multi-head attention (pre-norm residual) ---------
    xn = _ln(h, lnag_ref[lev], lnab_ref[lev], eps=eps, d=d)
    base = lev * 3 * nh
    a = jnp.broadcast_to(bo_ref[lev], (L, d))
    for hh in range(nh):
      qh = _dot(xn, wqkv_ref[base + 0 * nh + hh]) + bqkv_ref[base + 0 * nh + hh]
      kh = _dot(xn, wqkv_ref[base + 1 * nh + hh]) + bqkv_ref[base + 1 * nh + hh]
      vh = _dot(xn, wqkv_ref[base + 2 * nh + hh]) + bqkv_ref[base + 2 * nh + hh]
      s = jnp.einsum("qd,kd->qk", qh, kh, preferred_element_type=f32) * scale
      s = jnp.where(causal, s, -1e30)
      p = jax.nn.softmax(s, axis=-1)
      # Per-head output projection (row-block of Wo) summed in place: this is
      # exactly concat(heads) @ Wo without any lane-offset slicing/concat.
      a = a + _dot(_dot(p, vh), wo_ref[lev * nh + hh])
    h = h + a

    # ------------- position-wise feed-forward (pre-norm residual) ----------
    xn = _ln(h, lnfg_ref[lev], lnfb_ref[lev], eps=eps, d=d)
    f = jnp.maximum(_dot(xn, ff1w_ref[lev]) + ff1b_ref[lev], 0.0)   # (L, 4d)
    f = _dot(f, ff2w_ref[lev]) + ff2b_ref[lev]
    h = h + f

  # ---------------- decoder + sigmoid ----------------
  out = _dot(h, decw_ref[...]) + decb_ref[...]
  o_ref[0] = jax.nn.sigmoid(out)


def init_rt_params(key, *, input_size, d_model, output_size, h, ksize, n, n_level):
  d = d_model
  dk = d // h
  NL = n_level

  def u(k, shape, fan_in):
    bnd = 1.0 / math.sqrt(fan_in)
    return jax.random.uniform(k, shape, jnp.float32, -bnd, bnd)

  ks = iter(jax.random.split(key, 20))
  p = dict(d_model=d, h=h, ksize=ksize, n=n, n_level=n_level)
  p["enc_w"] = u(next(ks), (input_size, d), input_size)
  p["enc_b"] = u(next(ks), (1, d), input_size)
  # Local GRU layers (flattened (level, layer) leading dim; gate order r,z,n).
  p["ln1_g"] = jnp.ones((NL * n, 1, d), jnp.float32)
  p["ln1_b"] = jnp.zeros((NL * n, 1, d), jnp.float32)
  p["gru_wih"] = u(next(ks), (NL * n * 3, d, d), d)
  p["gru_whh"] = u(next(ks), (NL * n * 3, d, d), d)
  p["gru_bih"] = u(next(ks), (NL * n * 3, 1, d), d)
  p["gru_bhh"] = u(next(ks), (NL * n * 3, 1, d), d)
  p["out_w"] = u(next(ks), (NL * n, d, d), d)
  p["out_b"] = u(next(ks), (NL * n, 1, d), d)
  # Attention (per-head weight layout: [(lev*3 + {q,k,v})*h + head]).
  p["ln_attn_g"] = jnp.ones((NL, 1, d), jnp.float32)
  p["ln_attn_b"] = jnp.zeros((NL, 1, d), jnp.float32)
  p["wqkv"] = u(next(ks), (NL * 3 * h, d, dk), d)
  p["bqkv"] = u(next(ks), (NL * 3 * h, 1, dk), d)
  p["wo"] = u(next(ks), (NL * h, dk, d), d)        # per-head row blocks of Wo
  p["bo"] = u(next(ks), (NL, 1, d), d)
  # Feed-forward.
  p["ln_ff_g"] = jnp.ones((NL, 1, d), jnp.float32)
  p["ln_ff_b"] = jnp.zeros((NL, 1, d), jnp.float32)
  p["ff1_w"] = u(next(ks), (NL, d, 4 * d), d)
  p["ff1_b"] = u(next(ks), (NL, 1, 4 * d), d)
  p["ff2_w"] = u(next(ks), (NL, 4 * d, d), 4 * d)
  p["ff2_b"] = u(next(ks), (NL, 1, d), 4 * d)
  # Decoder.
  p["dec_w"] = u(next(ks), (d, output_size), d)
  p["dec_b"] = u(next(ks), (1, output_size), d)
  return p


def rt_forward(params, x):
  B, L, input_size = x.shape
  d = params["d_model"]
  nh = params["h"]
  ksize = params["ksize"]
  n_local = params["n"]
  n_level = params["n_level"]
  dk = d // nh
  output_size = params["dec_w"].shape[-1]

  kernel = functools.partial(
      _rt_fused_kernel, n_level=n_level, n_local=n_local, nh=nh,
      ksize=ksize, d=d, dk=dk, eps=1e-6)

  weights = [
      params["enc_w"], params["enc_b"],
      params["ln1_g"], params["ln1_b"],
      params["gru_wih"], params["gru_whh"], params["gru_bih"], params["gru_bhh"],
      params["out_w"], params["out_b"],
      params["ln_attn_g"], params["ln_attn_b"],
      params["wqkv"], params["bqkv"], params["wo"], params["bo"],
      params["ln_ff_g"], params["ln_ff_b"],
      params["ff1_w"], params["ff1_b"], params["ff2_w"], params["ff2_b"],
      params["dec_w"], params["dec_b"],
  ]

  def const_spec(w):
    shp = w.shape
    return pl.BlockSpec(shp, lambda b, _n=len(shp): (0,) * _n)

  return pl.pallas_call(
      kernel,
      out_shape=jax.ShapeDtypeStruct((B, L, output_size), jnp.float32),
      grid=(B,),
      in_specs=[pl.BlockSpec((1, L, input_size), lambda b: (b, 0, 0))]
               + [const_spec(w) for w in weights],
      out_specs=pl.BlockSpec((1, L, output_size), lambda b: (b, 0, 0)),
      compiler_params=pltpu.CompilerParams(
          dimension_semantics=("parallel",)),   # batch: both TCs on v7x
  )(x, *weights)


if __name__ == "__main__":
  key = jax.random.PRNGKey(0)
  B, L = 2, 8
  input_size, d_model, output_size = 4, 32, 4
  h_heads, ksize, n, n_level = 4, 3, 1, 2

  kp, kx = jax.random.split(key)
  params = init_rt_params(
      kp, input_size=input_size, d_model=d_model, output_size=output_size,
      h=h_heads, ksize=ksize, n=n, n_level=n_level)
  x = jax.random.normal(kx, (B, L, input_size), dtype=jnp.float32)

  out = rt_forward(params, x)
  out = jax.block_until_ready(out)
  assert out.shape == (B, L, output_size)
  print("KERNEL_OK")
</pallas_src>

<mosaic_0001>
module attributes {stable_mosaic.version = 11 : i64} {
  func.func @_rt_fused_kernel(%arg0: i32, %arg1: memref<1x8x4xf32, #tpu.memory_space<vmem>>, %arg2: memref<4x32xf32, #tpu.memory_space<vmem>>, %arg3: memref<1x32xf32, #tpu.memory_space<vmem>>, %arg4: memref<2x1x32xf32, #tpu.memory_space<vmem>>, %arg5: memref<2x1x32xf32, #tpu.memory_space<vmem>>, %arg6: memref<6x32x32xf32, #tpu.memory_space<vmem>>, %arg7: memref<6x32x32xf32, #tpu.memory_space<vmem>>, %arg8: memref<6x1x32xf32, #tpu.memory_space<vmem>>, %arg9: memref<6x1x32xf32, #tpu.memory_space<vmem>>, %arg10: memref<2x32x32xf32, #tpu.memory_space<vmem>>, %arg11: memref<2x1x32xf32, #tpu.memory_space<vmem>>, %arg12: memref<2x1x32xf32, #tpu.memory_space<vmem>>, %arg13: memref<2x1x32xf32, #tpu.memory_space<vmem>>, %arg14: memref<24x32x8xf32, #tpu.memory_space<vmem>>, %arg15: memref<24x1x8xf32, #tpu.memory_space<vmem>>, %arg16: memref<8x8x32xf32, #tpu.memory_space<vmem>>, %arg17: memref<2x1x32xf32, #tpu.memory_space<vmem>>, %arg18: memref<2x1x32xf32, #tpu.memory_space<vmem>>, %arg19: memref<2x1x32xf32, #tpu.memory_space<vmem>>, %arg20: memref<2x32x128xf32, #tpu.memory_space<vmem>>, %arg21: memref<2x1x128xf32, #tpu.memory_space<vmem>>, %arg22: memref<2x128x32xf32, #tpu.memory_space<vmem>>, %arg23: memref<2x1x32xf32, #tpu.memory_space<vmem>>, %arg24: memref<32x4xf32, #tpu.memory_space<vmem>>, %arg25: memref<1x4xf32, #tpu.memory_space<vmem>>, %arg26: memref<1x8x4xf32, #tpu.memory_space<vmem>>) attributes {dimension_semantics = [#tpu.dimension_semantics<parallel>], iteration_bounds = array<i64: 2>, scalar_prefetch = 0 : i64, scratch_operands = 0 : i64, tpu.core_type = #tpu.core_type<tc>, window_params = [{transform_indices = @transform_0, window_bounds = array<i64: 1, 8, 4>}, {pipeline_mode = #tpu.pipeline_mode<synchronous>, transform_indices = @transform_1, window_bounds = array<i64: 4, 32>}, {pipeline_mode = #tpu.pipeline_mode<synchronous>, transform_indices = @transform_2, window_bounds = array<i64: 1, 32>}, {pipeline_mode = #tpu.pipeline_mode<synchronous>, transform_indices = @transform_3, window_bounds = array<i64: 2, 1, 32>}, {pipeline_mode = #tpu.pipeline_mode<synchronous>, transform_indices = @transform_4, window_bounds = array<i64: 2, 1, 32>}, {pipeline_mode = #tpu.pipeline_mode<synchronous>, transform_indices = @transform_5, window_bounds = array<i64: 6, 32, 32>}, {pipeline_mode = #tpu.pipeline_mode<synchronous>, transform_indices = @transform_6, window_bounds = array<i64: 6, 32, 32>}, {pipeline_mode = #tpu.pipeline_mode<synchronous>, transform_indices = @transform_7, window_bounds = array<i64: 6, 1, 32>}, {pipeline_mode = #tpu.pipeline_mode<synchronous>, transform_indices = @transform_8, window_bounds = array<i64: 6, 1, 32>}, {pipeline_mode = #tpu.pipeline_mode<synchronous>, transform_indices = @transform_9, window_bounds = array<i64: 2, 32, 32>}, {pipeline_mode = #tpu.pipeline_mode<synchronous>, transform_indices = @transform_10, window_bounds = array<i64: 2, 1, 32>}, {pipeline_mode = #tpu.pipeline_mode<synchronous>, transform_indices = @transform_11, window_bounds = array<i64: 2, 1, 32>}, {pipeline_mode = #tpu.pipeline_mode<synchronous>, transform_indices = @transform_12, window_bounds = array<i64: 2, 1, 32>}, {pipeline_mode = #tpu.pipeline_mode<synchronous>, transform_indices = @transform_13, window_bounds = array<i64: 24, 32, 8>}, {pipeline_mode = #tpu.pipeline_mode<synchronous>, transform_indices = @transform_14, window_bounds = array<i64: 24, 1, 8>}, {pipeline_mode = #tpu.pipeline_mode<synchronous>, transform_indices = @transform_15, window_bounds = array<i64: 8, 8, 32>}, {pipeline_mode = #tpu.pipeline_mode<synchronous>, transform_indices = @transform_16, window_bounds = array<i64: 2, 1, 32>}, {pipeline_mode = #tpu.pipeline_mode<synchronous>, transform_indices = @transform_17, window_bounds = array<i64: 2, 1, 32>}, {pipeline_mode = #tpu.pipeline_mode<synchronous>, transform_indices = @transform_18, window_bounds = array<i64: 2, 1, 32>}, {pipeline_mode = #tpu.pipeline_mode<synchronous>, transform_indices = @transform_19, window_bounds = array<i64: 2, 32, 128>}, {pipeline_mode = #tpu.pipeline_mode<synchronous>, transform_indices = @transform_20, window_bounds = array<i64: 2, 1, 128>}, {pipeline_mode = #tpu.pipeline_mode<synchronous>, transform_indices = @transform_21, window_bounds = array<i64: 2, 128, 32>}, {pipeline_mode = #tpu.pipeline_mode<synchronous>, transform_indices = @transform_22, window_bounds = array<i64: 2, 1, 32>}, {pipeline_mode = #tpu.pipeline_mode<synchronous>, transform_indices = @transform_23, window_bounds = array<i64: 32, 4>}, {pipeline_mode = #tpu.pipeline_mode<synchronous>, transform_indices = @transform_24, window_bounds = array<i64: 1, 4>}, {transform_indices = @transform_25, window_bounds = array<i64: 1, 8, 4>}]} {
    %c0 = arith.constant 0 : index
    %c0_0 = arith.constant 0 : index
    %c0_1 = arith.constant 0 : index
    %0 = vector.load %arg1[%c0, %c0_0, %c0_1] : memref<1x8x4xf32, #tpu.memory_space<vmem>>, vector<1x8x4xf32>
    %1 = vector.shape_cast %0 : vector<1x8x4xf32> to vector<8x4xf32>
    %c0_2 = arith.constant 0 : index
    %c0_3 = arith.constant 0 : index
    %2 = vector.load %arg2[%c0_2, %c0_3] : memref<4x32xf32, #tpu.memory_space<vmem>>, vector<4x32xf32>
    %cst = arith.constant dense<0.000000e+00> : vector<8x32xf32>
    %3 = tpu.matmul %1, %2, %cst {dimension_numbers = #tpu.dot_dimension_numbers<[1], [0], [0], [1], [0, 0, 1, 1], [], []>} : vector<8x4xf32>, vector<4x32xf32>, vector<8x32xf32> -> vector<8x32xf32>
    %c0_4 = arith.constant 0 : index
    %c0_5 = arith.constant 0 : index
    %4 = vector.load %arg3[%c0_4, %c0_5] : memref<1x32xf32, #tpu.memory_space<vmem>>, vector<1x32xf32>
    %5 = vector.broadcast %4 : vector<1x32xf32> to vector<8x32xf32>
    %6 = arith.addf %3, %5 : vector<8x32xf32>
    %7 = tpu.iota {dimensions = array<i32: 0>} : vector<8x8xi32>
    %8 = tpu.iota {dimensions = array<i32: 1>} : vector<8x8xi32>
    %9 = arith.cmpi sle, %8, %7 : vector<8x8xi32>
    %10 = tpu.iota {dimensions = array<i32: 0>} : vector<8x1xi32>
    %11 = arith.subi %7, %8 : vector<8x8xi32>
    %c1_i32 = arith.constant 1 : i32
    %12 = vector.broadcast %c1_i32 : i32 to vector<8x8xi32>
    %13 = arith.cmpi eq, %11, %12 : vector<8x8xi32>
    %14 = arith.extui %13 : vector<8x8xi1> to vector<8x8xi32>
    %15 = arith.sitofp %14 : vector<8x8xi32> to vector<8x8xf32>
    %c1_i32_6 = arith.constant 1 : i32
    %16 = vector.broadcast %c1_i32_6 : i32 to vector<8x1xi32>
    %17 = arith.cmpi slt, %10, %16 : vector<8x1xi32>
    %18 = arith.extui %17 : vector<8x1xi1> to vector<8x1xi32>
    %19 = arith.sitofp %18 : vector<8x1xi32> to vector<8x1xf32>
    %20 = arith.subi %7, %8 : vector<8x8xi32>
    %c2_i32 = arith.constant 2 : i32
    %21 = vector.broadcast %c2_i32 : i32 to vector<8x8xi32>
    %22 = arith.cmpi eq, %20, %21 : vector<8x8xi32>
    %23 = arith.extui %22 : vector<8x8xi1> to vector<8x8xi32>
    %24 = arith.sitofp %23 : vector<8x8xi32> to vector<8x8xf32>
    %c2_i32_7 = arith.constant 2 : i32
    %25 = vector.broadcast %c2_i32_7 : i32 to vector<8x1xi32>
    %26 = arith.cmpi slt, %10, %25 : vector<8x1xi32>
    %27 = arith.extui %26 : vector<8x1xi1> to vector<8x1xi32>
    %28 = arith.sitofp %27 : vector<8x1xi32> to vector<8x1xf32>
    %c0_8 = arith.constant 0 : index
    %c0_9 = arith.constant 0 : index
    %c0_10 = arith.constant 0 : index
    %29 = vector.load %arg4[%c0_8, %c0_9, %c0_10] : memref<2x1x32xf32, #tpu.memory_space<vmem>>, vector<1x1x32xf32>
    %30 = vector.shape_cast %29 : vector<1x1x32xf32> to vector<1x32xf32>
    %c0_11 = arith.constant 0 : index
    %c0_12 = arith.constant 0 : index
    %c0_13 = arith.constant 0 : index
    %31 = vector.load %arg5[%c0_11, %c0_12, %c0_13] : memref<2x1x32xf32, #tpu.memory_space<vmem>>, vector<1x1x32xf32>
    %32 = vector.shape_cast %31 : vector<1x1x32xf32> to vector<1x32xf32>
    %cst_14 = arith.constant dense<0.000000e+00> : vector<8xf32>
    %33 = vector.multi_reduction <add>, %6, %cst_14 [1] : vector<8x32xf32> to vector<8xf32>
    %34 = vector.shape_cast %33 : vector<8xf32> to vector<8x1xf32>
    %cst_15 = arith.constant 3.200000e+01 : f32
    %35 = vector.broadcast %cst_15 : f32 to vector<8x1xf32>
    %36 = arith.divf %34, %35 : vector<8x1xf32>
    %37 = vector.broadcast %36 : vector<8x1xf32> to vector<8x32xf32>
    %38 = arith.subf %6, %37 : vector<8x32xf32>
    %39 = arith.mulf %38, %38 : vector<8x32xf32>
    %cst_16 = arith.constant dense<0.000000e+00> : vector<8xf32>
    %40 = vector.multi_reduction <add>, %39, %cst_16 [1] : vector<8x32xf32> to vector<8xf32>
    %41 = vector.shape_cast %40 : vector<8xf32> to vector<8x1xf32>
    %cst_17 = arith.constant 3.100000e+01 : f32
    %42 = vector.broadcast %cst_17 : f32 to vector<8x1xf32>
    %43 = arith.divf %41, %42 : vector<8x1xf32>
    %44 = vector.broadcast %36 : vector<8x1xf32> to vector<8x32xf32>
    %45 = arith.subf %6, %44 : vector<8x32xf32>
    %46 = vector.broadcast %30 : vector<1x32xf32> to vector<8x32xf32>
    %47 = arith.mulf %46, %45 : vector<8x32xf32>
    %48 = math.sqrt %43 : vector<8x1xf32>
    %cst_18 = arith.constant 9.99999997E-7 : f32
    %49 = vector.broadcast %cst_18 : f32 to vector<8x1xf32>
    %50 = arith.addf %48, %49 : vector<8x1xf32>
    %51 = vector.broadcast %50 : vector<8x1xf32> to vector<8x32xf32>
    %52 = arith.divf %47, %51 : vector<8x32xf32>
    %53 = vector.broadcast %32 : vector<1x32xf32> to vector<8x32xf32>
    %54 = arith.addf %52, %53 : vector<8x32xf32>
    %c0_19 = arith.constant 0 : index
    %c0_20 = arith.constant 0 : index
    %c0_21 = arith.constant 0 : index
    %55 = vector.load %arg6[%c0_19, %c0_20, %c0_21] : memref<6x32x32xf32, #tpu.memory_space<vmem>>, vector<1x32x32xf32>
    %56 = vector.shape_cast %55 : vector<1x32x32xf32> to vector<32x32xf32>
    %c1 = arith.constant 1 : index
    %c0_22 = arith.constant 0 : index
    %c0_23 = arith.constant 0 : index
    %57 = vector.load %arg6[%c1, %c0_22, %c0_23] : memref<6x32x32xf32, #tpu.memory_space<vmem>>, vector<1x32x32xf32>
    %58 = vector.shape_cast %57 : vector<1x32x32xf32> to vector<32x32xf32>
    %c2 = arith.constant 2 : index
    %c0_24 = arith.constant 0 : index
    %c0_25 = arith.constant 0 : index
    %59 = vector.load %arg6[%c2, %c0_24, %c0_25] : memref<6x32x32xf32, #tpu.memory_space<vmem>>, vector<1x32x32xf32>
    %60 = vector.shape_cast %59 : vector<1x32x32xf32> to vector<32x32xf32>
    %c0_26 = arith.constant 0 : index
    %c0_27 = arith.constant 0 : index
    %c0_28 = arith.constant 0 : index
    %61 = vector.load %arg7[%c0_26, %c0_27, %c0_28] : memref<6x32x32xf32, #tpu.memory_space<vmem>>, vector<1x32x32xf32>
    %62 = vector.shape_cast %61 : vector<1x32x32xf32> to vector<32x32xf32>
    %c1_29 = arith.constant 1 : index
    %c0_30 = arith.constant 0 : index
    %c0_31 = arith.constant 0 : index
    %63 = vector.load %arg7[%c1_29, %c0_30, %c0_31] : memref<6x32x32xf32, #tpu.memory_space<vmem>>, vector<1x32x32xf32>
    %64 = vector.shape_cast %63 : vector<1x32x32xf32> to vector<32x32xf32>
    %c2_32 = arith.constant 2 : index
    %c0_33 = arith.constant 0 : index
    %c0_34 = arith.constant 0 : index
    %65 = vector.load %arg7[%c2_32, %c0_33, %c0_34] : memref<6x32x32xf32, #tpu.memory_space<vmem>>, vector<1x32x32xf32>
    %66 = vector.shape_cast %65 : vector<1x32x32xf32> to vector<32x32xf32>
    %c0_35 = arith.constant 0 : index
    %c0_36 = arith.constant 0 : index
    %c0_37 = arith.constant 0 : index
    %67 = vector.load %arg8[%c0_35, %c0_36, %c0_37] : memref<6x1x32xf32, #tpu.memory_space<vmem>>, vector<1x1x32xf32>
    %68 = vector.shape_cast %67 : vector<1x1x32xf32> to vector<1x32xf32>
    %c1_38 = arith.constant 1 : index
    %c0_39 = arith.constant 0 : index
    %c0_40 = arith.constant 0 : index
    %69 = vector.load %arg8[%c1_38, %c0_39, %c0_40] : memref<6x1x32xf32, #tpu.memory_space<vmem>>, vector<1x1x32xf32>
    %70 = vector.shape_cast %69 : vector<1x1x32xf32> to vector<1x32xf32>
    %c2_41 = arith.constant 2 : index
    %c0_42 = arith.constant 0 : index
    %c0_43 = arith.constant 0 : index
    %71 = vector.load %arg8[%c2_41, %c0_42, %c0_43] : memref<6x1x32xf32, #tpu.memory_space<vmem>>, vector<1x1x32xf32>
    %72 = vector.shape_cast %71 : vector<1x1x32xf32> to vector<1x32xf32>
    %c0_44 = arith.constant 0 : index
    %c0_45 = arith.constant 0 : index
    %c0_46 = arith.constant 0 : index
    %73 = vector.load %arg9[%c0_44, %c0_45, %c0_46] : memref<6x1x32xf32, #tpu.memory_space<vmem>>, vector<1x1x32xf32>
    %74 = vector.shape_cast %73 : vector<1x1x32xf32> to vector<1x32xf32>
    %c1_47 = arith.constant 1 : index
    %c0_48 = arith.constant 0 : index
    %c0_49 = arith.constant 0 : index
    %75 = vector.load %arg9[%c1_47, %c0_48, %c0_49] : memref<6x1x32xf32, #tpu.memory_space<vmem>>, vector<1x1x32xf32>
    %76 = vector.shape_cast %75 : vector<1x1x32xf32> to vector<1x32xf32>
    %c2_50 = arith.constant 2 : index
    %c0_51 = arith.constant 0 : index
    %c0_52 = arith.constant 0 : index
    %77 = vector.load %arg9[%c2_50, %c0_51, %c0_52] : memref<6x1x32xf32, #tpu.memory_space<vmem>>, vector<1x1x32xf32>
    %78 = vector.shape_cast %77 : vector<1x1x32xf32> to vector<1x32xf32>
    %cst_53 = arith.constant dense<0.000000e+00> : vector<8x32xf32>
    %79 = tpu.matmul %54, %56, %cst_53 {dimension_numbers = #tpu.dot_dimension_numbers<[1], [0], [0], [1], [0, 0, 1, 1], [], []>} : vector<8x32xf32>, vector<32x32xf32>, vector<8x32xf32> -> vector<8x32xf32>
    %80 = vector.broadcast %68 : vector<1x32xf32> to vector<8x32xf32>
    %81 = arith.addf %79, %80 : vector<8x32xf32>
    %cst_54 = arith.constant dense<0.000000e+00> : vector<8x32xf32>
    %82 = tpu.matmul %54, %58, %cst_54 {dimension_numbers = #tpu.dot_dimension_numbers<[1], [0], [0], [1], [0, 0, 1, 1], [], []>} : vector<8x32xf32>, vector<32x32xf32>, vector<8x32xf32> -> vector<8x32xf32>
    %83 = vector.broadcast %70 : vector<1x32xf32> to vector<8x32xf32>
    %84 = arith.addf %82, %83 : vector<8x32xf32>
    %cst_55 = arith.constant dense<0.000000e+00> : vector<8x32xf32>
    %85 = tpu.matmul %54, %60, %cst_55 {dimension_numbers = #tpu.dot_dimension_numbers<[1], [0], [0], [1], [0, 0, 1, 1], [], []>} : vector<8x32xf32>, vector<32x32xf32>, vector<8x32xf32> -> vector<8x32xf32>
    %86 = vector.broadcast %72 : vector<1x32xf32> to vector<8x32xf32>
    %87 = arith.addf %85, %86 : vector<8x32xf32>
    %cst_56 = arith.constant 0.000000e+00 : f32
    %88 = vector.broadcast %cst_56 : f32 to vector<8x32xf32>
    %cst_57 = arith.constant dense<0.000000e+00> : vector<8x32xf32>
    %89 = tpu.matmul %24, %81, %cst_57 {dimension_numbers = #tpu.dot_dimension_numbers<[1], [0], [0], [1], [0, 0, 1, 1], [], []>} : vector<8x8xf32>, vector<8x32xf32>, vector<8x32xf32> -> vector<8x32xf32>
    %90 = vector.broadcast %28 : vector<8x1xf32> to vector<8x32xf32>
    %91 = vector.broadcast %68 : vector<1x32xf32> to vector<8x32xf32>
    %92 = arith.mulf %90, %91 : vector<8x32xf32>
    %93 = arith.addf %89, %92 : vector<8x32xf32>
    %cst_58 = arith.constant dense<0.000000e+00> : vector<8x32xf32>
    %94 = tpu.matmul %24, %84, %cst_58 {dimension_numbers = #tpu.dot_dimension_numbers<[1], [0], [0], [1], [0, 0, 1, 1], [], []>} : vector<8x8xf32>, vector<8x32xf32>, vector<8x32xf32> -> vector<8x32xf32>
    %95 = vector.broadcast %28 : vector<8x1xf32> to vector<8x32xf32>
    %96 = vector.broadcast %70 : vector<1x32xf32> to vector<8x32xf32>
    %97 = arith.mulf %95, %96 : vector<8x32xf32>
    %98 = arith.addf %94, %97 : vector<8x32xf32>
    %cst_59 = arith.constant dense<0.000000e+00> : vector<8x32xf32>
    %99 = tpu.matmul %24, %87, %cst_59 {dimension_numbers = #tpu.dot_dimension_numbers<[1], [0], [0], [1], [0, 0, 1, 1], [], []>} : vector<8x8xf32>, vector<8x32xf32>, vector<8x32xf32> -> vector<8x32xf32>
    %100 = vector.broadcast %28 : vector<8x1xf32> to vector<8x32xf32>
    %101 = vector.broadcast %72 : vector<1x32xf32> to vector<8x32xf32>
    %102 = arith.mulf %100, %101 : vector<8x32xf32>
    %103 = arith.addf %99, %102 : vector<8x32xf32>
    %cst_60 = arith.constant dense<0.000000e+00> : vector<8x32xf32>
    %104 = tpu.matmul %88, %62, %cst_60 {dimension_numbers = #tpu.dot_dimension_numbers<[1], [0], [0], [1], [0, 0, 1, 1], [], []>} : vector<8x32xf32>, vector<32x32xf32>, vector<8x32xf32> -> vector<8x32xf32>
    %105 = vector.broadcast %74 : vector<1x32xf32> to vector<8x32xf32>
    %106 = arith.addf %104, %105 : vector<8x32xf32>
    %cst_61 = arith.constant dense<0.000000e+00> : vector<8x32xf32>
    %107 = tpu.matmul %88, %64, %cst_61 {dimension_numbers = #tpu.dot_dimension_numbers<[1], [0], [0], [1], [0, 0, 1, 1], [], []>} : vector<8x32xf32>, vector<32x32xf32>, vector<8x32xf32> -> vector<8x32xf32>
    %108 = vector.broadcast %76 : vector<1x32xf32> to vector<8x32xf32>
    %109 = arith.addf %107, %108 : vector<8x32xf32>
    %cst_62 = arith.constant dense<0.000000e+00> : vector<8x32xf32>
    %110 = tpu.matmul %88, %66, %cst_62 {dimension_numbers = #tpu.dot_dimension_numbers<[1], [0], [0], [1], [0, 0, 1, 1], [], []>} : vector<8x32xf32>, vector<32x32xf32>, vector<8x32xf32> -> vector<8x32xf32>
    %111 = vector.broadcast %78 : vector<1x32xf32> to vector<8x32xf32>
    %112 = arith.addf %110, %111 : vector<8x32xf32>
    %113 = arith.addf %93, %106 : vector<8x32xf32>
    %114 = arith.negf %113 : vector<8x32xf32>
    %115 = math.exp %114 : vector<8x32xf32>
    %cst_63 = arith.constant 1.000000e+00 : f32
    %116 = vector.broadcast %cst_63 : f32 to vector<8x32xf32>
    %117 = arith.addf %116, %115 : vector<8x32xf32>
    %118 = arith.divf %116, %117 : vector<8x32xf32>
    %119 = arith.addf %98, %109 : vector<8x32xf32>
    %120 = arith.negf %119 : vector<8x32xf32>
    %121 = math.exp %120 : vector<8x32xf32>
    %cst_64 = arith.constant 1.000000e+00 : f32
    %122 = vector.broadcast %cst_64 : f32 to vector<8x32xf32>
    %123 = arith.addf %122, %121 : vector<8x32xf32>
    %124 = arith.divf %122, %123 : vector<8x32xf32>
    %125 = arith.mulf %118, %112 : vector<8x32xf32>
    %126 = arith.addf %103, %125 : vector<8x32xf32>
    %127 = math.tanh %126 : vector<8x32xf32>
    %cst_65 = arith.constant 1.000000e+00 : f32
    %128 = vector.broadcast %cst_65 : f32 to vector<8x32xf32>
    %129 = arith.subf %128, %124 : vector<8x32xf32>
    %130 = arith.mulf %129, %127 : vector<8x32xf32>
    %131 = arith.mulf %124, %88 : vector<8x32xf32>
    %132 = arith.addf %130, %131 : vector<8x32xf32>
    %cst_66 = arith.constant dense<0.000000e+00> : vector<8x32xf32>
    %133 = tpu.matmul %15, %81, %cst_66 {dimension_numbers = #tpu.dot_dimension_numbers<[1], [0], [0], [1], [0, 0, 1, 1], [], []>} : vector<8x8xf32>, vector<8x32xf32>, vector<8x32xf32> -> vector<8x32xf32>
    %134 = vector.broadcast %19 : vector<8x1xf32> to vector<8x32xf32>
    %135 = vector.broadcast %68 : vector<1x32xf32> to vector<8x32xf32>
    %136 = arith.mulf %134, %135 : vector<8x32xf32>
    %137 = arith.addf %133, %136 : vector<8x32xf32>
    %cst_67 = arith.constant dense<0.000000e+00> : vector<8x32xf32>
    %138 = tpu.matmul %15, %84, %cst_67 {dimension_numbers = #tpu.dot_dimension_numbers<[1], [0], [0], [1], [0, 0, 1, 1], [], []>} : vector<8x8xf32>, vector<8x32xf32>, vector<8x32xf32> -> vector<8x32xf32>
    %139 = vector.broadcast %19 : vector<8x1xf32> to vector<8x32xf32>
    %140 = vector.broadcast %70 : vector<1x32xf32> to vector<8x32xf32>
    %141 = arith.mulf %139, %140 : vector<8x32xf32>
    %142 = arith.addf %138, %141 : vector<8x32xf32>
    %cst_68 = arith.constant dense<0.000000e+00> : vector<8x32xf32>
    %143 = tpu.matmul %15, %87, %cst_68 {dimension_numbers = #tpu.dot_dimension_numbers<[1], [0], [0], [1], [0, 0, 1, 1], [], []>} : vector<8x8xf32>, vector<8x32xf32>, vector<8x32xf32> -> vector<8x32xf32>
    %144 = vector.broadcast %19 : vector<8x1xf32> to vector<8x32xf32>
    %145 = vector.broadcast %72 : vector<1x32xf32> to vector<8x32xf32>
    %146 = arith.mulf %144, %145 : vector<8x32xf32>
    %147 = arith.addf %143, %146 : vector<8x32xf32>
    %cst_69 = arith.constant dense<0.000000e+00> : vector<8x32xf32>
    %148 = tpu.matmul %132, %62, %cst_69 {dimension_numbers = #tpu.dot_dimension_numbers<[1], [0], [0], [1], [0, 0, 1, 1], [], []>} : vector<8x32xf32>, vector<32x32xf32>, vector<8x32xf32> -> vector<8x32xf32>
    %149 = vector.broadcast %74 : vector<1x32xf32> to vector<8x32xf32>
    %150 = arith.addf %148, %149 : vector<8x32xf32>
    %cst_70 = arith.constant dense<0.000000e+00> : vector<8x32xf32>
    %151 = tpu.matmul %132, %64, %cst_70 {dimension_numbers = #tpu.dot_dimension_numbers<[1], [0], [0], [1], [0, 0, 1, 1], [], []>} : vector<8x32xf32>, vector<32x32xf32>, vector<8x32xf32> -> vector<8x32xf32>
    %152 = vector.broadcast %76 : vector<1x32xf32> to vector<8x32xf32>
    %153 = arith.addf %151, %152 : vector<8x32xf32>
    %cst_71 = arith.constant dense<0.000000e+00> : vector<8x32xf32>
    %154 = tpu.matmul %132, %66, %cst_71 {dimension_numbers = #tpu.dot_dimension_numbers<[1], [0], [0], [1], [0, 0, 1, 1], [], []>} : vector<8x32xf32>, vector<32x32xf32>, vector<8x32xf32> -> vector<8x32xf32>
    %155 = vector.broadcast %78 : vector<1x32xf32> to vector<8x32xf32>
    %156 = arith.addf %154, %155 : vector<8x32xf32>
    %157 = arith.addf %137, %150 : vector<8x32xf32>
    %158 = arith.negf %157 : vector<8x32xf32>
    %159 = math.exp %158 : vector<8x32xf32>
    %cst_72 = arith.constant 1.000000e+00 : f32
    %160 = vector.broadcast %cst_72 : f32 to vector<8x32xf32>
    %161 = arith.addf %160, %159 : vector<8x32xf32>
    %162 = arith.divf %160, %161 : vector<8x32xf32>
    %163 = arith.addf %142, %153 : vector<8x32xf32>
    %164 = arith.negf %163 : vector<8x32xf32>
    %165 = math.exp %164 : vector<8x32xf32>
    %cst_73 = arith.constant 1.000000e+00 : f32
    %166 = vector.broadcast %cst_73 : f32 to vector<8x32xf32>
    %167 = arith.addf %166, %165 : vector<8x32xf32>
    %168 = arith.divf %166, %167 : vector<8x32xf32>
    %169 = arith.mulf %162, %156 : vector<8x32xf32>
    %170 = arith.addf %147, %169 : vector<8x32xf32>
    %171 = math.tanh %170 : vector<8x32xf32>
    %cst_74 = arith.constant 1.000000e+00 : f32
    %172 = vector.broadcast %cst_74 : f32 to vector<8x32xf32>
    %173 = arith.subf %172, %168 : vector<8x32xf32>
    %174 = arith.mulf %173, %171 : vector<8x32xf32>
    %175 = arith.mulf %168, %132 : vector<8x32xf32>
    %176 = arith.addf %174, %175 : vector<8x32xf32>
    %cst_75 = arith.constant dense<0.000000e+00> : vector<8x32xf32>
    %177 = tpu.matmul %176, %62, %cst_75 {dimension_numbers = #tpu.dot_dimension_numbers<[1], [0], [0], [1], [0, 0, 1, 1], [], []>} : vector<8x32xf32>, vector<32x32xf32>, vector<8x32xf32> -> vector<8x32xf32>
    %178 = vector.broadcast %74 : vector<1x32xf32> to vector<8x32xf32>
    %179 = arith.addf %177, %178 : vector<8x32xf32>
    %cst_76 = arith.constant dense<0.000000e+00> : vector<8x32xf32>
    %180 = tpu.matmul %176, %64, %cst_76 {dimension_numbers = #tpu.dot_dimension_numbers<[1], [0], [0], [1], [0, 0, 1, 1], [], []>} : vector<8x32xf32>, vector<32x32xf32>, vector<8x32xf32> -> vector<8x32xf32>
    %181 = vector.broadcast %76 : vector<1x32xf32> to vector<8x32xf32>
    %182 = arith.addf %180, %181 : vector<8x32xf32>
    %cst_77 = arith.constant dense<0.000000e+00> : vector<8x32xf32>
    %183 = tpu.matmul %176, %66, %cst_77 {dimension_numbers = #tpu.dot_dimension_numbers<[1], [0], [0], [1], [0, 0, 1, 1], [], []>} : vector<8x32xf32>, vector<32x32xf32>, vector<8x32xf32> -> vector<8x32xf32>
    %184 = vector.broadcast %78 : vector<1x32xf32> to vector<8x32xf32>
    %185 = arith.addf %183, %184 : vector<8x32xf32>
    %186 = arith.addf %81, %179 : vector<8x32xf32>
    %187 = arith.negf %186 : vector<8x32xf32>
    %188 = math.exp %187 : vector<8x32xf32>
    %cst_78 = arith.constant 1.000000e+00 : f32
    %189 = vector.broadcast %cst_78 : f32 to vector<8x32xf32>
    %190 = arith.addf %189, %188 : vector<8x32xf32>
    %191 = arith.divf %189, %190 : vector<8x32xf32>
    %192 = arith.addf %84, %182 : vector<8x32xf32>
    %193 = arith.negf %192 : vector<8x32xf32>
    %194 = math.exp %193 : vector<8x32xf32>
    %cst_79 = arith.constant 1.000000e+00 : f32
    %195 = vector.broadcast %cst_79 : f32 to vector<8x32xf32>
    %196 = arith.addf %195, %194 : vector<8x32xf32>
    %197 = arith.divf %195, %196 : vector<8x32xf32>
    %198 = arith.mulf %191, %185 : vector<8x32xf32>
    %199 = arith.addf %87, %198 : vector<8x32xf32>
    %200 = math.tanh %199 : vector<8x32xf32>
    %cst_80 = arith.constant 1.000000e+00 : f32
    %201 = vector.broadcast %cst_80 : f32 to vector<8x32xf32>
    %202 = arith.subf %201, %197 : vector<8x32xf32>
    %203 = arith.mulf %202, %200 : vector<8x32xf32>
    %204 = arith.mulf %197, %176 : vector<8x32xf32>
    %205 = arith.addf %203, %204 : vector<8x32xf32>
    %c0_81 = arith.constant 0 : index
    %c0_82 = arith.constant 0 : index
    %c0_83 = arith.constant 0 : index
    %206 = vector.load %arg10[%c0_81, %c0_82, %c0_83] : memref<2x32x32xf32, #tpu.memory_space<vmem>>, vector<1x32x32xf32>
    %207 = vector.shape_cast %206 : vector<1x32x32xf32> to vector<32x32xf32>
    %cst_84 = arith.constant dense<0.000000e+00> : vector<8x32xf32>
    %208 = tpu.matmul %205, %207, %cst_84 {dimension_numbers = #tpu.dot_dimension_numbers<[1], [0], [0], [1], [0, 0, 1, 1], [], []>} : vector<8x32xf32>, vector<32x32xf32>, vector<8x32xf32> -> vector<8x32xf32>
    %c0_85 = arith.constant 0 : index
    %c0_86 = arith.constant 0 : index
    %c0_87 = arith.constant 0 : index
    %209 = vector.load %arg11[%c0_85, %c0_86, %c0_87] : memref<2x1x32xf32, #tpu.memory_space<vmem>>, vector<1x1x32xf32>
    %210 = vector.shape_cast %209 : vector<1x1x32xf32> to vector<1x32xf32>
    %211 = vector.broadcast %210 : vector<1x32xf32> to vector<8x32xf32>
    %212 = arith.addf %208, %211 : vector<8x32xf32>
    %cst_88 = arith.constant 0.000000e+00 : f32
    %213 = vector.broadcast %cst_88 : f32 to vector<8x32xf32>
    %214 = arith.maximumf %212, %213 : vector<8x32xf32>
    %215 = arith.addf %6, %214 : vector<8x32xf32>
    %c0_89 = arith.constant 0 : index
    %c0_90 = arith.constant 0 : index
    %c0_91 = arith.constant 0 : index
    %216 = vector.load %arg12[%c0_89, %c0_90, %c0_91] : memref<2x1x32xf32, #tpu.memory_space<vmem>>, vector<1x1x32xf32>
    %217 = vector.shape_cast %216 : vector<1x1x32xf32> to vector<1x32xf32>
    %c0_92 = arith.constant 0 : index
    %c0_93 = arith.constant 0 : index
    %c0_94 = arith.constant 0 : index
    %218 = vector.load %arg13[%c0_92, %c0_93, %c0_94] : memref<2x1x32xf32, #tpu.memory_space<vmem>>, vector<1x1x32xf32>
    %219 = vector.shape_cast %218 : vector<1x1x32xf32> to vector<1x32xf32>
    %cst_95 = arith.constant dense<0.000000e+00> : vector<8xf32>
    %220 = vector.multi_reduction <add>, %215, %cst_95 [1] : vector<8x32xf32> to vector<8xf32>
    %221 = vector.shape_cast %220 : vector<8xf32> to vector<8x1xf32>
    %cst_96 = arith.constant 3.200000e+01 : f32
    %222 = vector.broadcast %cst_96 : f32 to vector<8x1xf32>
    %223 = arith.divf %221, %222 : vector<8x1xf32>
    %224 = vector.broadcast %223 : vector<8x1xf32> to vector<8x32xf32>
    %225 = arith.subf %215, %224 : vector<8x32xf32>
    %226 = arith.mulf %225, %225 : vector<8x32xf32>
    %cst_97 = arith.constant dense<0.000000e+00> : vector<8xf32>
    %227 = vector.multi_reduction <add>, %226, %cst_97 [1] : vector<8x32xf32> to vector<8xf32>
    %228 = vector.shape_cast %227 : vector<8xf32> to vector<8x1xf32>
    %cst_98 = arith.constant 3.100000e+01 : f32
    %229 = vector.broadcast %cst_98 : f32 to vector<8x1xf32>
    %230 = arith.divf %228, %229 : vector<8x1xf32>
    %231 = vector.broadcast %223 : vector<8x1xf32> to vector<8x32xf32>
    %232 = arith.subf %215, %231 : vector<8x32xf32>
    %233 = vector.broadcast %217 : vector<1x32xf32> to vector<8x32xf32>
    %234 = arith.mulf %233, %232 : vector<8x32xf32>
    %235 = math.sqrt %230 : vector<8x1xf32>
    %cst_99 = arith.constant 9.99999997E-7 : f32
    %236 = vector.broadcast %cst_99 : f32 to vector<8x1xf32>
    %237 = arith.addf %235, %236 : vector<8x1xf32>
    %238 = vector.broadcast %237 : vector<8x1xf32> to vector<8x32xf32>
    %239 = arith.divf %234, %238 : vector<8x32xf32>
    %240 = vector.broadcast %219 : vector<1x32xf32> to vector<8x32xf32>
    %241 = arith.addf %239, %240 : vector<8x32xf32>
    %c0_100 = arith.constant 0 : index
    %c0_101 = arith.constant 0 : index
    %c0_102 = arith.constant 0 : index
    %242 = vector.load %arg17[%c0_100, %c0_101, %c0_102] : memref<2x1x32xf32, #tpu.memory_space<vmem>>, vector<1x1x32xf32>
    %243 = vector.shape_cast %242 : vector<1x1x32xf32> to vector<1x32xf32>
    %244 = vector.shape_cast %243 : vector<1x32xf32> to vector<1x32xf32>
    %245 = vector.broadcast %244 : vector<1x32xf32> to vector<8x32xf32>
    %c0_103 = arith.constant 0 : index
    %c0_104 = arith.constant 0 : index
    %c0_105 = arith.constant 0 : index
    %246 = vector.load %arg14[%c0_103, %c0_104, %c0_105] : memref<24x32x8xf32, #tpu.memory_space<vmem>>, vector<1x32x8xf32>
    %247 = vector.shape_cast %246 : vector<1x32x8xf32> to vector<32x8xf32>
    %cst_106 = arith.constant dense<0.000000e+00> : vector<8x8xf32>
    %248 = tpu.matmul %241, %247, %cst_106 {dimension_numbers = #tpu.dot_dimension_numbers<[1], [0], [0], [1], [0, 0, 1, 1], [], []>} : vector<8x32xf32>, vector<32x8xf32>, vector<8x8xf32> -> vector<8x8xf32>
    %c0_107 = arith.constant 0 : index
    %c0_108 = arith.constant 0 : index
    %c0_109 = arith.constant 0 : index
    %249 = vector.load %arg15[%c0_107, %c0_108, %c0_109] : memref<24x1x8xf32, #tpu.memory_space<vmem>>, vector<1x1x8xf32>
    %250 = vector.shape_cast %249 : vector<1x1x8xf32> to vector<1x8xf32>
    %251 = vector.broadcast %250 : vector<1x8xf32> to vector<8x8xf32>
    %252 = arith.addf %248, %251 : vector<8x8xf32>
    %c4 = arith.constant 4 : index
    %c0_110 = arith.constant 0 : index
    %c0_111 = arith.constant 0 : index
    %253 = vector.load %arg14[%c4, %c0_110, %c0_111] : memref<24x32x8xf32, #tpu.memory_space<vmem>>, vector<1x32x8xf32>
    %254 = vector.shape_cast %253 : vector<1x32x8xf32> to vector<32x8xf32>
    %cst_112 = arith.constant dense<0.000000e+00> : vector<8x8xf32>
    %255 = tpu.matmul %241, %254, %cst_112 {dimension_numbers = #tpu.dot_dimension_numbers<[1], [0], [0], [1], [0, 0, 1, 1], [], []>} : vector<8x32xf32>, vector<32x8xf32>, vector<8x8xf32> -> vector<8x8xf32>
    %c4_113 = arith.constant 4 : index
    %c0_114 = arith.constant 0 : index
    %c0_115 = arith.constant 0 : index
    %256 = vector.load %arg15[%c4_113, %c0_114, %c0_115] : memref<24x1x8xf32, #tpu.memory_space<vmem>>, vector<1x1x8xf32>
    %257 = vector.shape_cast %256 : vector<1x1x8xf32> to vector<1x8xf32>
    %258 = vector.broadcast %257 : vector<1x8xf32> to vector<8x8xf32>
    %259 = arith.addf %255, %258 : vector<8x8xf32>
    %c8 = arith.constant 8 : index
    %c0_116 = arith.constant 0 : index
    %c0_117 = arith.constant 0 : index
    %260 = vector.load %arg14[%c8, %c0_116, %c0_117] : memref<24x32x8xf32, #tpu.memory_space<vmem>>, vector<1x32x8xf32>
    %261 = vector.shape_cast %260 : vector<1x32x8xf32> to vector<32x8xf32>
    %cst_118 = arith.constant dense<0.000000e+00> : vector<8x8xf32>
    %262 = tpu.matmul %241, %261, %cst_118 {dimension_numbers = #tpu.dot_dimension_numbers<[1], [0], [0], [1], [0, 0, 1, 1], [], []>} : vector<8x32xf32>, vector<32x8xf32>, vector<8x8xf32> -> vector<8x8xf32>
    %c8_119 = arith.constant 8 : index
    %c0_120 = arith.constant 0 : index
    %c0_121 = arith.constant 0 : index
    %263 = vector.load %arg15[%c8_119, %c0_120, %c0_121] : memref<24x1x8xf32, #tpu.memory_space<vmem>>, vector<1x1x8xf32>
    %264 = vector.shape_cast %263 : vector<1x1x8xf32> to vector<1x8xf32>
    %265 = vector.broadcast %264 : vector<1x8xf32> to vector<8x8xf32>
    %266 = arith.addf %262, %265 : vector<8x8xf32>
    "tpu.trace_start"() <{level = 10 : i32, message = "qd,kd->qk"}> : () -> ()
    %cst_122 = arith.constant dense<0.000000e+00> : vector<8x8xf32>
    %267 = tpu.matmul %252, %259, %cst_122 {dimension_numbers = #tpu.dot_dimension_numbers<[1], [1], [0], [0], [0, 0, 1, 0], [], []>} : vector<8x8xf32>, vector<8x8xf32>, vector<8x8xf32> -> vector<8x8xf32>
    "tpu.trace_stop"() : () -> ()
    %cst_123 = arith.constant 0.353553385 : f32
    %268 = vector.broadcast %cst_123 : f32 to vector<8x8xf32>
    %269 = arith.mulf %267, %268 : vector<8x8xf32>
    %cst_124 = arith.constant -1.000000e+30 : f32
    %270 = vector.broadcast %cst_124 : f32 to vector<8x8xf32>
    %271 = arith.select %9, %269, %270 : vector<8x8xi1>, vector<8x8xf32>
    %cst_125 = arith.constant dense<0xFF800000> : vector<8xf32>
    %272 = vector.multi_reduction <maximumf>, %271, %cst_125 [1] : vector<8x8xf32> to vector<8xf32>
    %cst_126 = arith.constant 0xFF800000 : f32
    %273 = vector.broadcast %cst_126 : f32 to vector<8xf32>
    %274 = arith.maximumf %273, %272 : vector<8xf32>
    %275 = vector.shape_cast %274 : vector<8xf32> to vector<8x1xf32>
    %276 = vector.broadcast %275 : vector<8x1xf32> to vector<8x8xf32>
    %277 = arith.subf %271, %276 : vector<8x8xf32>
    %278 = math.exp %277 : vector<8x8xf32>
    %cst_127 = arith.constant dense<0.000000e+00> : vector<8xf32>
    %279 = vector.multi_reduction <add>, %278, %cst_127 [1] : vector<8x8xf32> to vector<8xf32>
    %280 = vector.shape_cast %279 : vector<8xf32> to vector<8x1xf32>
    %281 = vector.broadcast %280 : vector<8x1xf32> to vector<8x8xf32>
    %282 = arith.divf %278, %281 : vector<8x8xf32>
    %cst_128 = arith.constant dense<0.000000e+00> : vector<8x8xf32>
    %283 = tpu.matmul %282, %266, %cst_128 {dimension_numbers = #tpu.dot_dimension_numbers<[1], [0], [0], [1], [0, 0, 1, 1], [], []>} : vector<8x8xf32>, vector<8x8xf32>, vector<8x8xf32> -> vector<8x8xf32>
    %c0_129 = arith.constant 0 : index
    %c0_130 = arith.constant 0 : index
    %c0_131 = arith.constant 0 : index
    %284 = vector.load %arg16[%c0_129, %c0_130, %c0_131] : memref<8x8x32xf32, #tpu.memory_space<vmem>>, vector<1x8x32xf32>
    %285 = vector.shape_cast %284 : vector<1x8x32xf32> to vector<8x32xf32>
    %cst_132 = arith.constant dense<0.000000e+00> : vector<8x32xf32>
    %286 = tpu.matmul %283, %285, %cst_132 {dimension_numbers = #tpu.dot_dimension_numbers<[1], [0], [0], [1], [0, 0, 1, 1], [], []>} : vector<8x8xf32>, vector<8x32xf32>, vector<8x32xf32> -> vector<8x32xf32>
    %287 = arith.addf %245, %286 : vector<8x32xf32>
    %c1_133 = arith.constant 1 : index
    %c0_134 = arith.constant 0 : index
    %c0_135 = arith.constant 0 : index
    %288 = vector.load %arg14[%c1_133, %c0_134, %c0_135] : memref<24x32x8xf32, #tpu.memory_space<vmem>>, vector<1x32x8xf32>
    %289 = vector.shape_cast %288 : vector<1x32x8xf32> to vector<32x8xf32>
    %cst_136 = arith.constant dense<0.000000e+00> : vector<8x8xf32>
    %290 = tpu.matmul %241, %289, %cst_136 {dimension_numbers = #tpu.dot_dimension_numbers<[1], [0], [0], [1], [0, 0, 1, 1], [], []>} : vector<8x32xf32>, vector<32x8xf32>, vector<8x8xf32> -> vector<8x8xf32>
    %c1_137 = arith.constant 1 : index
    %c0_138 = arith.constant 0 : index
    %c0_139 = arith.constant 0 : index
    %291 = vector.load %arg15[%c1_137, %c0_138, %c0_139] : memref<24x1x8xf32, #tpu.memory_space<vmem>>, vector<1x1x8xf32>
    %292 = vector.shape_cast %291 : vector<1x1x8xf32> to vector<1x8xf32>
    %293 = vector.broadcast %292 : vector<1x8xf32> to vector<8x8xf32>
    %294 = arith.addf %290, %293 : vector<8x8xf32>
    %c5 = arith.constant 5 : index
    %c0_140 = arith.constant 0 : index
    %c0_141 = arith.constant 0 : index
    %295 = vector.load %arg14[%c5, %c0_140, %c0_141] : memref<24x32x8xf32, #tpu.memory_space<vmem>>, vector<1x32x8xf32>
    %296 = vector.shape_cast %295 : vector<1x32x8xf32> to vector<32x8xf32>
    %cst_142 = arith.constant dense<0.000000e+00> : vector<8x8xf32>
    %297 = tpu.matmul %241, %296, %cst_142 {dimension_numbers = #tpu.dot_dimension_numbers<[1], [0], [0], [1], [0, 0, 1, 1], [], []>} : vector<8x32xf32>, vector<32x8xf32>, vector<8x8xf32> -> vector<8x8xf32>
    %c5_143 = arith.constant 5 : index
    %c0_144 = arith.constant 0 : index
    %c0_145 = arith.constant 0 : index
    %298 = vector.load %arg15[%c5_143, %c0_144, %c0_145] : memref<24x1x8xf32, #tpu.memory_space<vmem>>, vector<1x1x8xf32>
    %299 = vector.shape_cast %298 : vector<1x1x8xf32> to vector<1x8xf32>
    %300 = vector.broadcast %299 : vector<1x8xf32> to vector<8x8xf32>
    %301 = arith.addf %297, %300 : vector<8x8xf32>
    %c9 = arith.constant 9 : index
    %c0_146 = arith.constant 0 : index
    %c0_147 = arith.constant 0 : index
    %302 = vector.load %arg14[%c9, %c0_146, %c0_147] : memref<24x32x8xf32, #tpu.memory_space<vmem>>, vector<1x32x8xf32>
    %303 = vector.shape_cast %302 : vector<1x32x8xf32> to vector<32x8xf32>
    %cst_148 = arith.constant dense<0.000000e+00> : vector<8x8xf32>
    %304 = tpu.matmul %241, %303, %cst_148 {dimension_numbers = #tpu.dot_dimension_numbers<[1], [0], [0], [1], [0, 0, 1, 1], [], []>} : vector<8x32xf32>, vector<32x8xf32>, vector<8x8xf32> -> vector<8x8xf32>
    %c9_149 = arith.constant 9 : index
    %c0_150 = arith.constant 0 : index
    %c0_151 = arith.constant 0 : index
    %305 = vector.load %arg15[%c9_149, %c0_150, %c0_151] : memref<24x1x8xf32, #tpu.memory_space<vmem>>, vector<1x1x8xf32>
    %306 = vector.shape_cast %305 : vector<1x1x8xf32> to vector<1x8xf32>
    %307 = vector.broadcast %306 : vector<1x8xf32> to vector<8x8xf32>
    %308 = arith.addf %304, %307 : vector<8x8xf32>
    "tpu.trace_start"() <{level = 10 : i32, message = "qd,kd->qk"}> : () -> ()
    %cst_152 = arith.constant dense<0.000000e+00> : vector<8x8xf32>
    %309 = tpu.matmul %294, %301, %cst_152 {dimension_numbers = #tpu.dot_dimension_numbers<[1], [1], [0], [0], [0, 0, 1, 0], [], []>} : vector<8x8xf32>, vector<8x8xf32>, vector<8x8xf32> -> vector<8x8xf32>
    "tpu.trace_stop"() : () -> ()
    %cst_153 = arith.constant 0.353553385 : f32
    %310 = vector.broadcast %cst_153 : f32 to vector<8x8xf32>
    %311 = arith.mulf %309, %310 : vector<8x8xf32>
    %cst_154 = arith.constant -1.000000e+30 : f32
    %312 = vector.broadcast %cst_154 : f32 to vector<8x8xf32>
    %313 = arith.select %9, %311, %312 : vector<8x8xi1>, vector<8x8xf32>
    %cst_155 = arith.constant dense<0xFF800000> : vector<8xf32>
    %314 = vector.multi_reduction <maximumf>, %313, %cst_155 [1] : vector<8x8xf32> to vector<8xf32>
    %cst_156 = arith.constant 0xFF800000 : f32
    %315 = vector.broadcast %cst_156 : f32 to vector<8xf32>
    %316 = arith.maximumf %315, %314 : vector<8xf32>
    %317 = vector.shape_cast %316 : vector<8xf32> to vector<8x1xf32>
    %318 = vector.broadcast %317 : vector<8x1xf32> to vector<8x8xf32>
    %319 = arith.subf %313, %318 : vector<8x8xf32>
    %320 = math.exp %319 : vector<8x8xf32>
    %cst_157 = arith.constant dense<0.000000e+00> : vector<8xf32>
    %321 = vector.multi_reduction <add>, %320, %cst_157 [1] : vector<8x8xf32> to vector<8xf32>
    %322 = vector.shape_cast %321 : vector<8xf32> to vector<8x1xf32>
    %323 = vector.broadcast %322 : vector<8x1xf32> to vector<8x8xf32>
    %324 = arith.divf %320, %323 : vector<8x8xf32>
    %cst_158 = arith.constant dense<0.000000e+00> : vector<8x8xf32>
    %325 = tpu.matmul %324, %308, %cst_158 {dimension_numbers = #tpu.dot_dimension_numbers<[1], [0], [0], [1], [0, 0, 1, 1], [], []>} : vector<8x8xf32>, vector<8x8xf32>, vector<8x8xf32> -> vector<8x8xf32>
    %c1_159 = arith.constant 1 : index
    %c0_160 = arith.constant 0 : index
    %c0_161 = arith.constant 0 : index
    %326 = vector.load %arg16[%c1_159, %c0_160, %c0_161] : memref<8x8x32xf32, #tpu.memory_space<vmem>>, vector<1x8x32xf32>
    %327 = vector.shape_cast %326 : vector<1x8x32xf32> to vector<8x32xf32>
    %cst_162 = arith.constant dense<0.000000e+00> : vector<8x32xf32>
    %328 = tpu.matmul %325, %327, %cst_162 {dimension_numbers = #tpu.dot_dimension_numbers<[1], [0], [0], [1], [0, 0, 1, 1], [], []>} : vector<8x8xf32>, vector<8x32xf32>, vector<8x32xf32> -> vector<8x32xf32>
    %329 = arith.addf %287, %328 : vector<8x32xf32>
    %c2_163 = arith.constant 2 : index
    %c0_164 = arith.constant 0 : index
    %c0_165 = arith.constant 0 : index
    %330 = vector.load %arg14[%c2_163, %c0_164, %c0_165] : memref<24x32x8xf32, #tpu.memory_space<vmem>>, vector<1x32x8xf32>
    %331 = vector.shape_cast %330 : vector<1x32x8xf32> to vector<32x8xf32>
    %cst_166 = arith.constant dense<0.000000e+00> : vector<8x8xf32>
    %332 = tpu.matmul %241, %331, %cst_166 {dimension_numbers = #tpu.dot_dimension_numbers<[1], [0], [0], [1], [0, 0, 1, 1], [], []>} : vector<8x32xf32>, vector<32x8xf32>, vector<8x8xf32> -> vector<8x8xf32>
    %c2_167 = arith.constant 2 : index
    %c0_168 = arith.constant 0 : index
    %c0_169 = arith.constant 0 : index
    %333 = vector.load %arg15[%c2_167, %c0_168, %c0_169] : memref<24x1x8xf32, #tpu.memory_space<vmem>>, vector<1x1x8xf32>
    %334 = vector.shape_cast %333 : vector<1x1x8xf32> to vector<1x8xf32>
    %335 = vector.broadcast %334 : vector<1x8xf32> to vector<8x8xf32>
    %336 = arith.addf %332, %335 : vector<8x8xf32>
    %c6 = arith.constant 6 : index
    %c0_170 = arith.constant 0 : index
    %c0_171 = arith.constant 0 : index
    %337 = vector.load %arg14[%c6, %c0_170, %c0_171] : memref<24x32x8xf32, #tpu.memory_space<vmem>>, vector<1x32x8xf32>
    %338 = vector.shape_cast %337 : vector<1x32x8xf32> to vector<32x8xf32>
    %cst_172 = arith.constant dense<0.000000e+00> : vector<8x8xf32>
    %339 = tpu.matmul %241, %338, %cst_172 {dimension_numbers = #tpu.dot_dimension_numbers<[1], [0], [0], [1], [0, 0, 1, 1], [], []>} : vector<8x32xf32>, vector<32x8xf32>, vector<8x8xf32> -> vector<8x8xf32>
    %c6_173 = arith.constant 6 : index
    %c0_174 = arith.constant 0 : index
    %c0_175 = arith.constant 0 : index
    %340 = vector.load %arg15[%c6_173, %c0_174, %c0_175] : memref<24x1x8xf32, #tpu.memory_space<vmem>>, vector<1x1x8xf32>
    %341 = vector.shape_cast %340 : vector<1x1x8xf32> to vector<1x8xf32>
    %342 = vector.broadcast %341 : vector<1x8xf32> to vector<8x8xf32>
    %343 = arith.addf %339, %342 : vector<8x8xf32>
    %c10 = arith.constant 10 : index
    %c0_176 = arith.constant 0 : index
    %c0_177 = arith.constant 0 : index
    %344 = vector.load %arg14[%c10, %c0_176, %c0_177] : memref<24x32x8xf32, #tpu.memory_space<vmem>>, vector<1x32x8xf32>
    %345 = vector.shape_cast %344 : vector<1x32x8xf32> to vector<32x8xf32>
    %cst_178 = arith.constant dense<0.000000e+00> : vector<8x8xf32>
    %346 = tpu.matmul %241, %345, %cst_178 {dimension_numbers = #tpu.dot_dimension_numbers<[1], [0], [0], [1], [0, 0, 1, 1], [], []>} : vector<8x32xf32>, vector<32x8xf32>, vector<8x8xf32> -> vector<8x8xf32>
    %c10_179 = arith.constant 10 : index
    %c0_180 = arith.constant 0 : index
    %c0_181 = arith.constant 0 : index
    %347 = vector.load %arg15[%c10_179, %c0_180, %c0_181] : memref<24x1x8xf32, #tpu.memory_space<vmem>>, vector<1x1x8xf32>
    %348 = vector.shape_cast %347 : vector<1x1x8xf32> to vector<1x8xf32>
    %349 = vector.broadcast %348 : vector<1x8xf32> to vector<8x8xf32>
    %350 = arith.addf %346, %349 : vector<8x8xf32>
    "tpu.trace_start"() <{level = 10 : i32, message = "qd,kd->qk"}> : () -> ()
    %cst_182 = arith.constant dense<0.000000e+00> : vector<8x8xf32>
    %351 = tpu.matmul %336, %343, %cst_182 {dimension_numbers = #tpu.dot_dimension_numbers<[1], [1], [0], [0], [0, 0, 1, 0], [], []>} : vector<8x8xf32>, vector<8x8xf32>, vector<8x8xf32> -> vector<8x8xf32>
    "tpu.trace_stop"() : () -> ()
    %cst_183 = arith.constant 0.353553385 : f32
    %352 = vector.broadcast %cst_183 : f32 to vector<8x8xf32>
    %353 = arith.mulf %351, %352 : vector<8x8xf32>
    %cst_184 = arith.constant -1.000000e+30 : f32
    %354 = vector.broadcast %cst_184 : f32 to vector<8x8xf32>
    %355 = arith.select %9, %353, %354 : vector<8x8xi1>, vector<8x8xf32>
    %cst_185 = arith.constant dense<0xFF800000> : vector<8xf32>
    %356 = vector.multi_reduction <maximumf>, %355, %cst_185 [1] : vector<8x8xf32> to vector<8xf32>
    %cst_186 = arith.constant 0xFF800000 : f32
    %357 = vector.broadcast %cst_186 : f32 to vector<8xf32>
    %358 = arith.maximumf %357, %356 : vector<8xf32>
    %359 = vector.shape_cast %358 : vector<8xf32> to vector<8x1xf32>
    %360 = vector.broadcast %359 : vector<8x1xf32> to vector<8x8xf32>
    %361 = arith.subf %355, %360 : vector<8x8xf32>
    %362 = math.exp %361 : vector<8x8xf32>
    %cst_187 = arith.constant dense<0.000000e+00> : vector<8xf32>
    %363 = vector.multi_reduction <add>, %362, %cst_187 [1] : vector<8x8xf32> to vector<8xf32>
    %364 = vector.shape_cast %363 : vector<8xf32> to vector<8x1xf32>
    %365 = vector.broadcast %364 : vector<8x1xf32> to vector<8x8xf32>
    %366 = arith.divf %362, %365 : vector<8x8xf32>
    %cst_188 = arith.constant dense<0.000000e+00> : vector<8x8xf32>
    %367 = tpu.matmul %366, %350, %cst_188 {dimension_numbers = #tpu.dot_dimension_numbers<[1], [0], [0], [1], [0, 0, 1, 1], [], []>} : vector<8x8xf32>, vector<8x8xf32>, vector<8x8xf32> -> vector<8x8xf32>
    %c2_189 = arith.constant 2 : index
    %c0_190 = arith.constant 0 : index
    %c0_191 = arith.constant 0 : index
    %368 = vector.load %arg16[%c2_189, %c0_190, %c0_191] : memref<8x8x32xf32, #tpu.memory_space<vmem>>, vector<1x8x32xf32>
    %369 = vector.shape_cast %368 : vector<1x8x32xf32> to vector<8x32xf32>
    %cst_192 = arith.constant dense<0.000000e+00> : vector<8x32xf32>
    %370 = tpu.matmul %367, %369, %cst_192 {dimension_numbers = #tpu.dot_dimension_numbers<[1], [0], [0], [1], [0, 0, 1, 1], [], []>} : vector<8x8xf32>, vector<8x32xf32>, vector<8x32xf32> -> vector<8x32xf32>
    %371 = arith.addf %329, %370 : vector<8x32xf32>
    %c3 = arith.constant 3 : index
    %c0_193 = arith.constant 0 : index
    %c0_194 = arith.constant 0 : index
    %372 = vector.load %arg14[%c3, %c0_193, %c0_194] : memref<24x32x8xf32, #tpu.memory_space<vmem>>, vector<1x32x8xf32>
    %373 = vector.shape_cast %372 : vector<1x32x8xf32> to vector<32x8xf32>
    %cst_195 = arith.constant dense<0.000000e+00> : vector<8x8xf32>
    %374 = tpu.matmul %241, %373, %cst_195 {dimension_numbers = #tpu.dot_dimension_numbers<[1], [0], [0], [1], [0, 0, 1, 1], [], []>} : vector<8x32xf32>, vector<32x8xf32>, vector<8x8xf32> -> vector<8x8xf32>
    %c3_196 = arith.constant 3 : index
    %c0_197 = arith.constant 0 : index
    %c0_198 = arith.constant 0 : index
    %375 = vector.load %arg15[%c3_196, %c0_197, %c0_198] : memref<24x1x8xf32, #tpu.memory_space<vmem>>, vector<1x1x8xf32>
    %376 = vector.shape_cast %375 : vector<1x1x8xf32> to vector<1x8xf32>
    %377 = vector.broadcast %376 : vector<1x8xf32> to vector<8x8xf32>
    %378 = arith.addf %374, %377 : vector<8x8xf32>
    %c7 = arith.constant 7 : index
    %c0_199 = arith.constant 0 : index
    %c0_200 = arith.constant 0 : index
    %379 = vector.load %arg14[%c7, %c0_199, %c0_200] : memref<24x32x8xf32, #tpu.memory_space<vmem>>, vector<1x32x8xf32>
    %380 = vector.shape_cast %379 : vector<1x32x8xf32> to vector<32x8xf32>
    %cst_201 = arith.constant dense<0.000000e+00> : vector<8x8xf32>
    %381 = tpu.matmul %241, %380, %cst_201 {dimension_numbers = #tpu.dot_dimension_numbers<[1], [0], [0], [1], [0, 0, 1, 1], [], []>} : vector<8x32xf32>, vector<32x8xf32>, vector<8x8xf32> -> vector<8x8xf32>
    %c7_202 = arith.constant 7 : index
    %c0_203 = arith.constant 0 : index
    %c0_204 = arith.constant 0 : index
    %382 = vector.load %arg15[%c7_202, %c0_203, %c0_204] : memref<24x1x8xf32, #tpu.memory_space<vmem>>, vector<1x1x8xf32>
    %383 = vector.shape_cast %382 : vector<1x1x8xf32> to vector<1x8xf32>
    %384 = vector.broadcast %383 : vector<1x8xf32> to vector<8x8xf32>
    %385 = arith.addf %381, %384 : vector<8x8xf32>
    %c11 = arith.constant 11 : index
    %c0_205 = arith.constant 0 : index
    %c0_206 = arith.constant 0 : index
    %386 = vector.load %arg14[%c11, %c0_205, %c0_206] : memref<24x32x8xf32, #tpu.memory_space<vmem>>, vector<1x32x8xf32>
    %387 = vector.shape_cast %386 : vector<1x32x8xf32> to vector<32x8xf32>
    %cst_207 = arith.constant dense<0.000000e+00> : vector<8x8xf32>
    %388 = tpu.matmul %241, %387, %cst_207 {dimension_numbers = #tpu.dot_dimension_numbers<[1], [0], [0], [1], [0, 0, 1, 1], [], []>} : vector<8x32xf32>, vector<32x8xf32>, vector<8x8xf32> -> vector<8x8xf32>
    %c11_208 = arith.constant 11 : index
    %c0_209 = arith.constant 0 : index
    %c0_210 = arith.constant 0 : index
    %389 = vector.load %arg15[%c11_208, %c0_209, %c0_210] : memref<24x1x8xf32, #tpu.memory_space<vmem>>, vector<1x1x8xf32>
    %390 = vector.shape_cast %389 : vector<1x1x8xf32> to vector<1x8xf32>
    %391 = vector.broadcast %390 : vector<1x8xf32> to vector<8x8xf32>
    %392 = arith.addf %388, %391 : vector<8x8xf32>
    "tpu.trace_start"() <{level = 10 : i32, message = "qd,kd->qk"}> : () -> ()
    %cst_211 = arith.constant dense<0.000000e+00> : vector<8x8xf32>
    %393 = tpu.matmul %378, %385, %cst_211 {dimension_numbers = #tpu.dot_dimension_numbers<[1], [1], [0], [0], [0, 0, 1, 0], [], []>} : vector<8x8xf32>, vector<8x8xf32>, vector<8x8xf32> -> vector<8x8xf32>
    "tpu.trace_stop"() : () -> ()
    %cst_212 = arith.constant 0.353553385 : f32
    %394 = vector.broadcast %cst_212 : f32 to vector<8x8xf32>
    %395 = arith.mulf %393, %394 : vector<8x8xf32>
    %cst_213 = arith.constant -1.000000e+30 : f32
    %396 = vector.broadcast %cst_213 : f32 to vector<8x8xf32>
    %397 = arith.select %9, %395, %396 : vector<8x8xi1>, vector<8x8xf32>
    %cst_214 = arith.constant dense<0xFF800000> : vector<8xf32>
    %398 = vector.multi_reduction <maximumf>, %397, %cst_214 [1] : vector<8x8xf32> to vector<8xf32>
    %cst_215 = arith.constant 0xFF800000 : f32
    %399 = vector.broadcast %cst_215 : f32 to vector<8xf32>
    %400 = arith.maximumf %399, %398 : vector<8xf32>
    %401 = vector.shape_cast %400 : vector<8xf32> to vector<8x1xf32>
    %402 = vector.broadcast %401 : vector<8x1xf32> to vector<8x8xf32>
    %403 = arith.subf %397, %402 : vector<8x8xf32>
    %404 = math.exp %403 : vector<8x8xf32>
    %cst_216 = arith.constant dense<0.000000e+00> : vector<8xf32>
    %405 = vector.multi_reduction <add>, %404, %cst_216 [1] : vector<8x8xf32> to vector<8xf32>
    %406 = vector.shape_cast %405 : vector<8xf32> to vector<8x1xf32>
    %407 = vector.broadcast %406 : vector<8x1xf32> to vector<8x8xf32>
    %408 = arith.divf %404, %407 : vector<8x8xf32>
    %cst_217 = arith.constant dense<0.000000e+00> : vector<8x8xf32>
    %409 = tpu.matmul %408, %392, %cst_217 {dimension_numbers = #tpu.dot_dimension_numbers<[1], [0], [0], [1], [0, 0, 1, 1], [], []>} : vector<8x8xf32>, vector<8x8xf32>, vector<8x8xf32> -> vector<8x8xf32>
    %c3_218 = arith.constant 3 : index
    %c0_219 = arith.constant 0 : index
    %c0_220 = arith.constant 0 : index
    %410 = vector.load %arg16[%c3_218, %c0_219, %c0_220] : memref<8x8x32xf32, #tpu.memory_space<vmem>>, vector<1x8x32xf32>
    %411 = vector.shape_cast %410 : vector<1x8x32xf32> to vector<8x32xf32>
    %cst_221 = arith.constant dense<0.000000e+00> : vector<8x32xf32>
    %412 = tpu.matmul %409, %411, %cst_221 {dimension_numbers = #tpu.dot_dimension_numbers<[1], [0], [0], [1], [0, 0, 1, 1], [], []>} : vector<8x8xf32>, vector<8x32xf32>, vector<8x32xf32> -> vector<8x32xf32>
    %413 = arith.addf %371, %412 : vector<8x32xf32>
    %414 = arith.addf %215, %413 : vector<8x32xf32>
    %c0_222 = arith.constant 0 : index
    %c0_223 = arith.constant 0 : index
    %c0_224 = arith.constant 0 : index
    %415 = vector.load %arg18[%c0_222, %c0_223, %c0_224] : memref<2x1x32xf32, #tpu.memory_space<vmem>>, vector<1x1x32xf32>
    %416 = vector.shape_cast %415 : vector<1x1x32xf32> to vector<1x32xf32>
    %c0_225 = arith.constant 0 : index
    %c0_226 = arith.constant 0 : index
    %c0_227 = arith.constant 0 : index
    %417 = vector.load %arg19[%c0_225, %c0_226, %c0_227] : memref<2x1x32xf32, #tpu.memory_space<vmem>>, vector<1x1x32xf32>
    %418 = vector.shape_cast %417 : vector<1x1x32xf32> to vector<1x32xf32>
    %cst_228 = arith.constant dense<0.000000e+00> : vector<8xf32>
    %419 = vector.multi_reduction <add>, %414, %cst_228 [1] : vector<8x32xf32> to vector<8xf32>
    %420 = vector.shape_cast %419 : vector<8xf32> to vector<8x1xf32>
    %cst_229 = arith.constant 3.200000e+01 : f32
    %421 = vector.broadcast %cst_229 : f32 to vector<8x1xf32>
    %422 = arith.divf %420, %421 : vector<8x1xf32>
    %423 = vector.broadcast %422 : vector<8x1xf32> to vector<8x32xf32>
    %424 = arith.subf %414, %423 : vector<8x32xf32>
    %425 = arith.mulf %424, %424 : vector<8x32xf32>
    %cst_230 = arith.constant dense<0.000000e+00> : vector<8xf32>
    %426 = vector.multi_reduction <add>, %425, %cst_230 [1] : vector<8x32xf32> to vector<8xf32>
    %427 = vector.shape_cast %426 : vector<8xf32> to vector<8x1xf32>
    %cst_231 = arith.constant 3.100000e+01 : f32
    %428 = vector.broadcast %cst_231 : f32 to vector<8x1xf32>
    %429 = arith.divf %427, %428 : vector<8x1xf32>
    %430 = vector.broadcast %422 : vector<8x1xf32> to vector<8x32xf32>
    %431 = arith.subf %414, %430 : vector<8x32xf32>
    %432 = vector.broadcast %416 : vector<1x32xf32> to vector<8x32xf32>
    %433 = arith.mulf %432, %431 : vector<8x32xf32>
    %434 = math.sqrt %429 : vector<8x1xf32>
    %cst_232 = arith.constant 9.99999997E-7 : f32
    %435 = vector.broadcast %cst_232 : f32 to vector<8x1xf32>
    %436 = arith.addf %434, %435 : vector<8x1xf32>
    %437 = vector.broadcast %436 : vector<8x1xf32> to vector<8x32xf32>
    %438 = arith.divf %433, %437 : vector<8x32xf32>
    %439 = vector.broadcast %418 : vector<1x32xf32> to vector<8x32xf32>
    %440 = arith.addf %438, %439 : vector<8x32xf32>
    %c0_233 = arith.constant 0 : index
    %c0_234 = arith.constant 0 : index
    %c0_235 = arith.constant 0 : index
    %441 = vector.load %arg20[%c0_233, %c0_234, %c0_235] : memref<2x32x128xf32, #tpu.memory_space<vmem>>, vector<1x32x128xf32>
    %442 = vector.shape_cast %441 : vector<1x32x128xf32> to vector<32x128xf32>
    %cst_236 = arith.constant dense<0.000000e+00> : vector<8x128xf32>
    %443 = tpu.matmul %440, %442, %cst_236 {dimension_numbers = #tpu.dot_dimension_numbers<[1], [0], [0], [1], [0, 0, 1, 1], [], []>} : vector<8x32xf32>, vector<32x128xf32>, vector<8x128xf32> -> vector<8x128xf32>
    %c0_237 = arith.constant 0 : index
    %c0_238 = arith.constant 0 : index
    %c0_239 = arith.constant 0 : index
    %444 = vector.load %arg21[%c0_237, %c0_238, %c0_239] : memref<2x1x128xf32, #tpu.memory_space<vmem>>, vector<1x1x128xf32>
    %445 = vector.shape_cast %444 : vector<1x1x128xf32> to vector<1x128xf32>
    %446 = vector.broadcast %445 : vector<1x128xf32> to vector<8x128xf32>
    %447 = arith.addf %443, %446 : vector<8x128xf32>
    %cst_240 = arith.constant 0.000000e+00 : f32
    %448 = vector.broadcast %cst_240 : f32 to vector<8x128xf32>
    %449 = arith.maximumf %447, %448 : vector<8x128xf32>
    %c0_241 = arith.constant 0 : index
    %c0_242 = arith.constant 0 : index
    %c0_243 = arith.constant 0 : index
    %450 = vector.load %arg22[%c0_241, %c0_242, %c0_243] : memref<2x128x32xf32, #tpu.memory_space<vmem>>, vector<1x128x32xf32>
    %451 = vector.shape_cast %450 : vector<1x128x32xf32> to vector<128x32xf32>
    %cst_244 = arith.constant dense<0.000000e+00> : vector<8x32xf32>
    %452 = tpu.matmul %449, %451, %cst_244 {dimension_numbers = #tpu.dot_dimension_numbers<[1], [0], [0], [1], [0, 0, 1, 1], [], []>} : vector<8x128xf32>, vector<128x32xf32>, vector<8x32xf32> -> vector<8x32xf32>
    %c0_245 = arith.constant 0 : index
    %c0_246 = arith.constant 0 : index
    %c0_247 = arith.constant 0 : index
    %453 = vector.load %arg23[%c0_245, %c0_246, %c0_247] : memref<2x1x32xf32, #tpu.memory_space<vmem>>, vector<1x1x32xf32>
    %454 = vector.shape_cast %453 : vector<1x1x32xf32> to vector<1x32xf32>
    %455 = vector.broadcast %454 : vector<1x32xf32> to vector<8x32xf32>
    %456 = arith.addf %452, %455 : vector<8x32xf32>
    %457 = arith.addf %414, %456 : vector<8x32xf32>
    %c1_248 = arith.constant 1 : index
    %c0_249 = arith.constant 0 : index
    %c0_250 = arith.constant 0 : index
    %458 = vector.load %arg4[%c1_248, %c0_249, %c0_250] : memref<2x1x32xf32, #tpu.memory_space<vmem>>, vector<1x1x32xf32>
    %459 = vector.shape_cast %458 : vector<1x1x32xf32> to vector<1x32xf32>
    %c1_251 = arith.constant 1 : index
    %c0_252 = arith.constant 0 : index
    %c0_253 = arith.constant 0 : index
    %460 = vector.load %arg5[%c1_251, %c0_252, %c0_253] : memref<2x1x32xf32, #tpu.memory_space<vmem>>, vector<1x1x32xf32>
    %461 = vector.shape_cast %460 : vector<1x1x32xf32> to vector<1x32xf32>
    %cst_254 = arith.constant dense<0.000000e+00> : vector<8xf32>
    %462 = vector.multi_reduction <add>, %457, %cst_254 [1] : vector<8x32xf32> to vector<8xf32>
    %463 = vector.shape_cast %462 : vector<8xf32> to vector<8x1xf32>
    %cst_255 = arith.constant 3.200000e+01 : f32
    %464 = vector.broadcast %cst_255 : f32 to vector<8x1xf32>
    %465 = arith.divf %463, %464 : vector<8x1xf32>
    %466 = vector.broadcast %465 : vector<8x1xf32> to vector<8x32xf32>
    %467 = arith.subf %457, %466 : vector<8x32xf32>
    %468 = arith.mulf %467, %467 : vector<8x32xf32>
    %cst_256 = arith.constant dense<0.000000e+00> : vector<8xf32>
    %469 = vector.multi_reduction <add>, %468, %cst_256 [1] : vector<8x32xf32> to vector<8xf32>
    %470 = vector.shape_cast %469 : vector<8xf32> to vector<8x1xf32>
    %cst_257 = arith.constant 3.100000e+01 : f32
    %471 = vector.broadcast %cst_257 : f32 to vector<8x1xf32>
    %472 = arith.divf %470, %471 : vector<8x1xf32>
    %473 = vector.broadcast %465 : vector<8x1xf32> to vector<8x32xf32>
    %474 = arith.subf %457, %473 : vector<8x32xf32>
    %475 = vector.broadcast %459 : vector<1x32xf32> to vector<8x32xf32>
    %476 = arith.mulf %475, %474 : vector<8x32xf32>
    %477 = math.sqrt %472 : vector<8x1xf32>
    %cst_258 = arith.constant 9.99999997E-7 : f32
    %478 = vector.broadcast %cst_258 : f32 to vector<8x1xf32>
    %479 = arith.addf %477, %478 : vector<8x1xf32>
    %480 = vector.broadcast %479 : vector<8x1xf32> to vector<8x32xf32>
    %481 = arith.divf %476, %480 : vector<8x32xf32>
    %482 = vector.broadcast %461 : vector<1x32xf32> to vector<8x32xf32>
    %483 = arith.addf %481, %482 : vector<8x32xf32>
    %c3_259 = arith.constant 3 : index
    %c0_260 = arith.constant 0 : index
    %c0_261 = arith.constant 0 : index
    %484 = vector.load %arg6[%c3_259, %c0_260, %c0_261] : memref<6x32x32xf32, #tpu.memory_space<vmem>>, vector<1x32x32xf32>
    %485 = vector.shape_cast %484 : vector<1x32x32xf32> to vector<32x32xf32>
    %c4_262 = arith.constant 4 : index
    %c0_263 = arith.constant 0 : index
    %c0_264 = arith.constant 0 : index
    %486 = vector.load %arg6[%c4_262, %c0_263, %c0_264] : memref<6x32x32xf32, #tpu.memory_space<vmem>>, vector<1x32x32xf32>
    %487 = vector.shape_cast %486 : vector<1x32x32xf32> to vector<32x32xf32>
    %c5_265 = arith.constant 5 : index
    %c0_266 = arith.constant 0 : index
    %c0_267 = arith.constant 0 : index
    %488 = vector.load %arg6[%c5_265, %c0_266, %c0_267] : memref<6x32x32xf32, #tpu.memory_space<vmem>>, vector<1x32x32xf32>
    %489 = vector.shape_cast %488 : vector<1x32x32xf32> to vector<32x32xf32>
    %c3_268 = arith.constant 3 : index
    %c0_269 = arith.constant 0 : index
    %c0_270 = arith.constant 0 : index
    %490 = vector.load %arg7[%c3_268, %c0_269, %c0_270] : memref<6x32x32xf32, #tpu.memory_space<vmem>>, vector<1x32x32xf32>
    %491 = vector.shape_cast %490 : vector<1x32x32xf32> to vector<32x32xf32>
    %c4_271 = arith.constant 4 : index
    %c0_272 = arith.constant 0 : index
    %c0_273 = arith.constant 0 : index
    %492 = vector.load %arg7[%c4_271, %c0_272, %c0_273] : memref<6x32x32xf32, #tpu.memory_space<vmem>>, vector<1x32x32xf32>
    %493 = vector.shape_cast %492 : vector<1x32x32xf32> to vector<32x32xf32>
    %c5_274 = arith.constant 5 : index
    %c0_275 = arith.constant 0 : index
    %c0_276 = arith.constant 0 : index
    %494 = vector.load %arg7[%c5_274, %c0_275, %c0_276] : memref<6x32x32xf32, #tpu.memory_space<vmem>>, vector<1x32x32xf32>
    %495 = vector.shape_cast %494 : vector<1x32x32xf32> to vector<32x32xf32>
    %c3_277 = arith.constant 3 : index
    %c0_278 = arith.constant 0 : index
    %c0_279 = arith.constant 0 : index
    %496 = vector.load %arg8[%c3_277, %c0_278, %c0_279] : memref<6x1x32xf32, #tpu.memory_space<vmem>>, vector<1x1x32xf32>
    %497 = vector.shape_cast %496 : vector<1x1x32xf32> to vector<1x32xf32>
    %c4_280 = arith.constant 4 : index
    %c0_281 = arith.constant 0 : index
    %c0_282 = arith.constant 0 : index
    %498 = vector.load %arg8[%c4_280, %c0_281, %c0_282] : memref<6x1x32xf32, #tpu.memory_space<vmem>>, vector<1x1x32xf32>
    %499 = vector.shape_cast %498 : vector<1x1x32xf32> to vector<1x32xf32>
    %c5_283 = arith.constant 5 : index
    %c0_284 = arith.constant 0 : index
    %c0_285 = arith.constant 0 : index
    %500 = vector.load %arg8[%c5_283, %c0_284, %c0_285] : memref<6x1x32xf32, #tpu.memory_space<vmem>>, vector<1x1x32xf32>
    %501 = vector.shape_cast %500 : vector<1x1x32xf32> to vector<1x32xf32>
    %c3_286 = arith.constant 3 : index
    %c0_287 = arith.constant 0 : index
    %c0_288 = arith.constant 0 : index
    %502 = vector.load %arg9[%c3_286, %c0_287, %c0_288] : memref<6x1x32xf32, #tpu.memory_space<vmem>>, vector<1x1x32xf32>
    %503 = vector.shape_cast %502 : vector<1x1x32xf32> to vector<1x32xf32>
    %c4_289 = arith.constant 4 : index
    %c0_290 = arith.constant 0 : index
    %c0_291 = arith.constant 0 : index
    %504 = vector.load %arg9[%c4_289, %c0_290, %c0_291] : memref<6x1x32xf32, #tpu.memory_space<vmem>>, vector<1x1x32xf32>
    %505 = vector.shape_cast %504 : vector<1x1x32xf32> to vector<1x32xf32>
    %c5_292 = arith.constant 5 : index
    %c0_293 = arith.constant 0 : index
    %c0_294 = arith.constant 0 : index
    %506 = vector.load %arg9[%c5_292, %c0_293, %c0_294] : memref<6x1x32xf32, #tpu.memory_space<vmem>>, vector<1x1x32xf32>
    %507 = vector.shape_cast %506 : vector<1x1x32xf32> to vector<1x32xf32>
    %cst_295 = arith.constant dense<0.000000e+00> : vector<8x32xf32>
    %508 = tpu.matmul %483, %485, %cst_295 {dimension_numbers = #tpu.dot_dimension_numbers<[1], [0], [0], [1], [0, 0, 1, 1], [], []>} : vector<8x32xf32>, vector<32x32xf32>, vector<8x32xf32> -> vector<8x32xf32>
    %509 = vector.broadcast %497 : vector<1x32xf32> to vector<8x32xf32>
    %510 = arith.addf %508, %509 : vector<8x32xf32>
    %cst_296 = arith.constant dense<0.000000e+00> : vector<8x32xf32>
    %511 = tpu.matmul %483, %487, %cst_296 {dimension_numbers = #tpu.dot_dimension_numbers<[1], [0], [0], [1], [0, 0, 1, 1], [], []>} : vector<8x32xf32>, vector<32x32xf32>, vector<8x32xf32> -> vector<8x32xf32>
    %512 = vector.broadcast %499 : vector<1x32xf32> to vector<8x32xf32>
    %513 = arith.addf %511, %512 : vector<8x32xf32>
    %cst_297 = arith.constant dense<0.000000e+00> : vector<8x32xf32>
    %514 = tpu.matmul %483, %489, %cst_297 {dimension_numbers = #tpu.dot_dimension_numbers<[1], [0], [0], [1], [0, 0, 1, 1], [], []>} : vector<8x32xf32>, vector<32x32xf32>, vector<8x32xf32> -> vector<8x32xf32>
    %515 = vector.broadcast %501 : vector<1x32xf32> to vector<8x32xf32>
    %516 = arith.addf %514, %515 : vector<8x32xf32>
    %cst_298 = arith.constant 0.000000e+00 : f32
    %517 = vector.broadcast %cst_298 : f32 to vector<8x32xf32>
    %cst_299 = arith.constant dense<0.000000e+00> : vector<8x32xf32>
    %518 = tpu.matmul %24, %510, %cst_299 {dimension_numbers = #tpu.dot_dimension_numbers<[1], [0], [0], [1], [0, 0, 1, 1], [], []>} : vector<8x8xf32>, vector<8x32xf32>, vector<8x32xf32> -> vector<8x32xf32>
    %519 = vector.broadcast %28 : vector<8x1xf32> to vector<8x32xf32>
    %520 = vector.broadcast %497 : vector<1x32xf32> to vector<8x32xf32>
    %521 = arith.mulf %519, %520 : vector<8x32xf32>
    %522 = arith.addf %518, %521 : vector<8x32xf32>
    %cst_300 = arith.constant dense<0.000000e+00> : vector<8x32xf32>
    %523 = tpu.matmul %24, %513, %cst_300 {dimension_numbers = #tpu.dot_dimension_numbers<[1], [0], [0], [1], [0, 0, 1, 1], [], []>} : vector<8x8xf32>, vector<8x32xf32>, vector<8x32xf32> -> vector<8x32xf32>
    %524 = vector.broadcast %28 : vector<8x1xf32> to vector<8x32xf32>
    %525 = vector.broadcast %499 : vector<1x32xf32> to vector<8x32xf32>
    %526 = arith.mulf %524, %525 : vector<8x32xf32>
    %527 = arith.addf %523, %526 : vector<8x32xf32>
    %cst_301 = arith.constant dense<0.000000e+00> : vector<8x32xf32>
    %528 = tpu.matmul %24, %516, %cst_301 {dimension_numbers = #tpu.dot_dimension_numbers<[1], [0], [0], [1], [0, 0, 1, 1], [], []>} : vector<8x8xf32>, vector<8x32xf32>, vector<8x32xf32> -> vector<8x32xf32>
    %529 = vector.broadcast %28 : vector<8x1xf32> to vector<8x32xf32>
    %530 = vector.broadcast %501 : vector<1x32xf32> to vector<8x32xf32>
    %531 = arith.mulf %529, %530 : vector<8x32xf32>
    %532 = arith.addf %528, %531 : vector<8x32xf32>
    %cst_302 = arith.constant dense<0.000000e+00> : vector<8x32xf32>
    %533 = tpu.matmul %517, %491, %cst_302 {dimension_numbers = #tpu.dot_dimension_numbers<[1], [0], [0], [1], [0, 0, 1, 1], [], []>} : vector<8x32xf32>, vector<32x32xf32>, vector<8x32xf32> -> vector<8x32xf32>
    %534 = vector.broadcast %503 : vector<1x32xf32> to vector<8x32xf32>
    %535 = arith.addf %533, %534 : vector<8x32xf32>
    %cst_303 = arith.constant dense<0.000000e+00> : vector<8x32xf32>
    %536 = tpu.matmul %517, %493, %cst_303 {dimension_numbers = #tpu.dot_dimension_numbers<[1], [0], [0], [1], [0, 0, 1, 1], [], []>} : vector<8x32xf32>, vector<32x32xf32>, vector<8x32xf32> -> vector<8x32xf32>
    %537 = vector.broadcast %505 : vector<1x32xf32> to vector<8x32xf32>
    %538 = arith.addf %536, %537 : vector<8x32xf32>
    %cst_304 = arith.constant dense<0.000000e+00> : vector<8x32xf32>
    %539 = tpu.matmul %517, %495, %cst_304 {dimension_numbers = #tpu.dot_dimension_numbers<[1], [0], [0], [1], [0, 0, 1, 1], [], []>} : vector<8x32xf32>, vector<32x32xf32>, vector<8x32xf32> -> vector<8x32xf32>
    %540 = vector.broadcast %507 : vector<1x32xf32> to vector<8x32xf32>
    %541 = arith.addf %539, %540 : vector<8x32xf32>
    %542 = arith.addf %522, %535 : vector<8x32xf32>
    %543 = arith.negf %542 : vector<8x32xf32>
    %544 = math.exp %543 : vector<8x32xf32>
    %cst_305 = arith.constant 1.000000e+00 : f32
    %545 = vector.broadcast %cst_305 : f32 to vector<8x32xf32>
    %546 = arith.addf %545, %544 : vector<8x32xf32>
    %547 = arith.divf %545, %546 : vector<8x32xf32>
    %548 = arith.addf %527, %538 : vector<8x32xf32>
    %549 = arith.negf %548 : vector<8x32xf32>
    %550 = math.exp %549 : vector<8x32xf32>
    %cst_306 = arith.constant 1.000000e+00 : f32
    %551 = vector.broadcast %cst_306 : f32 to vector<8x32xf32>
    %552 = arith.addf %551, %550 : vector<8x32xf32>
    %553 = arith.divf %551, %552 : vector<8x32xf32>
    %554 = arith.mulf %547, %541 : vector<8x32xf32>
    %555 = arith.addf %532, %554 : vector<8x32xf32>
    %556 = math.tanh %555 : vector<8x32xf32>
    %cst_307 = arith.constant 1.000000e+00 : f32
    %557 = vector.broadcast %cst_307 : f32 to vector<8x32xf32>
    %558 = arith.subf %557, %553 : vector<8x32xf32>
    %559 = arith.mulf %558, %556 : vector<8x32xf32>
    %560 = arith.mulf %553, %517 : vector<8x32xf32>
    %561 = arith.addf %559, %560 : vector<8x32xf32>
    %cst_308 = arith.constant dense<0.000000e+00> : vector<8x32xf32>
    %562 = tpu.matmul %15, %510, %cst_308 {dimension_numbers = #tpu.dot_dimension_numbers<[1], [0], [0], [1], [0, 0, 1, 1], [], []>} : vector<8x8xf32>, vector<8x32xf32>, vector<8x32xf32> -> vector<8x32xf32>
    %563 = vector.broadcast %19 : vector<8x1xf32> to vector<8x32xf32>
    %564 = vector.broadcast %497 : vector<1x32xf32> to vector<8x32xf32>
    %565 = arith.mulf %563, %564 : vector<8x32xf32>
    %566 = arith.addf %562, %565 : vector<8x32xf32>
    %cst_309 = arith.constant dense<0.000000e+00> : vector<8x32xf32>
    %567 = tpu.matmul %15, %513, %cst_309 {dimension_numbers = #tpu.dot_dimension_numbers<[1], [0], [0], [1], [0, 0, 1, 1], [], []>} : vector<8x8xf32>, vector<8x32xf32>, vector<8x32xf32> -> vector<8x32xf32>
    %568 = vector.broadcast %19 : vector<8x1xf32> to vector<8x32xf32>
    %569 = vector.broadcast %499 : vector<1x32xf32> to vector<8x32xf32>
    %570 = arith.mulf %568, %569 : vector<8x32xf32>
    %571 = arith.addf %567, %570 : vector<8x32xf32>
    %cst_310 = arith.constant dense<0.000000e+00> : vector<8x32xf32>
    %572 = tpu.matmul %15, %516, %cst_310 {dimension_numbers = #tpu.dot_dimension_numbers<[1], [0], [0], [1], [0, 0, 1, 1], [], []>} : vector<8x8xf32>, vector<8x32xf32>, vector<8x32xf32> -> vector<8x32xf32>
    %573 = vector.broadcast %19 : vector<8x1xf32> to vector<8x32xf32>
    %574 = vector.broadcast %501 : vector<1x32xf32> to vector<8x32xf32>
    %575 = arith.mulf %573, %574 : vector<8x32xf32>
    %576 = arith.addf %572, %575 : vector<8x32xf32>
    %cst_311 = arith.constant dense<0.000000e+00> : vector<8x32xf32>
    %577 = tpu.matmul %561, %491, %cst_311 {dimension_numbers = #tpu.dot_dimension_numbers<[1], [0], [0], [1], [0, 0, 1, 1], [], []>} : vector<8x32xf32>, vector<32x32xf32>, vector<8x32xf32> -> vector<8x32xf32>
    %578 = vector.broadcast %503 : vector<1x32xf32> to vector<8x32xf32>
    %579 = arith.addf %577, %578 : vector<8x32xf32>
    %cst_312 = arith.constant dense<0.000000e+00> : vector<8x32xf32>
    %580 = tpu.matmul %561, %493, %cst_312 {dimension_numbers = #tpu.dot_dimension_numbers<[1], [0], [0], [1], [0, 0, 1, 1], [], []>} : vector<8x32xf32>, vector<32x32xf32>, vector<8x32xf32> -> vector<8x32xf32>
    %581 = vector.broadcast %505 : vector<1x32xf32> to vector<8x32xf32>
    %582 = arith.addf %580, %581 : vector<8x32xf32>
    %cst_313 = arith.constant dense<0.000000e+00> : vector<8x32xf32>
    %583 = tpu.matmul %561, %495, %cst_313 {dimension_numbers = #tpu.dot_dimension_numbers<[1], [0], [0], [1], [0, 0, 1, 1], [], []>} : vector<8x32xf32>, vector<32x32xf32>, vector<8x32xf32> -> vector<8x32xf32>
    %584 = vector.broadcast %507 : vector<1x32xf32> to vector<8x32xf32>
    %585 = arith.addf %583, %584 : vector<8x32xf32>
    %586 = arith.addf %566, %579 : vector<8x32xf32>
    %587 = arith.negf %586 : vector<8x32xf32>
    %588 = math.exp %587 : vector<8x32xf32>
    %cst_314 = arith.constant 1.000000e+00 : f32
    %589 = vector.broadcast %cst_314 : f32 to vector<8x32xf32>
    %590 = arith.addf %589, %588 : vector<8x32xf32>
    %591 = arith.divf %589, %590 : vector<8x32xf32>
    %592 = arith.addf %571, %582 : vector<8x32xf32>
    %593 = arith.negf %592 : vector<8x32xf32>
    %594 = math.exp %593 : vector<8x32xf32>
    %cst_315 = arith.constant 1.000000e+00 : f32
    %595 = vector.broadcast %cst_315 : f32 to vector<8x32xf32>
    %596 = arith.addf %595, %594 : vector<8x32xf32>
    %597 = arith.divf %595, %596 : vector<8x32xf32>
    %598 = arith.mulf %591, %585 : vector<8x32xf32>
    %599 = arith.addf %576, %598 : vector<8x32xf32>
    %600 = math.tanh %599 : vector<8x32xf32>
    %cst_316 = arith.constant 1.000000e+00 : f32
    %601 = vector.broadcast %cst_316 : f32 to vector<8x32xf32>
    %602 = arith.subf %601, %597 : vector<8x32xf32>
    %603 = arith.mulf %602, %600 : vector<8x32xf32>
    %604 = arith.mulf %597, %561 : vector<8x32xf32>
    %605 = arith.addf %603, %604 : vector<8x32xf32>
    %cst_317 = arith.constant dense<0.000000e+00> : vector<8x32xf32>
    %606 = tpu.matmul %605, %491, %cst_317 {dimension_numbers = #tpu.dot_dimension_numbers<[1], [0], [0], [1], [0, 0, 1, 1], [], []>} : vector<8x32xf32>, vector<32x32xf32>, vector<8x32xf32> -> vector<8x32xf32>
    %607 = vector.broadcast %503 : vector<1x32xf32> to vector<8x32xf32>
    %608 = arith.addf %606, %607 : vector<8x32xf32>
    %cst_318 = arith.constant dense<0.000000e+00> : vector<8x32xf32>
    %609 = tpu.matmul %605, %493, %cst_318 {dimension_numbers = #tpu.dot_dimension_numbers<[1], [0], [0], [1], [0, 0, 1, 1], [], []>} : vector<8x32xf32>, vector<32x32xf32>, vector<8x32xf32> -> vector<8x32xf32>
    %610 = vector.broadcast %505 : vector<1x32xf32> to vector<8x32xf32>
    %611 = arith.addf %609, %610 : vector<8x32xf32>
    %cst_319 = arith.constant dense<0.000000e+00> : vector<8x32xf32>
    %612 = tpu.matmul %605, %495, %cst_319 {dimension_numbers = #tpu.dot_dimension_numbers<[1], [0], [0], [1], [0, 0, 1, 1], [], []>} : vector<8x32xf32>, vector<32x32xf32>, vector<8x32xf32> -> vector<8x32xf32>
    %613 = vector.broadcast %507 : vector<1x32xf32> to vector<8x32xf32>
    %614 = arith.addf %612, %613 : vector<8x32xf32>
    %615 = arith.addf %510, %608 : vector<8x32xf32>
    %616 = arith.negf %615 : vector<8x32xf32>
    %617 = math.exp %616 : vector<8x32xf32>
    %cst_320 = arith.constant 1.000000e+00 : f32
    %618 = vector.broadcast %cst_320 : f32 to vector<8x32xf32>
    %619 = arith.addf %618, %617 : vector<8x32xf32>
    %620 = arith.divf %618, %619 : vector<8x32xf32>
    %621 = arith.addf %513, %611 : vector<8x32xf32>
    %622 = arith.negf %621 : vector<8x32xf32>
    %623 = math.exp %622 : vector<8x32xf32>
    %cst_321 = arith.constant 1.000000e+00 : f32
    %624 = vector.broadcast %cst_321 : f32 to vector<8x32xf32>
    %625 = arith.addf %624, %623 : vector<8x32xf32>
    %626 = arith.divf %624, %625 : vector<8x32xf32>
    %627 = arith.mulf %620, %614 : vector<8x32xf32>
    %628 = arith.addf %516, %627 : vector<8x32xf32>
    %629 = math.tanh %628 : vector<8x32xf32>
    %cst_322 = arith.constant 1.000000e+00 : f32
    %630 = vector.broadcast %cst_322 : f32 to vector<8x32xf32>
    %631 = arith.subf %630, %626 : vector<8x32xf32>
    %632 = arith.mulf %631, %629 : vector<8x32xf32>
    %633 = arith.mulf %626, %605 : vector<8x32xf32>
    %634 = arith.addf %632, %633 : vector<8x32xf32>
    %c1_323 = arith.constant 1 : index
    %c0_324 = arith.constant 0 : index
    %c0_325 = arith.constant 0 : index
    %635 = vector.load %arg10[%c1_323, %c0_324, %c0_325] : memref<2x32x32xf32, #tpu.memory_space<vmem>>, vector<1x32x32xf32>
    %636 = vector.shape_cast %635 : vector<1x32x32xf32> to vector<32x32xf32>
    %cst_326 = arith.constant dense<0.000000e+00> : vector<8x32xf32>
    %637 = tpu.matmul %634, %636, %cst_326 {dimension_numbers = #tpu.dot_dimension_numbers<[1], [0], [0], [1], [0, 0, 1, 1], [], []>} : vector<8x32xf32>, vector<32x32xf32>, vector<8x32xf32> -> vector<8x32xf32>
    %c1_327 = arith.constant 1 : index
    %c0_328 = arith.constant 0 : index
    %c0_329 = arith.constant 0 : index
    %638 = vector.load %arg11[%c1_327, %c0_328, %c0_329] : memref<2x1x32xf32, #tpu.memory_space<vmem>>, vector<1x1x32xf32>
    %639 = vector.shape_cast %638 : vector<1x1x32xf32> to vector<1x32xf32>
    %640 = vector.broadcast %639 : vector<1x32xf32> to vector<8x32xf32>
    %641 = arith.addf %637, %640 : vector<8x32xf32>
    %cst_330 = arith.constant 0.000000e+00 : f32
    %642 = vector.broadcast %cst_330 : f32 to vector<8x32xf32>
    %643 = arith.maximumf %641, %642 : vector<8x32xf32>
    %644 = arith.addf %457, %643 : vector<8x32xf32>
    %c1_331 = arith.constant 1 : index
    %c0_332 = arith.constant 0 : index
    %c0_333 = arith.constant 0 : index
    %645 = vector.load %arg12[%c1_331, %c0_332, %c0_333] : memref<2x1x32xf32, #tpu.memory_space<vmem>>, vector<1x1x32xf32>
    %646 = vector.shape_cast %645 : vector<1x1x32xf32> to vector<1x32xf32>
    %c1_334 = arith.constant 1 : index
    %c0_335 = arith.constant 0 : index
    %c0_336 = arith.constant 0 : index
    %647 = vector.load %arg13[%c1_334, %c0_335, %c0_336] : memref<2x1x32xf32, #tpu.memory_space<vmem>>, vector<1x1x32xf32>
    %648 = vector.shape_cast %647 : vector<1x1x32xf32> to vector<1x32xf32>
    %cst_337 = arith.constant dense<0.000000e+00> : vector<8xf32>
    %649 = vector.multi_reduction <add>, %644, %cst_337 [1] : vector<8x32xf32> to vector<8xf32>
    %650 = vector.shape_cast %649 : vector<8xf32> to vector<8x1xf32>
    %cst_338 = arith.constant 3.200000e+01 : f32
    %651 = vector.broadcast %cst_338 : f32 to vector<8x1xf32>
    %652 = arith.divf %650, %651 : vector<8x1xf32>
    %653 = vector.broadcast %652 : vector<8x1xf32> to vector<8x32xf32>
    %654 = arith.subf %644, %653 : vector<8x32xf32>
    %655 = arith.mulf %654, %654 : vector<8x32xf32>
    %cst_339 = arith.constant dense<0.000000e+00> : vector<8xf32>
    %656 = vector.multi_reduction <add>, %655, %cst_339 [1] : vector<8x32xf32> to vector<8xf32>
    %657 = vector.shape_cast %656 : vector<8xf32> to vector<8x1xf32>
    %cst_340 = arith.constant 3.100000e+01 : f32
    %658 = vector.broadcast %cst_340 : f32 to vector<8x1xf32>
    %659 = arith.divf %657, %658 : vector<8x1xf32>
    %660 = vector.broadcast %652 : vector<8x1xf32> to vector<8x32xf32>
    %661 = arith.subf %644, %660 : vector<8x32xf32>
    %662 = vector.broadcast %646 : vector<1x32xf32> to vector<8x32xf32>
    %663 = arith.mulf %662, %661 : vector<8x32xf32>
    %664 = math.sqrt %659 : vector<8x1xf32>
    %cst_341 = arith.constant 9.99999997E-7 : f32
    %665 = vector.broadcast %cst_341 : f32 to vector<8x1xf32>
    %666 = arith.addf %664, %665 : vector<8x1xf32>
    %667 = vector.broadcast %666 : vector<8x1xf32> to vector<8x32xf32>
    %668 = arith.divf %663, %667 : vector<8x32xf32>
    %669 = vector.broadcast %648 : vector<1x32xf32> to vector<8x32xf32>
    %670 = arith.addf %668, %669 : vector<8x32xf32>
    %c1_342 = arith.constant 1 : index
    %c0_343 = arith.constant 0 : index
    %c0_344 = arith.constant 0 : index
    %671 = vector.load %arg17[%c1_342, %c0_343, %c0_344] : memref<2x1x32xf32, #tpu.memory_space<vmem>>, vector<1x1x32xf32>
    %672 = vector.shape_cast %671 : vector<1x1x32xf32> to vector<1x32xf32>
    %673 = vector.shape_cast %672 : vector<1x32xf32> to vector<1x32xf32>
    %674 = vector.broadcast %673 : vector<1x32xf32> to vector<8x32xf32>
    %c12 = arith.constant 12 : index
    %c0_345 = arith.constant 0 : index
    %c0_346 = arith.constant 0 : index
    %675 = vector.load %arg14[%c12, %c0_345, %c0_346] : memref<24x32x8xf32, #tpu.memory_space<vmem>>, vector<1x32x8xf32>
    %676 = vector.shape_cast %675 : vector<1x32x8xf32> to vector<32x8xf32>
    %cst_347 = arith.constant dense<0.000000e+00> : vector<8x8xf32>
    %677 = tpu.matmul %670, %676, %cst_347 {dimension_numbers = #tpu.dot_dimension_numbers<[1], [0], [0], [1], [0, 0, 1, 1], [], []>} : vector<8x32xf32>, vector<32x8xf32>, vector<8x8xf32> -> vector<8x8xf32>
    %c12_348 = arith.constant 12 : index
    %c0_349 = arith.constant 0 : index
    %c0_350 = arith.constant 0 : index
    %678 = vector.load %arg15[%c12_348, %c0_349, %c0_350] : memref<24x1x8xf32, #tpu.memory_space<vmem>>, vector<1x1x8xf32>
    %679 = vector.shape_cast %678 : vector<1x1x8xf32> to vector<1x8xf32>
    %680 = vector.broadcast %679 : vector<1x8xf32> to vector<8x8xf32>
    %681 = arith.addf %677, %680 : vector<8x8xf32>
    %c16 = arith.constant 16 : index
    %c0_351 = arith.constant 0 : index
    %c0_352 = arith.constant 0 : index
    %682 = vector.load %arg14[%c16, %c0_351, %c0_352] : memref<24x32x8xf32, #tpu.memory_space<vmem>>, vector<1x32x8xf32>
    %683 = vector.shape_cast %682 : vector<1x32x8xf32> to vector<32x8xf32>
    %cst_353 = arith.constant dense<0.000000e+00> : vector<8x8xf32>
    %684 = tpu.matmul %670, %683, %cst_353 {dimension_numbers = #tpu.dot_dimension_numbers<[1], [0], [0], [1], [0, 0, 1, 1], [], []>} : vector<8x32xf32>, vector<32x8xf32>, vector<8x8xf32> -> vector<8x8xf32>
    %c16_354 = arith.constant 16 : index
    %c0_355 = arith.constant 0 : index
    %c0_356 = arith.constant 0 : index
    %685 = vector.load %arg15[%c16_354, %c0_355, %c0_356] : memref<24x1x8xf32, #tpu.memory_space<vmem>>, vector<1x1x8xf32>
    %686 = vector.shape_cast %685 : vector<1x1x8xf32> to vector<1x8xf32>
    %687 = vector.broadcast %686 : vector<1x8xf32> to vector<8x8xf32>
    %688 = arith.addf %684, %687 : vector<8x8xf32>
    %c20 = arith.constant 20 : index
    %c0_357 = arith.constant 0 : index
    %c0_358 = arith.constant 0 : index
    %689 = vector.load %arg14[%c20, %c0_357, %c0_358] : memref<24x32x8xf32, #tpu.memory_space<vmem>>, vector<1x32x8xf32>
    %690 = vector.shape_cast %689 : vector<1x32x8xf32> to vector<32x8xf32>
    %cst_359 = arith.constant dense<0.000000e+00> : vector<8x8xf32>
    %691 = tpu.matmul %670, %690, %cst_359 {dimension_numbers = #tpu.dot_dimension_numbers<[1], [0], [0], [1], [0, 0, 1, 1], [], []>} : vector<8x32xf32>, vector<32x8xf32>, vector<8x8xf32> -> vector<8x8xf32>
    %c20_360 = arith.constant 20 : index
    %c0_361 = arith.constant 0 : index
    %c0_362 = arith.constant 0 : index
    %692 = vector.load %arg15[%c20_360, %c0_361, %c0_362] : memref<24x1x8xf32, #tpu.memory_space<vmem>>, vector<1x1x8xf32>
    %693 = vector.shape_cast %692 : vector<1x1x8xf32> to vector<1x8xf32>
    %694 = vector.broadcast %693 : vector<1x8xf32> to vector<8x8xf32>
    %695 = arith.addf %691, %694 : vector<8x8xf32>
    "tpu.trace_start"() <{level = 10 : i32, message = "qd,kd->qk"}> : () -> ()
    %cst_363 = arith.constant dense<0.000000e+00> : vector<8x8xf32>
    %696 = tpu.matmul %681, %688, %cst_363 {dimension_numbers = #tpu.dot_dimension_numbers<[1], [1], [0], [0], [0, 0, 1, 0], [], []>} : vector<8x8xf32>, vector<8x8xf32>, vector<8x8xf32> -> vector<8x8xf32>
    "tpu.trace_stop"() : () -> ()
    %cst_364 = arith.constant 0.353553385 : f32
    %697 = vector.broadcast %cst_364 : f32 to vector<8x8xf32>
    %698 = arith.mulf %696, %697 : vector<8x8xf32>
    %cst_365 = arith.constant -1.000000e+30 : f32
    %699 = vector.broadcast %cst_365 : f32 to vector<8x8xf32>
    %700 = arith.select %9, %698, %699 : vector<8x8xi1>, vector<8x8xf32>
    %cst_366 = arith.constant dense<0xFF800000> : vector<8xf32>
    %701 = vector.multi_reduction <maximumf>, %700, %cst_366 [1] : vector<8x8xf32> to vector<8xf32>
    %cst_367 = arith.constant 0xFF800000 : f32
    %702 = vector.broadcast %cst_367 : f32 to vector<8xf32>
    %703 = arith.maximumf %702, %701 : vector<8xf32>
    %704 = vector.shape_cast %703 : vector<8xf32> to vector<8x1xf32>
    %705 = vector.broadcast %704 : vector<8x1xf32> to vector<8x8xf32>
    %706 = arith.subf %700, %705 : vector<8x8xf32>
    %707 = math.exp %706 : vector<8x8xf32>
    %cst_368 = arith.constant dense<0.000000e+00> : vector<8xf32>
    %708 = vector.multi_reduction <add>, %707, %cst_368 [1] : vector<8x8xf32> to vector<8xf32>
    %709 = vector.shape_cast %708 : vector<8xf32> to vector<8x1xf32>
    %710 = vector.broadcast %709 : vector<8x1xf32> to vector<8x8xf32>
    %711 = arith.divf %707, %710 : vector<8x8xf32>
    %cst_369 = arith.constant dense<0.000000e+00> : vector<8x8xf32>
    %712 = tpu.matmul %711, %695, %cst_369 {dimension_numbers = #tpu.dot_dimension_numbers<[1], [0], [0], [1], [0, 0, 1, 1], [], []>} : vector<8x8xf32>, vector<8x8xf32>, vector<8x8xf32> -> vector<8x8xf32>
    %c4_370 = arith.constant 4 : index
    %c0_371 = arith.constant 0 : index
    %c0_372 = arith.constant 0 : index
    %713 = vector.load %arg16[%c4_370, %c0_371, %c0_372] : memref<8x8x32xf32, #tpu.memory_space<vmem>>, vector<1x8x32xf32>
    %714 = vector.shape_cast %713 : vector<1x8x32xf32> to vector<8x32xf32>
    %cst_373 = arith.constant dense<0.000000e+00> : vector<8x32xf32>
    %715 = tpu.matmul %712, %714, %cst_373 {dimension_numbers = #tpu.dot_dimension_numbers<[1], [0], [0], [1], [0, 0, 1, 1], [], []>} : vector<8x8xf32>, vector<8x32xf32>, vector<8x32xf32> -> vector<8x32xf32>
    %716 = arith.addf %674, %715 : vector<8x32xf32>
    %c13 = arith.constant 13 : index
    %c0_374 = arith.constant 0 : index
    %c0_375 = arith.constant 0 : index
    %717 = vector.load %arg14[%c13, %c0_374, %c0_375] : memref<24x32x8xf32, #tpu.memory_space<vmem>>, vector<1x32x8xf32>
    %718 = vector.shape_cast %717 : vector<1x32x8xf32> to vector<32x8xf32>
    %cst_376 = arith.constant dense<0.000000e+00> : vector<8x8xf32>
    %719 = tpu.matmul %670, %718, %cst_376 {dimension_numbers = #tpu.dot_dimension_numbers<[1], [0], [0], [1], [0, 0, 1, 1], [], []>} : vector<8x32xf32>, vector<32x8xf32>, vector<8x8xf32> -> vector<8x8xf32>
    %c13_377 = arith.constant 13 : index
    %c0_378 = arith.constant 0 : index
    %c0_379 = arith.constant 0 : index
    %720 = vector.load %arg15[%c13_377, %c0_378, %c0_379] : memref<24x1x8xf32, #tpu.memory_space<vmem>>, vector<1x1x8xf32>
    %721 = vector.shape_cast %720 : vector<1x1x8xf32> to vector<1x8xf32>
    %722 = vector.broadcast %721 : vector<1x8xf32> to vector<8x8xf32>
    %723 = arith.addf %719, %722 : vector<8x8xf32>
    %c17 = arith.constant 17 : index
    %c0_380 = arith.constant 0 : index
    %c0_381 = arith.constant 0 : index
    %724 = vector.load %arg14[%c17, %c0_380, %c0_381] : memref<24x32x8xf32, #tpu.memory_space<vmem>>, vector<1x32x8xf32>
    %725 = vector.shape_cast %724 : vector<1x32x8xf32> to vector<32x8xf32>
    %cst_382 = arith.constant dense<0.000000e+00> : vector<8x8xf32>
    %726 = tpu.matmul %670, %725, %cst_382 {dimension_numbers = #tpu.dot_dimension_numbers<[1], [0], [0], [1], [0, 0, 1, 1], [], []>} : vector<8x32xf32>, vector<32x8xf32>, vector<8x8xf32> -> vector<8x8xf32>
    %c17_383 = arith.constant 17 : index
    %c0_384 = arith.constant 0 : index
    %c0_385 = arith.constant 0 : index
    %727 = vector.load %arg15[%c17_383, %c0_384, %c0_385] : memref<24x1x8xf32, #tpu.memory_space<vmem>>, vector<1x1x8xf32>
    %728 = vector.shape_cast %727 : vector<1x1x8xf32> to vector<1x8xf32>
    %729 = vector.broadcast %728 : vector<1x8xf32> to vector<8x8xf32>
    %730 = arith.addf %726, %729 : vector<8x8xf32>
    %c21 = arith.constant 21 : index
    %c0_386 = arith.constant 0 : index
    %c0_387 = arith.constant 0 : index
    %731 = vector.load %arg14[%c21, %c0_386, %c0_387] : memref<24x32x8xf32, #tpu.memory_space<vmem>>, vector<1x32x8xf32>
    %732 = vector.shape_cast %731 : vector<1x32x8xf32> to vector<32x8xf32>
    %cst_388 = arith.constant dense<0.000000e+00> : vector<8x8xf32>
    %733 = tpu.matmul %670, %732, %cst_388 {dimension_numbers = #tpu.dot_dimension_numbers<[1], [0], [0], [1], [0, 0, 1, 1], [], []>} : vector<8x32xf32>, vector<32x8xf32>, vector<8x8xf32> -> vector<8x8xf32>
    %c21_389 = arith.constant 21 : index
    %c0_390 = arith.constant 0 : index
    %c0_391 = arith.constant 0 : index
    %734 = vector.load %arg15[%c21_389, %c0_390, %c0_391] : memref<24x1x8xf32, #tpu.memory_space<vmem>>, vector<1x1x8xf32>
    %735 = vector.shape_cast %734 : vector<1x1x8xf32> to vector<1x8xf32>
    %736 = vector.broadcast %735 : vector<1x8xf32> to vector<8x8xf32>
    %737 = arith.addf %733, %736 : vector<8x8xf32>
    "tpu.trace_start"() <{level = 10 : i32, message = "qd,kd->qk"}> : () -> ()
    %cst_392 = arith.constant dense<0.000000e+00> : vector<8x8xf32>
    %738 = tpu.matmul %723, %730, %cst_392 {dimension_numbers = #tpu.dot_dimension_numbers<[1], [1], [0], [0], [0, 0, 1, 0], [], []>} : vector<8x8xf32>, vector<8x8xf32>, vector<8x8xf32> -> vector<8x8xf32>
    "tpu.trace_stop"() : () -> ()
    %cst_393 = arith.constant 0.353553385 : f32
    %739 = vector.broadcast %cst_393 : f32 to vector<8x8xf32>
    %740 = arith.mulf %738, %739 : vector<8x8xf32>
    %cst_394 = arith.constant -1.000000e+30 : f32
    %741 = vector.broadcast %cst_394 : f32 to vector<8x8xf32>
    %742 = arith.select %9, %740, %741 : vector<8x8xi1>, vector<8x8xf32>
    %cst_395 = arith.constant dense<0xFF800000> : vector<8xf32>
    %743 = vector.multi_reduction <maximumf>, %742, %cst_395 [1] : vector<8x8xf32> to vector<8xf32>
    %cst_396 = arith.constant 0xFF800000 : f32
    %744 = vector.broadcast %cst_396 : f32 to vector<8xf32>
    %745 = arith.maximumf %744, %743 : vector<8xf32>
    %746 = vector.shape_cast %745 : vector<8xf32> to vector<8x1xf32>
    %747 = vector.broadcast %746 : vector<8x1xf32> to vector<8x8xf32>
    %748 = arith.subf %742, %747 : vector<8x8xf32>
    %749 = math.exp %748 : vector<8x8xf32>
    %cst_397 = arith.constant dense<0.000000e+00> : vector<8xf32>
    %750 = vector.multi_reduction <add>, %749, %cst_397 [1] : vector<8x8xf32> to vector<8xf32>
    %751 = vector.shape_cast %750 : vector<8xf32> to vector<8x1xf32>
    %752 = vector.broadcast %751 : vector<8x1xf32> to vector<8x8xf32>
    %753 = arith.divf %749, %752 : vector<8x8xf32>
    %cst_398 = arith.constant dense<0.000000e+00> : vector<8x8xf32>
    %754 = tpu.matmul %753, %737, %cst_398 {dimension_numbers = #tpu.dot_dimension_numbers<[1], [0], [0], [1], [0, 0, 1, 1], [], []>} : vector<8x8xf32>, vector<8x8xf32>, vector<8x8xf32> -> vector<8x8xf32>
    %c5_399 = arith.constant 5 : index
    %c0_400 = arith.constant 0 : index
    %c0_401 = arith.constant 0 : index
    %755 = vector.load %arg16[%c5_399, %c0_400, %c0_401] : memref<8x8x32xf32, #tpu.memory_space<vmem>>, vector<1x8x32xf32>
    %756 = vector.shape_cast %755 : vector<1x8x32xf32> to vector<8x32xf32>
    %cst_402 = arith.constant dense<0.000000e+00> : vector<8x32xf32>
    %757 = tpu.matmul %754, %756, %cst_402 {dimension_numbers = #tpu.dot_dimension_numbers<[1], [0], [0], [1], [0, 0, 1, 1], [], []>} : vector<8x8xf32>, vector<8x32xf32>, vector<8x32xf32> -> vector<8x32xf32>
    %758 = arith.addf %716, %757 : vector<8x32xf32>
    %c14 = arith.constant 14 : index
    %c0_403 = arith.constant 0 : index
    %c0_404 = arith.constant 0 : index
    %759 = vector.load %arg14[%c14, %c0_403, %c0_404] : memref<24x32x8xf32, #tpu.memory_space<vmem>>, vector<1x32x8xf32>
    %760 = vector.shape_cast %759 : vector<1x32x8xf32> to vector<32x8xf32>
    %cst_405 = arith.constant dense<0.000000e+00> : vector<8x8xf32>
    %761 = tpu.matmul %670, %760, %cst_405 {dimension_numbers = #tpu.dot_dimension_numbers<[1], [0], [0], [1], [0, 0, 1, 1], [], []>} : vector<8x32xf32>, vector<32x8xf32>, vector<8x8xf32> -> vector<8x8xf32>
    %c14_406 = arith.constant 14 : index
    %c0_407 = arith.constant 0 : index
    %c0_408 = arith.constant 0 : index
    %762 = vector.load %arg15[%c14_406, %c0_407, %c0_408] : memref<24x1x8xf32, #tpu.memory_space<vmem>>, vector<1x1x8xf32>
    %763 = vector.shape_cast %762 : vector<1x1x8xf32> to vector<1x8xf32>
    %764 = vector.broadcast %763 : vector<1x8xf32> to vector<8x8xf32>
    %765 = arith.addf %761, %764 : vector<8x8xf32>
    %c18 = arith.constant 18 : index
    %c0_409 = arith.constant 0 : index
    %c0_410 = arith.constant 0 : index
    %766 = vector.load %arg14[%c18, %c0_409, %c0_410] : memref<24x32x8xf32, #tpu.memory_space<vmem>>, vector<1x32x8xf32>
    %767 = vector.shape_cast %766 : vector<1x32x8xf32> to vector<32x8xf32>
    %cst_411 = arith.constant dense<0.000000e+00> : vector<8x8xf32>
    %768 = tpu.matmul %670, %767, %cst_411 {dimension_numbers = #tpu.dot_dimension_numbers<[1], [0], [0], [1], [0, 0, 1, 1], [], []>} : vector<8x32xf32>, vector<32x8xf32>, vector<8x8xf32> -> vector<8x8xf32>
    %c18_412 = arith.constant 18 : index
    %c0_413 = arith.constant 0 : index
    %c0_414 = arith.constant 0 : index
    %769 = vector.load %arg15[%c18_412, %c0_413, %c0_414] : memref<24x1x8xf32, #tpu.memory_space<vmem>>, vector<1x1x8xf32>
    %770 = vector.shape_cast %769 : vector<1x1x8xf32> to vector<1x8xf32>
    %771 = vector.broadcast %770 : vector<1x8xf32> to vector<8x8xf32>
    %772 = arith.addf %768, %771 : vector<8x8xf32>
    %c22 = arith.constant 22 : index
    %c0_415 = arith.constant 0 : index
    %c0_416 = arith.constant 0 : index
    %773 = vector.load %arg14[%c22, %c0_415, %c0_416] : memref<24x32x8xf32, #tpu.memory_space<vmem>>, vector<1x32x8xf32>
    %774 = vector.shape_cast %773 : vector<1x32x8xf32> to vector<32x8xf32>
    %cst_417 = arith.constant dense<0.000000e+00> : vector<8x8xf32>
    %775 = tpu.matmul %670, %774, %cst_417 {dimension_numbers = #tpu.dot_dimension_numbers<[1], [0], [0], [1], [0, 0, 1, 1], [], []>} : vector<8x32xf32>, vector<32x8xf32>, vector<8x8xf32> -> vector<8x8xf32>
    %c22_418 = arith.constant 22 : index
    %c0_419 = arith.constant 0 : index
    %c0_420 = arith.constant 0 : index
    %776 = vector.load %arg15[%c22_418, %c0_419, %c0_420] : memref<24x1x8xf32, #tpu.memory_space<vmem>>, vector<1x1x8xf32>
    %777 = vector.shape_cast %776 : vector<1x1x8xf32> to vector<1x8xf32>
    %778 = vector.broadcast %777 : vector<1x8xf32> to vector<8x8xf32>
    %779 = arith.addf %775, %778 : vector<8x8xf32>
    "tpu.trace_start"() <{level = 10 : i32, message = "qd,kd->qk"}> : () -> ()
    %cst_421 = arith.constant dense<0.000000e+00> : vector<8x8xf32>
    %780 = tpu.matmul %765, %772, %cst_421 {dimension_numbers = #tpu.dot_dimension_numbers<[1], [1], [0], [0], [0, 0, 1, 0], [], []>} : vector<8x8xf32>, vector<8x8xf32>, vector<8x8xf32> -> vector<8x8xf32>
    "tpu.trace_stop"() : () -> ()
    %cst_422 = arith.constant 0.353553385 : f32
    %781 = vector.broadcast %cst_422 : f32 to vector<8x8xf32>
    %782 = arith.mulf %780, %781 : vector<8x8xf32>
    %cst_423 = arith.constant -1.000000e+30 : f32
    %783 = vector.broadcast %cst_423 : f32 to vector<8x8xf32>
    %784 = arith.select %9, %782, %783 : vector<8x8xi1>, vector<8x8xf32>
    %cst_424 = arith.constant dense<0xFF800000> : vector<8xf32>
    %785 = vector.multi_reduction <maximumf>, %784, %cst_424 [1] : vector<8x8xf32> to vector<8xf32>
    %cst_425 = arith.constant 0xFF800000 : f32
    %786 = vector.broadcast %cst_425 : f32 to vector<8xf32>
    %787 = arith.maximumf %786, %785 : vector<8xf32>
    %788 = vector.shape_cast %787 : vector<8xf32> to vector<8x1xf32>
    %789 = vector.broadcast %788 : vector<8x1xf32> to vector<8x8xf32>
    %790 = arith.subf %784, %789 : vector<8x8xf32>
    %791 = math.exp %790 : vector<8x8xf32>
    %cst_426 = arith.constant dense<0.000000e+00> : vector<8xf32>
    %792 = vector.multi_reduction <add>, %791, %cst_426 [1] : vector<8x8xf32> to vector<8xf32>
    %793 = vector.shape_cast %792 : vector<8xf32> to vector<8x1xf32>
    %794 = vector.broadcast %793 : vector<8x1xf32> to vector<8x8xf32>
    %795 = arith.divf %791, %794 : vector<8x8xf32>
    %cst_427 = arith.constant dense<0.000000e+00> : vector<8x8xf32>
    %796 = tpu.matmul %795, %779, %cst_427 {dimension_numbers = #tpu.dot_dimension_numbers<[1], [0], [0], [1], [0, 0, 1, 1], [], []>} : vector<8x8xf32>, vector<8x8xf32>, vector<8x8xf32> -> vector<8x8xf32>
    %c6_428 = arith.constant 6 : index
    %c0_429 = arith.constant 0 : index
    %c0_430 = arith.constant 0 : index
    %797 = vector.load %arg16[%c6_428, %c0_429, %c0_430] : memref<8x8x32xf32, #tpu.memory_space<vmem>>, vector<1x8x32xf32>
    %798 = vector.shape_cast %797 : vector<1x8x32xf32> to vector<8x32xf32>
    %cst_431 = arith.constant dense<0.000000e+00> : vector<8x32xf32>
    %799 = tpu.matmul %796, %798, %cst_431 {dimension_numbers = #tpu.dot_dimension_numbers<[1], [0], [0], [1], [0, 0, 1, 1], [], []>} : vector<8x8xf32>, vector<8x32xf32>, vector<8x32xf32> -> vector<8x32xf32>
    %800 = arith.addf %758, %799 : vector<8x32xf32>
    %c15 = arith.constant 15 : index
    %c0_432 = arith.constant 0 : index
    %c0_433 = arith.constant 0 : index
    %801 = vector.load %arg14[%c15, %c0_432, %c0_433] : memref<24x32x8xf32, #tpu.memory_space<vmem>>, vector<1x32x8xf32>
    %802 = vector.shape_cast %801 : vector<1x32x8xf32> to vector<32x8xf32>
    %cst_434 = arith.constant dense<0.000000e+00> : vector<8x8xf32>
    %803 = tpu.matmul %670, %802, %cst_434 {dimension_numbers = #tpu.dot_dimension_numbers<[1], [0], [0], [1], [0, 0, 1, 1], [], []>} : vector<8x32xf32>, vector<32x8xf32>, vector<8x8xf32> -> vector<8x8xf32>
    %c15_435 = arith.constant 15 : index
    %c0_436 = arith.constant 0 : index
    %c0_437 = arith.constant 0 : index
    %804 = vector.load %arg15[%c15_435, %c0_436, %c0_437] : memref<24x1x8xf32, #tpu.memory_space<vmem>>, vector<1x1x8xf32>
    %805 = vector.shape_cast %804 : vector<1x1x8xf32> to vector<1x8xf32>
    %806 = vector.broadcast %805 : vector<1x8xf32> to vector<8x8xf32>
    %807 = arith.addf %803, %806 : vector<8x8xf32>
    %c19 = arith.constant 19 : index
    %c0_438 = arith.constant 0 : index
    %c0_439 = arith.constant 0 : index
    %808 = vector.load %arg14[%c19, %c0_438, %c0_439] : memref<24x32x8xf32, #tpu.memory_space<vmem>>, vector<1x32x8xf32>
    %809 = vector.shape_cast %808 : vector<1x32x8xf32> to vector<32x8xf32>
    %cst_440 = arith.constant dense<0.000000e+00> : vector<8x8xf32>
    %810 = tpu.matmul %670, %809, %cst_440 {dimension_numbers = #tpu.dot_dimension_numbers<[1], [0], [0], [1], [0, 0, 1, 1], [], []>} : vector<8x32xf32>, vector<32x8xf32>, vector<8x8xf32> -> vector<8x8xf32>
    %c19_441 = arith.constant 19 : index
    %c0_442 = arith.constant 0 : index
    %c0_443 = arith.constant 0 : index
    %811 = vector.load %arg15[%c19_441, %c0_442, %c0_443] : memref<24x1x8xf32, #tpu.memory_space<vmem>>, vector<1x1x8xf32>
    %812 = vector.shape_cast %811 : vector<1x1x8xf32> to vector<1x8xf32>
    %813 = vector.broadcast %812 : vector<1x8xf32> to vector<8x8xf32>
    %814 = arith.addf %810, %813 : vector<8x8xf32>
    %c23 = arith.constant 23 : index
    %c0_444 = arith.constant 0 : index
    %c0_445 = arith.constant 0 : index
    %815 = vector.load %arg14[%c23, %c0_444, %c0_445] : memref<24x32x8xf32, #tpu.memory_space<vmem>>, vector<1x32x8xf32>
    %816 = vector.shape_cast %815 : vector<1x32x8xf32> to vector<32x8xf32>
    %cst_446 = arith.constant dense<0.000000e+00> : vector<8x8xf32>
    %817 = tpu.matmul %670, %816, %cst_446 {dimension_numbers = #tpu.dot_dimension_numbers<[1], [0], [0], [1], [0, 0, 1, 1], [], []>} : vector<8x32xf32>, vector<32x8xf32>, vector<8x8xf32> -> vector<8x8xf32>
    %c23_447 = arith.constant 23 : index
    %c0_448 = arith.constant 0 : index
    %c0_449 = arith.constant 0 : index
    %818 = vector.load %arg15[%c23_447, %c0_448, %c0_449] : memref<24x1x8xf32, #tpu.memory_space<vmem>>, vector<1x1x8xf32>
    %819 = vector.shape_cast %818 : vector<1x1x8xf32> to vector<1x8xf32>
    %820 = vector.broadcast %819 : vector<1x8xf32> to vector<8x8xf32>
    %821 = arith.addf %817, %820 : vector<8x8xf32>
    "tpu.trace_start"() <{level = 10 : i32, message = "qd,kd->qk"}> : () -> ()
    %cst_450 = arith.constant dense<0.000000e+00> : vector<8x8xf32>
    %822 = tpu.matmul %807, %814, %cst_450 {dimension_numbers = #tpu.dot_dimension_numbers<[1], [1], [0], [0], [0, 0, 1, 0], [], []>} : vector<8x8xf32>, vector<8x8xf32>, vector<8x8xf32> -> vector<8x8xf32>
    "tpu.trace_stop"() : () -> ()
    %cst_451 = arith.constant 0.353553385 : f32
    %823 = vector.broadcast %cst_451 : f32 to vector<8x8xf32>
    %824 = arith.mulf %822, %823 : vector<8x8xf32>
    %cst_452 = arith.constant -1.000000e+30 : f32
    %825 = vector.broadcast %cst_452 : f32 to vector<8x8xf32>
    %826 = arith.select %9, %824, %825 : vector<8x8xi1>, vector<8x8xf32>
    %cst_453 = arith.constant dense<0xFF800000> : vector<8xf32>
    %827 = vector.multi_reduction <maximumf>, %826, %cst_453 [1] : vector<8x8xf32> to vector<8xf32>
    %cst_454 = arith.constant 0xFF800000 : f32
    %828 = vector.broadcast %cst_454 : f32 to vector<8xf32>
    %829 = arith.maximumf %828, %827 : vector<8xf32>
    %830 = vector.shape_cast %829 : vector<8xf32> to vector<8x1xf32>
    %831 = vector.broadcast %830 : vector<8x1xf32> to vector<8x8xf32>
    %832 = arith.subf %826, %831 : vector<8x8xf32>
    %833 = math.exp %832 : vector<8x8xf32>
    %cst_455 = arith.constant dense<0.000000e+00> : vector<8xf32>
    %834 = vector.multi_reduction <add>, %833, %cst_455 [1] : vector<8x8xf32> to vector<8xf32>
    %835 = vector.shape_cast %834 : vector<8xf32> to vector<8x1xf32>
    %836 = vector.broadcast %835 : vector<8x1xf32> to vector<8x8xf32>
    %837 = arith.divf %833, %836 : vector<8x8xf32>
    %cst_456 = arith.constant dense<0.000000e+00> : vector<8x8xf32>
    %838 = tpu.matmul %837, %821, %cst_456 {dimension_numbers = #tpu.dot_dimension_numbers<[1], [0], [0], [1], [0, 0, 1, 1], [], []>} : vector<8x8xf32>, vector<8x8xf32>, vector<8x8xf32> -> vector<8x8xf32>
    %c7_457 = arith.constant 7 : index
    %c0_458 = arith.constant 0 : index
    %c0_459 = arith.constant 0 : index
    %839 = vector.load %arg16[%c7_457, %c0_458, %c0_459] : memref<8x8x32xf32, #tpu.memory_space<vmem>>, vector<1x8x32xf32>
    %840 = vector.shape_cast %839 : vector<1x8x32xf32> to vector<8x32xf32>
    %cst_460 = arith.constant dense<0.000000e+00> : vector<8x32xf32>
    %841 = tpu.matmul %838, %840, %cst_460 {dimension_numbers = #tpu.dot_dimension_numbers<[1], [0], [0], [1], [0, 0, 1, 1], [], []>} : vector<8x8xf32>, vector<8x32xf32>, vector<8x32xf32> -> vector<8x32xf32>
    %842 = arith.addf %800, %841 : vector<8x32xf32>
    %843 = arith.addf %644, %842 : vector<8x32xf32>
    %c1_461 = arith.constant 1 : index
    %c0_462 = arith.constant 0 : index
    %c0_463 = arith.constant 0 : index
    %844 = vector.load %arg18[%c1_461, %c0_462, %c0_463] : memref<2x1x32xf32, #tpu.memory_space<vmem>>, vector<1x1x32xf32>
    %845 = vector.shape_cast %844 : vector<1x1x32xf32> to vector<1x32xf32>
    %c1_464 = arith.constant 1 : index
    %c0_465 = arith.constant 0 : index
    %c0_466 = arith.constant 0 : index
    %846 = vector.load %arg19[%c1_464, %c0_465, %c0_466] : memref<2x1x32xf32, #tpu.memory_space<vmem>>, vector<1x1x32xf32>
    %847 = vector.shape_cast %846 : vector<1x1x32xf32> to vector<1x32xf32>
    %cst_467 = arith.constant dense<0.000000e+00> : vector<8xf32>
    %848 = vector.multi_reduction <add>, %843, %cst_467 [1] : vector<8x32xf32> to vector<8xf32>
    %849 = vector.shape_cast %848 : vector<8xf32> to vector<8x1xf32>
    %cst_468 = arith.constant 3.200000e+01 : f32
    %850 = vector.broadcast %cst_468 : f32 to vector<8x1xf32>
    %851 = arith.divf %849, %850 : vector<8x1xf32>
    %852 = vector.broadcast %851 : vector<8x1xf32> to vector<8x32xf32>
    %853 = arith.subf %843, %852 : vector<8x32xf32>
    %854 = arith.mulf %853, %853 : vector<8x32xf32>
    %cst_469 = arith.constant dense<0.000000e+00> : vector<8xf32>
    %855 = vector.multi_reduction <add>, %854, %cst_469 [1] : vector<8x32xf32> to vector<8xf32>
    %856 = vector.shape_cast %855 : vector<8xf32> to vector<8x1xf32>
    %cst_470 = arith.constant 3.100000e+01 : f32
    %857 = vector.broadcast %cst_470 : f32 to vector<8x1xf32>
    %858 = arith.divf %856, %857 : vector<8x1xf32>
    %859 = vector.broadcast %851 : vector<8x1xf32> to vector<8x32xf32>
    %860 = arith.subf %843, %859 : vector<8x32xf32>
    %861 = vector.broadcast %845 : vector<1x32xf32> to vector<8x32xf32>
    %862 = arith.mulf %861, %860 : vector<8x32xf32>
    %863 = math.sqrt %858 : vector<8x1xf32>
    %cst_471 = arith.constant 9.99999997E-7 : f32
    %864 = vector.broadcast %cst_471 : f32 to vector<8x1xf32>
    %865 = arith.addf %863, %864 : vector<8x1xf32>
    %866 = vector.broadcast %865 : vector<8x1xf32> to vector<8x32xf32>
    %867 = arith.divf %862, %866 : vector<8x32xf32>
    %868 = vector.broadcast %847 : vector<1x32xf32> to vector<8x32xf32>
    %869 = arith.addf %867, %868 : vector<8x32xf32>
    %c1_472 = arith.constant 1 : index
    %c0_473 = arith.constant 0 : index
    %c0_474 = arith.constant 0 : index
    %870 = vector.load %arg20[%c1_472, %c0_473, %c0_474] : memref<2x32x128xf32, #tpu.memory_space<vmem>>, vector<1x32x128xf32>
    %871 = vector.shape_cast %870 : vector<1x32x128xf32> to vector<32x128xf32>
    %cst_475 = arith.constant dense<0.000000e+00> : vector<8x128xf32>
    %872 = tpu.matmul %869, %871, %cst_475 {dimension_numbers = #tpu.dot_dimension_numbers<[1], [0], [0], [1], [0, 0, 1, 1], [], []>} : vector<8x32xf32>, vector<32x128xf32>, vector<8x128xf32> -> vector<8x128xf32>
    %c1_476 = arith.constant 1 : index
    %c0_477 = arith.constant 0 : index
    %c0_478 = arith.constant 0 : index
    %873 = vector.load %arg21[%c1_476, %c0_477, %c0_478] : memref<2x1x128xf32, #tpu.memory_space<vmem>>, vector<1x1x128xf32>
    %874 = vector.shape_cast %873 : vector<1x1x128xf32> to vector<1x128xf32>
    %875 = vector.broadcast %874 : vector<1x128xf32> to vector<8x128xf32>
    %876 = arith.addf %872, %875 : vector<8x128xf32>
    %cst_479 = arith.constant 0.000000e+00 : f32
    %877 = vector.broadcast %cst_479 : f32 to vector<8x128xf32>
    %878 = arith.maximumf %876, %877 : vector<8x128xf32>
    %c1_480 = arith.constant 1 : index
    %c0_481 = arith.constant 0 : index
    %c0_482 = arith.constant 0 : index
    %879 = vector.load %arg22[%c1_480, %c0_481, %c0_482] : memref<2x128x32xf32, #tpu.memory_space<vmem>>, vector<1x128x32xf32>
    %880 = vector.shape_cast %879 : vector<1x128x32xf32> to vector<128x32xf32>
    %cst_483 = arith.constant dense<0.000000e+00> : vector<8x32xf32>
    %881 = tpu.matmul %878, %880, %cst_483 {dimension_numbers = #tpu.dot_dimension_numbers<[1], [0], [0], [1], [0, 0, 1, 1], [], []>} : vector<8x128xf32>, vector<128x32xf32>, vector<8x32xf32> -> vector<8x32xf32>
    %c1_484 = arith.constant 1 : index
    %c0_485 = arith.constant 0 : index
    %c0_486 = arith.constant 0 : index
    %882 = vector.load %arg23[%c1_484, %c0_485, %c0_486] : memref<2x1x32xf32, #tpu.memory_space<vmem>>, vector<1x1x32xf32>
    %883 = vector.shape_cast %882 : vector<1x1x32xf32> to vector<1x32xf32>
    %884 = vector.broadcast %883 : vector<1x32xf32> to vector<8x32xf32>
    %885 = arith.addf %881, %884 : vector<8x32xf32>
    %886 = arith.addf %843, %885 : vector<8x32xf32>
    %c0_487 = arith.constant 0 : index
    %c0_488 = arith.constant 0 : index
    %887 = vector.load %arg24[%c0_487, %c0_488] : memref<32x4xf32, #tpu.memory_space<vmem>>, vector<32x4xf32>
    %cst_489 = arith.constant dense<0.000000e+00> : vector<8x4xf32>
    %888 = tpu.matmul %886, %887, %cst_489 {dimension_numbers = #tpu.dot_dimension_numbers<[1], [0], [0], [1], [0, 0, 1, 1], [], []>} : vector<8x32xf32>, vector<32x4xf32>, vector<8x4xf32> -> vector<8x4xf32>
    %c0_490 = arith.constant 0 : index
    %c0_491 = arith.constant 0 : index
    %889 = vector.load %arg25[%c0_490, %c0_491] : memref<1x4xf32, #tpu.memory_space<vmem>>, vector<1x4xf32>
    %890 = vector.broadcast %889 : vector<1x4xf32> to vector<8x4xf32>
    %891 = arith.addf %888, %890 : vector<8x4xf32>
    %892 = arith.negf %891 : vector<8x4xf32>
    %893 = math.exp %892 : vector<8x4xf32>
    %cst_492 = arith.constant 1.000000e+00 : f32
    %894 = vector.broadcast %cst_492 : f32 to vector<8x4xf32>
    %895 = arith.addf %894, %893 : vector<8x4xf32>
    %896 = arith.divf %894, %895 : vector<8x4xf32>
    %c0_493 = arith.constant 0 : index
    %c0_494 = arith.constant 0 : index
    %c0_495 = arith.constant 0 : index
    %897 = vector.load %arg26[%c0_493, %c0_494, %c0_495] : memref<1x8x4xf32, #tpu.memory_space<vmem>>, vector<1x8x4xf32>
    %898 = vector.shape_cast %897 : vector<1x8x4xf32> to vector<8x4xf32>
    %899 = vector.shape_cast %896 : vector<8x4xf32> to vector<1x8x4xf32>
    tpu.vector_store %arg26[%c0_493, %c0_494, %c0_495], %899 {strides = array<i32>} : memref<1x8x4xf32, #tpu.memory_space<vmem>>, vector<1x8x4xf32>,
    return
  }
  func.func @transform_0(%arg0: i32) -> (i32, i32, i32) {
    %c0_i32 = arith.constant 0 : i32
    %c0_i32_0 = arith.constant 0 : i32
    %c0_i32_1 = arith.constant 0 : i32
    return %arg0, %c0_i32, %c0_i32_0 : i32, i32, i32
  }
  func.func @transform_1(%arg0: i32) -> (i32, i32) {
    %c0_i32 = arith.constant 0 : i32
    %c0_i32_0 = arith.constant 0 : i32
    %c0_i32_1 = arith.constant 0 : i32
    return %c0_i32, %c0_i32_0 : i32, i32
  }
  func.func @transform_2(%arg0: i32) -> (i32, i32) {
    %c0_i32 = arith.constant 0 : i32
    %c0_i32_0 = arith.constant 0 : i32
    %c0_i32_1 = arith.constant 0 : i32
    return %c0_i32, %c0_i32_0 : i32, i32
  }
  func.func @transform_3(%arg0: i32) -> (i32, i32, i32) {
    %c0_i32 = arith.constant 0 : i32
    %c0_i32_0 = arith.constant 0 : i32
    %c0_i32_1 = arith.constant 0 : i32
    %c0_i32_2 = arith.constant 0 : i32
    return %c0_i32, %c0_i32_0, %c0_i32_1 : i32, i32, i32
  }
  func.func @transform_4(%arg0: i32) -> (i32, i32, i32) {
    %c0_i32 = arith.constant 0 : i32
    %c0_i32_0 = arith.constant 0 : i32
    %c0_i32_1 = arith.constant 0 : i32
    %c0_i32_2 = arith.constant 0 : i32
    return %c0_i32, %c0_i32_0, %c0_i32_1 : i32, i32, i32
  }
  func.func @transform_5(%arg0: i32) -> (i32, i32, i32) {
    %c0_i32 = arith.constant 0 : i32
    %c0_i32_0 = arith.constant 0 : i32
    %c0_i32_1 = arith.constant 0 : i32
    %c0_i32_2 = arith.constant 0 : i32
    return %c0_i32, %c0_i32_0, %c0_i32_1 : i32, i32, i32
  }
  func.func @transform_6(%arg0: i32) -> (i32, i32, i32) {
    %c0_i32 = arith.constant 0 : i32
    %c0_i32_0 = arith.constant 0 : i32
    %c0_i32_1 = arith.constant 0 : i32
    %c0_i32_2 = arith.constant 0 : i32
    return %c0_i32, %c0_i32_0, %c0_i32_1 : i32, i32, i32
  }
  func.func @transform_7(%arg0: i32) -> (i32, i32, i32) {
    %c0_i32 = arith.constant 0 : i32
    %c0_i32_0 = arith.constant 0 : i32
    %c0_i32_1 = arith.constant 0 : i32
    %c0_i32_2 = arith.constant 0 : i32
    return %c0_i32, %c0_i32_0, %c0_i32_1 : i32, i32, i32
  }
  func.func @transform_8(%arg0: i32) -> (i32, i32, i32) {
    %c0_i32 = arith.constant 0 : i32
    %c0_i32_0 = arith.constant 0 : i32
    %c0_i32_1 = arith.constant 0 : i32
    %c0_i32_2 = arith.constant 0 : i32
    return %c0_i32, %c0_i32_0, %c0_i32_1 : i32, i32, i32
  }
  func.func @transform_9(%arg0: i32) -> (i32, i32, i32) {
    %c0_i32 = arith.constant 0 : i32
    %c0_i32_0 = arith.constant 0 : i32
    %c0_i32_1 = arith.constant 0 : i32
    %c0_i32_2 = arith.constant 0 : i32
    return %c0_i32, %c0_i32_0, %c0_i32_1 : i32, i32, i32
  }
  func.func @transform_10(%arg0: i32) -> (i32, i32, i32) {
    %c0_i32 = arith.constant 0 : i32
    %c0_i32_0 = arith.constant 0 : i32
    %c0_i32_1 = arith.constant 0 : i32
    %c0_i32_2 = arith.constant 0 : i32
    return %c0_i32, %c0_i32_0, %c0_i32_1 : i32, i32, i32
  }
  func.func @transform_11(%arg0: i32) -> (i32, i32, i32) {
    %c0_i32 = arith.constant 0 : i32
    %c0_i32_0 = arith.constant 0 : i32
    %c0_i32_1 = arith.constant 0 : i32
    %c0_i32_2 = arith.constant 0 : i32
    return %c0_i32, %c0_i32_0, %c0_i32_1 : i32, i32, i32
  }
  func.func @transform_12(%arg0: i32) -> (i32, i32, i32) {
    %c0_i32 = arith.constant 0 : i32
    %c0_i32_0 = arith.constant 0 : i32
    %c0_i32_1 = arith.constant 0 : i32
    %c0_i32_2 = arith.constant 0 : i32
    return %c0_i32, %c0_i32_0, %c0_i32_1 : i32, i32, i32
  }
  func.func @transform_13(%arg0: i32) -> (i32, i32, i32) {
    %c0_i32 = arith.constant 0 : i32
    %c0_i32_0 = arith.constant 0 : i32
    %c0_i32_1 = arith.constant 0 : i32
    %c0_i32_2 = arith.constant 0 : i32
    return %c0_i32, %c0_i32_0, %c0_i32_1 : i32, i32, i32
  }
  func.func @transform_14(%arg0: i32) -> (i32, i32, i32) {
    %c0_i32 = arith.constant 0 : i32
    %c0_i32_0 = arith.constant 0 : i32
    %c0_i32_1 = arith.constant 0 : i32
    %c0_i32_2 = arith.constant 0 : i32
    return %c0_i32, %c0_i32_0, %c0_i32_1 : i32, i32, i32
  }
  func.func @transform_15(%arg0: i32) -> (i32, i32, i32) {
    %c0_i32 = arith.constant 0 : i32
    %c0_i32_0 = arith.constant 0 : i32
    %c0_i32_1 = arith.constant 0 : i32
    %c0_i32_2 = arith.constant 0 : i32
    return %c0_i32, %c0_i32_0, %c0_i32_1 : i32, i32, i32
  }
  func.func @transform_16(%arg0: i32) -> (i32, i32, i32) {
    %c0_i32 = arith.constant 0 : i32
    %c0_i32_0 = arith.constant 0 : i32
    %c0_i32_1 = arith.constant 0 : i32
    %c0_i32_2 = arith.constant 0 : i32
    return %c0_i32, %c0_i32_0, %c0_i32_1 : i32, i32, i32
  }
  func.func @transform_17(%arg0: i32) -> (i32, i32, i32) {
    %c0_i32 = arith.constant 0 : i32
    %c0_i32_0 = arith.constant 0 : i32
    %c0_i32_1 = arith.constant 0 : i32
    %c0_i32_2 = arith.constant 0 : i32
    return %c0_i32, %c0_i32_0, %c0_i32_1 : i32, i32, i32
  }
  func.func @transform_18(%arg0: i32) -> (i32, i32, i32) {
    %c0_i32 = arith.constant 0 : i32
    %c0_i32_0 = arith.constant 0 : i32
    %c0_i32_1 = arith.constant 0 : i32
    %c0_i32_2 = arith.constant 0 : i32
    return %c0_i32, %c0_i32_0, %c0_i32_1 : i32, i32, i32
  }
  func.func @transform_19(%arg0: i32) -> (i32, i32, i32) {
    %c0_i32 = arith.constant 0 : i32
    %c0_i32_0 = arith.constant 0 : i32
    %c0_i32_1 = arith.constant 0 : i32
    %c0_i32_2 = arith.constant 0 : i32
    return %c0_i32, %c0_i32_0, %c0_i32_1 : i32, i32, i32
  }
  func.func @transform_20(%arg0: i32) -> (i32, i32, i32) {
    %c0_i32 = arith.constant 0 : i32
    %c0_i32_0 = arith.constant 0 : i32
    %c0_i32_1 = arith.constant 0 : i32
    %c0_i32_2 = arith.constant 0 : i32
    return %c0_i32, %c0_i32_0, %c0_i32_1 : i32, i32, i32
  }
  func.func @transform_21(%arg0: i32) -> (i32, i32, i32) {
    %c0_i32 = arith.constant 0 : i32
    %c0_i32_0 = arith.constant 0 : i32
    %c0_i32_1 = arith.constant 0 : i32
    %c0_i32_2 = arith.constant 0 : i32
    return %c0_i32, %c0_i32_0, %c0_i32_1 : i32, i32, i32
  }
  func.func @transform_22(%arg0: i32) -> (i32, i32, i32) {
    %c0_i32 = arith.constant 0 : i32
    %c0_i32_0 = arith.constant 0 : i32
    %c0_i32_1 = arith.constant 0 : i32
    %c0_i32_2 = arith.constant 0 : i32
    return %c0_i32, %c0_i32_0, %c0_i32_1 : i32, i32, i32
  }
  func.func @transform_23(%arg0: i32) -> (i32, i32) {
    %c0_i32 = arith.constant 0 : i32
    %c0_i32_0 = arith.constant 0 : i32
    %c0_i32_1 = arith.constant 0 : i32
    return %c0_i32, %c0_i32_0 : i32, i32
  }
  func.func @transform_24(%arg0: i32) -> (i32, i32) {
    %c0_i32 = arith.constant 0 : i32
    %c0_i32_0 = arith.constant 0 : i32
    %c0_i32_1 = arith.constant 0 : i32
    return %c0_i32, %c0_i32_0 : i32, i32
  }
  func.func @transform_25(%arg0: i32) -> (i32, i32, i32) {
    %c0_i32 = arith.constant 0 : i32
    %c0_i32_0 = arith.constant 0 : i32
    %c0_i32_1 = arith.constant 0 : i32
    return %arg0, %c0_i32, %c0_i32_0 : i32, i32, i32
  }
}

</mosaic_0001>

<bundles_post_ra>
// kernel: tpu_custom_call.1
= control target key start
LH: loop header
LB: loop body
LE: loop exit
PB: predicated region body
PF: predicated region fallthrough
CT: control target
= control target key end

     0   :  { %s10388_s29 = smov 0   ;;  %s12177_s0 = inlined_call_operand.vmem [shape: f32[2,8,4], index: 0, kind: input, shape index: {}]   ;;  %s12178_s1 = inlined_call_operand.vmem [shape: f32[4,32], index: 1, kind: input, shape index: {}]   ;;  %s12179_s2 = inlined_call_operand.vmem [shape: f32[1,32], index: 2, kind: input, shape index: {}]   ;;  %s12180_s3 = inlined_call_operand.vmem [shape: f32[2,1,32], index: 3, kind: input, shape index: {}]   ;;  %s12181_s4 = inlined_call_operand.vmem [shape: f32[2,1,32], index: 4, kind: input, shape index: {}]   ;;  %s12182_s5 = inlined_call_operand.vmem [shape: f32[6,32,32], index: 5, kind: input, shape index: {}]   ;;  %s12183_s6 = inlined_call_operand.vmem [shape: f32[6,32,32], index: 6, kind: input, shape index: {}]   ;;  %s12184_s7 = inlined_call_operand.vmem [shape: f32[6,1,32], index: 7, kind: input, shape index: {}]   ;;  %s12185_s8 = inlined_call_operand.vmem [shape: f32[6,1,32], index: 8, kind: input, shape index: {}]   ;;  %s12186_s9 = inlined_call_operand.vmem [shape: f32[2,32,32], index: 9, kind: input, shape index: {}]   ;;  %s12187_s10 = inlined_call_operand.vmem [shape: f32[2,1,32], index: 10, kind: input, shape index: {}]   ;;  %s12188_s11 = inlined_call_operand.vmem [shape: f32[2,1,32], index: 11, kind: input, shape index: {}]   ;;  %s12189_s12 = inlined_call_operand.vmem [shape: f32[2,1,32], index: 12, kind: input, shape index: {}]   ;;  %s12190_s13 = inlined_call_operand.vmem [shape: f32[24,32,8], index: 13, kind: input, shape index: {}]   ;;  %s12191_s14 = inlined_call_operand.vmem [shape: f32[24,1,8], index: 14, kind: input, shape index: {}]   ;;  %s12192_s15 = inlined_call_operand.vmem [shape: f32[8,8,32], index: 15, kind: input, shape index: {}]   ;;  %s12193_s16 = inlined_call_operand.vmem [shape: f32[2,1,32], index: 16, kind: input, shape index: {}]   ;;  %s12194_s17 = inlined_call_operand.vmem [shape: f32[2,1,32], index: 17, kind: input, shape index: {}]   ;;  %s12195_s18 = inlined_call_operand.vmem [shape: f32[2,1,32], index: 18, kind: input, shape index: {}]   ;;  %s12196_s19 = inlined_call_operand.vmem [shape: f32[2,32,128], index: 19, kind: input, shape index: {}]   ;;  %s12197_s20 = inlined_call_operand.vmem [shape: f32[2,1,128], index: 20, kind: input, shape index: {}]   ;;  %s12198_s21 = inlined_call_operand.vmem [shape: f32[2,128,32], index: 21, kind: input, shape index: {}]   ;;  %s12199_s22 = inlined_call_operand.vmem [shape: f32[2,1,32], index: 22, kind: input, shape index: {}]   ;;  %s12200_s23 = inlined_call_operand.vmem [shape: f32[32,4], index: 23, kind: input, shape index: {}]   ;;  %s12201_s24 = inlined_call_operand.vmem [shape: f32[1,4], index: 24, kind: input, shape index: {}]   ;;  %s12202_s25 = inlined_call_operand.vmem [shape: f32[2,8,4], index: 25, kind: output, shape index: {}]  }
   0x1   :  { %12212 = sst [smem:[#allocation3_spill]] %s12177_s0 }
   0x2   :  { %12213 = sst [smem:[#allocation4_spill]] %s12178_s1 }
   0x3   :  { %12214 = sst [smem:[#allocation5_spill]] %s12179_s2 }
   0x4   :  { %12215 = sst [smem:[#allocation6_spill]] %s12180_s3 }
   0x5   :  { %12216 = sst [smem:[#allocation7_spill]] %s12181_s4 }
   0x6   :  { %12217 = sst [smem:[#allocation8_spill]] %s12182_s5 }
   0x7   :  { %12218 = sst [smem:[#allocation9_spill]] %s12183_s6 }
   0x8   :  { %12219 = sst [smem:[#allocation10_spill]] %s12184_s7 }
   0x9   :  { %12220 = sst [smem:[#allocation11_spill]] %s12185_s8 }
   0xa   :  { %12221 = sst [smem:[#allocation12_spill]] %s12186_s9 }
   0xb   :  { %12222 = sst [smem:[#allocation13_spill]] %s12202_s25 }
   0xc LB: > { %12223 = sst [smem:[#allocation2_spill]] %s10254_s29  ;;  %s8524_s2 = sadd.s32 4294967295, %s10254_s29   ;;  %s10254_s29 = sphi %s10388_s29, %s35_s29  }
   0xd   : > { %p8528_p0 = scmp.ge.s32.totalorder %s10254_s29, 1  ;;  %p686_p1 = scmp.lt.s32.totalorder %s10254_s29, 3 }
   0xf   : > { %p687_p2 = pnand %p8528_p0, %p686_p1 }
  0x10   : > { %s12224_s7 = sld [smem:[#allocation4_spill]] (!%p687_p2)  ;;  %p752_p3 = scmp.lt.s32.totalorder (!%p687_p2), %s8524_s2, 1 }
  0x11   : > { %690 = sbr.rel (%p687_p2) target bundleno = 13143 (0x3357), region = 120  ;;  %s12225_s8 = sld [smem:[#allocation3_spill]] (!%p687_p2) }
  0x12   : > { %s12226_s9 = sld [smem:[#allocation5_spill]] (!%p687_p2) }
  0x13   : > { %s12227_s6 = sld [smem:[#allocation8_spill]] (!%p687_p2) }
  0x14   : > { %s12229_s30 = sld [smem:[#allocation7_spill]] (!%p687_p2) }
  0x15   : > { %s12231_s4 = sld [smem:[#allocation9_spill]] (!%p687_p2) }
  0x16   : > { %v761_v0 = vld [vmem:[%s12224_s7] sm:$0xf]  ;;  %vm773_vm0 = vcmask 1043456   ;;  %v10256_v1 = vmov 0.0   ;;  %vm10257_vm1 = vmmov 0   ;;  %s12240_s2 = smov (!%p752_p3, %s8524_s2), 1  ;;  %v847_v39 = vlaneseq }
  0x17   : > { %9280 = vmatprep.subr.mxu0 %v10256_v1  ;;  %9282 = vmatprep.mubr.msk.f32.mxu0 %vm10257_vm1, %v10256_v1  ;;  %s12210_s3 = sshll.u32 %s12240_s2, 3  ;;  %vm769_vm2 = vcmask 31744   ;;  %vm867_vm3 = vcmask 261120   ;;  %s12230_s7 = sld [smem:[#allocation10_spill]]  ;;  %vm1174_vm7 = vcmask 64512  }
  0x18   : > { %9281 = vmatpush3.msk.msra.mxu0 %vm773_vm0, %v761_v0  ;;  %9285 = vmatprep.subr.mxu1 %v10256_v1  ;;  %s755_s27 = scalar_lea.vmem %s12225_s8, %s12210_s3  ;;  %v8531_v3 = vld [vmem:[%s12226_s9] ss:$0 sm:$0xff]  ;;  %s12228_s9 = sld [smem:[#allocation6_spill]]  ;;  %v10489_v40 = vshrl.u32 %v847_v39, 7  ;;  %v10491_v41 = vand.u32 127, %v847_v39 }
  0x19   : > { %9293 = vmatprep.mubr.msk.f32.mxu1 %vm10257_vm1, %v10256_v1  ;;  %9318 = vmatprep.subr.mxu0 %v10256_v1  ;;  %v760_v2 = vld [vmem:[%s755_s27] sm:$0xff]  ;;  %v907_v13 = vld [vmem:[%s12227_s6 + $0x18] sm:$0xff]  ;;  %v906_v14 = vld [vmem:[%s12227_s6 + $0x10] sm:$0xff]  ;;  %s12232_s8 = sld [smem:[#allocation11_spill]]  ;;  %s12236_s3 = sshll.u32 %s12240_s2, 3 }
  0x1a   : > { %9283 = vmatmul.mubr.msk.f32.vlgmr.msra.gmra.mxu0 %vm769_vm2, %v760_v2  ;;  %9286 = vmatpush3.msra.mxu1 %v907_v13  ;;  %v905_v15 = vld [vmem:[%s12227_s6 + $0x8] sm:$0xff]  ;;  %v904_v16 = vld [vmem:[%s12227_s6] sm:$0xff]  ;;  %v8543_v31 = vld [vmem:[%s12227_s6 + $0x38] sm:$0xff]  ;;  %v10495_v42 = vsub.s32 %v10489_v40, %v10491_v41  ;;  %vm862_vm9 = vcmp.lt.s32.totalorder %v10489_v40, 2  ;;  %vm856_vm10 = vcmp.lt.s32.totalorder %v10489_v40, 1  ;;  %s12233_s27 = sld [smem:[#allocation12_spill]]  ;;  %vm10897_vm13 = vcmp.le.s32.totalorder %v10491_v41, %v10489_v40 }
  0x1b   : > { %9320 = vmatprep.mubr.msk.f32.mxu0 %vm10257_vm1, %v10256_v1  ;;  %9287 = vmatprep.subr.mxu1 %v10256_v1  ;;  %v8539_v28 = vld [vmem:[%s12229_s30] ss:$0 sm:$0xff]  ;;  %v8542_v32 = vld [vmem:[%s12227_s6 + $0x30] sm:$0xff]  ;;  %v8541_v33 = vld [vmem:[%s12227_s6 + $0x28] sm:$0xff]  ;;  %s12237_s28 = sld [smem:[#allocation13_spill]] }
  0x1c   : > { %9288 = vmatpush3.msra.mxu1 %v906_v14  ;;  %v8540_v34 = vld [vmem:[%s12227_s6 + $0x20] sm:$0xff]  ;;  %v8547_v35 = vld [vmem:[%s12227_s6 + $0x58] sm:$0xff]  ;;  %v8546_v36 = vld [vmem:[%s12227_s6 + $0x50] sm:$0xff]  ;;  %vm859_vm6 = vcmp.eq.s32.totalorder %v10495_v42, 2  ;;  %vm853_vm8 = vcmp.eq.s32.totalorder %v10495_v42, 1 }
  0x1d   : > { %9289 = vmatprep.subr.mxu1 %v10256_v1  ;;  %v8545_v37 = vld [vmem:[%s12227_s6 + $0x48] sm:$0xff]  ;;  %v8544_v38 = vld [vmem:[%s12227_s6 + $0x40] sm:$0xff]  ;;  %v10507_v46 = vsel %vm859_vm6, 1.0, %v10256_v1  ;;  %v10526_v52 = vld [vmem:[%s12231_s4 + $0x18] sm:$0xff] }
  0x1e   : > { %9290 = vmatpush3.msra.mxu1 %v905_v15  ;;  %v8538_v25 = vld [vmem:[%s12228_s9] ss:$0 sm:$0xff]  ;;  %v10518_v48 = vld [vmem:[%s12230_s7 + $0x1] ss:$0 sm:$0xff]  ;;  %v10535_v53 = vld [vmem:[%s12231_s4 + $0x10] sm:$0xff] }
  0x1f   : > { %9291 = vmatprep.subr.mxu1 %v10256_v1  ;;  %v10500_v43 = vld [vmem:[%s12230_s7] ss:$0 sm:$0xff]  ;;  %v10544_v54 = vld [vmem:[%s12230_s7 + $0x2] ss:$0 sm:$0xff]  ;;  %v10549_v55 = vld [vmem:[%s12231_s4 + $0x8] sm:$0xff] }
  0x20   : > { %9292 = vmatpush3.msra.mxu1 %v904_v16  ;;  %v10556_v57 = vld [vmem:[%s12231_s4] sm:$0xff]  ;;  %v10568_v60 = vld [vmem:[%s12231_s4 + $0x38] sm:$0xff]  ;;  %v10583_v62 = vld [vmem:[%s12231_s4 + $0x30] sm:$0xff] }
  0x21   : > { %9296 = vmatprep.subr.mxu1 %v10256_v1  ;;  %v10573_v61 = vld [vmem:[%s12231_s4 + $0x58] sm:$0xff]  ;;  %v10588_v63 = vld [vmem:[%s12231_s4 + $0x50] sm:$0xff]  ;;  %v10597_v0 = vld [vmem:[%s12231_s4 + $0x28] sm:$0xff]  ;;  %s759_s5 = scalar_lea.vmem %s12237_s28, %s12236_s3 }
  0x22   : > { %v10602_v2 = vld [vmem:[%s12231_s4 + $0x48] sm:$0xff]  ;;  %v10683_v13 = vld [vmem:[%s12232_s8] ss:$0 sm:$0xff] }
  0x23   : > { %v2867_v40 = vld [vmem:[%s12192_s15] sm:$0xff] }
  0xda   : > { %v843_v4 = vpop.f32.mrf.mxu0 }
  0xdb   : > { %v10420_v5 = vadd.f32 %v8531_v3, %v843_v4  ;;  %v10611_v3 = vld [vmem:[%s12231_s4 + $0x20] sm:$0xff] }
  0xdc   : > { %v9284_v6 = vpop.f32.mrf.mxu0  ;;  %v10618_v4 = vld [vmem:[%s12231_s4 + $0x40] sm:$0xff] }
  0xdd   : > { %v868_v7 = vsel %vm867_vm3, %v10420_v5, 0.0  ;;  %v10634_v6 = vsel %vm853_vm8, 1.0, %v10256_v1 }
  0xde   : > { %869 = vadd.xlane.f32.xlu0 %v868_v7 }
 0x167   : > { %v870_v8 = vpop.xlane.xlu0 %869 }
 0x168   : > { %v872_v9 = vmul.f32 0.03125, %v870_v8 }
 0x16a   : > { %v873_v10 = vsub.f32 %v10420_v5, %v872_v9 }
 0x16c   : > { %v874_v11 = vmul.f32 %v873_v10, %v873_v10  ;;  %v886_v26 = vmul.f32 %v8538_v25, %v873_v10  ;;  %v10676_v10 = vsel %vm862_vm9, 1.0, %v10256_v1 }
 0x16e   : > { %v875_v12 = vsel %vm867_vm3, %v874_v11, 0.0 }
 0x16f   : > { %876 = vadd.xlane.f32.xlu0 %v875_v12  ;;  %v1173_v12 = vmul.f32 %v10500_v43, %v10676_v10 }
 0x1f8   : > { %v877_v17 = vpop.xlane.xlu0 %876 }
 0x1f9   : > { %v879_v18 = vmul.f32 0.032258064, %v877_v17 }
 0x1fb   : > { %10128 = vrsqrt.f32 %v879_v18  ;;  %vm889_vm4 = vcmp.eq.f32.partialorder %v879_v18, inf  ;;  %v892_v21 = vand.u32 2147483648, %v879_v18  ;;  %vm891_vm5 = vcmp.eq.f32.partialorder %v879_v18, 0.0 }
 0x208   : > { %v10129_v19 = vpop.eup %10128 }
 0x209   : > { %v888_v20 = vmul.f32 %v10129_v19, %v879_v18 }
 0x20b   : > { %v890_v22 = vsel %vm889_vm4, %v879_v18, %v888_v20 }
 0x20c   : > { %v893_v23 = vsel %vm891_vm5, %v892_v21, %v890_v22  ;;  %v1248_v22 = vmul.f32 %v10518_v48, %v10676_v10 }
 0x20d   : > { %v894_v24 = vadd.f32 1e-06, %v893_v23  ;;  %v10691_v23 = vld [vmem:[%s12232_s8 + $0x1] ss:$0 sm:$0xff] }
 0x20f   : > { %10130 = vrcp.f32 %v894_v24 }
 0x21c   : > { %v10131_v27 = vpop.eup %10130 }
 0x21d   : > { %v896_v29 = vmul.f32 %v10131_v27, %v886_v26 }
 0x21f   : > { %v903_v30 = vadd.f32 %v8539_v28, %v896_v29 }
 0x221   : > { %9294 = vmatmul.mubr.msk.f32.vlgmr.msra.gmra.mxu1 %vm867_vm3, %v903_v30 }
 0x222   : > { %9297 = vmatpush3.msra.mxu1 %v8543_v31  ;;  %9304 = vmatprep.mubr.msk.f32.mxu1 %vm10257_vm1, %v10256_v1 }
 0x223   : > { %9298 = vmatprep.subr.mxu1 %v10256_v1 }
 0x224   : > { %9299 = vmatpush3.msra.mxu1 %v8542_v32 }
 0x225   : > { %9300 = vmatprep.subr.mxu1 %v10256_v1 }
 0x226   : > { %9301 = vmatpush3.msra.mxu1 %v8541_v33 }
 0x227   : > { %9302 = vmatprep.subr.mxu1 %v10256_v1 }
 0x228   : > { %9303 = vmatpush3.msra.mxu1 %v8540_v34 }
 0x229   : > { %9305 = vmatmul.mubr.msk.f32.vlgmr.msra.gmra.mxu1 %vm867_vm3, %v903_v30  ;;  %9307 = vmatprep.subr.mxu1 %v10256_v1 }
 0x22a   : > { %9308 = vmatpush3.msra.mxu1 %v8547_v35  ;;  %9315 = vmatprep.mubr.msk.f32.mxu1 %vm10257_vm1, %v10256_v1 }
 0x22b   : > { %9309 = vmatprep.subr.mxu1 %v10256_v1 }
 0x22c   : > { %9310 = vmatpush3.msra.mxu1 %v8546_v36 }
 0x22d   : > { %9311 = vmatprep.subr.mxu1 %v10256_v1 }
 0x22e   : > { %9312 = vmatpush3.msra.mxu1 %v8545_v37 }
 0x22f   : > { %9313 = vmatprep.subr.mxu1 %v10256_v1 }
 0x230   : > { %9314 = vmatpush3.msra.mxu1 %v8544_v38 }
 0x231   : > { %9316 = vmatmul.mubr.msk.f32.vlgmr.msra.gmra.mxu1 %vm867_vm3, %v903_v30  ;;  %9328 = vmatprep.subr.mxu1 %v10256_v1 }
 0x232   : > { %9330 = vmatprep.mubr.msk.f32.mxu1 %vm10257_vm1, %v10256_v1 }
 0x2e1   : > { %v1017_v44 = vpop.f32.mrf.mxu1 }
 0x2e2   : > { %v10504_v45 = vadd.f32 %v10500_v43, %v1017_v44  ;;  %v10701_v44 = vld [vmem:[%s12232_s8 + $0x2] ss:$0 sm:$0xff] }
 0x2e3   : > { %v9295_v47 = vpop.f32.mrf.mxu1 }
 0x2e4   : > { %9319 = vmatpush3.msra.mxu0 %v10504_v45  ;;  %v1319_v47 = vmul.f32 %v10544_v54, %v10676_v10 }
 0x2e5   : > { %9321 = vmatmul.mubr.msk.f32.vlgmr.msra.gmra.mxu0 %vm1174_vm7, %v10507_v46  ;;  %9323 = vmatprep.subr.mxu0 %v10256_v1 }
 0x2e6   : > { %9325 = vmatprep.mubr.msk.f32.mxu0 %vm10257_vm1, %v10256_v1 }
 0x2e9   : > { %v1093_v49 = vpop.f32.mrf.mxu1 }
 0x2ea   : > { %v10521_v50 = vadd.f32 %v10518_v48, %v1093_v49 }
 0x2eb   : > { %v9306_v51 = vpop.f32.mrf.mxu1 }
 0x2ec   : > { %9324 = vmatpush3.msra.mxu0 %v10521_v50 }
 0x2ed   : > { %9326 = vmatmul.mubr.msk.f32.vlgmr.msra.gmra.mxu0 %vm1174_vm7, %v10507_v46  ;;  %9333 = vmatprep.subr.mxu0 %v10256_v1 }
 0x2ee   : > { %9334 = vmatpush3.msra.mxu0 %v10526_v52  ;;  %9341 = vmatprep.mubr.msk.f32.mxu0 %vm10257_vm1, %v10256_v1 }
 0x2ef   : > { %9335 = vmatprep.subr.mxu0 %v10256_v1 }
 0x2f0   : > { %9336 = vmatpush3.msra.mxu0 %v10535_v53 }
 0x2f1   : > { %v1169_v56 = vpop.f32.mrf.mxu1  ;;  %9337 = vmatprep.subr.mxu0 %v10256_v1 }
 0x2f2   : > { %v10559_v58 = vadd.f32 %v10544_v54, %v1169_v56  ;;  %9338 = vmatpush3.msra.mxu0 %v10549_v55 }
 0x2f3   : > { %v9317_v59 = vpop.f32.mrf.mxu1  ;;  %9339 = vmatprep.subr.mxu0 %v10256_v1 }
 0x2f4   : > { %9329 = vmatpush3.msra.mxu1 %v10559_v58  ;;  %9340 = vmatpush3.msra.mxu0 %v10556_v57 }
 0x2f5   : > { %9342 = vmatmul.mubr.f32.vlgmr.msra.gmra.mxu0 %v10256_v1  ;;  %9344 = vmatprep.subr.mxu1 %v10256_v1 }
 0x2f6   : > { %9355 = vmatprep.subr.mxu0 %v10256_v1  ;;  %9331 = vmatmul.mubr.msk.f32.vlgmr.msra.gmra.mxu1 %vm1174_vm7, %v10507_v46 }
 0x2f7   : > { %9345 = vmatpush3.msra.mxu1 %v10568_v60  ;;  %9356 = vmatpush3.msra.mxu0 %v10573_v61 }
 0x2f8   : > { %9346 = vmatprep.subr.mxu1 %v10256_v1  ;;  %9357 = vmatprep.subr.mxu0 %v10256_v1 }
 0x2f9   : > { %9347 = vmatpush3.msra.mxu1 %v10583_v62  ;;  %9358 = vmatpush3.msra.mxu0 %v10588_v63 }
 0x2fa   : > { %9348 = vmatprep.subr.mxu1 %v10256_v1  ;;  %9359 = vmatprep.subr.mxu0 %v10256_v1 }
 0x2fb   : > { %9349 = vmatpush3.msra.mxu1 %v10597_v0  ;;  %9360 = vmatpush3.msra.mxu0 %v10602_v2 }
 0x2fc   : > { %9350 = vmatprep.subr.mxu1 %v10256_v1  ;;  %9361 = vmatprep.subr.mxu0 %v10256_v1 }
 0x2fd   : > { %9351 = vmatpush3.msra.mxu1 %v10611_v3  ;;  %9352 = vmatprep.mubr.msk.f32.mxu1 %vm10257_vm1, %v10256_v1 }
 0x2fe   : > { %9362 = vmatpush3.msra.mxu0 %v10618_v4  ;;  %9353 = vmatmul.mubr.f32.vlgmr.msra.gmra.mxu1 %v10256_v1 }
 0x2ff   : > { %9363 = vmatprep.mubr.msk.f32.mxu0 %vm10257_vm1, %v10256_v1  ;;  %9366 = vmatprep.subr.mxu1 %v10256_v1 }
 0x300   : > { %9376 = vmatprep.subr.mxu0 %v10256_v1  ;;  %9364 = vmatmul.mubr.f32.vlgmr.msra.gmra.mxu0 %v10256_v1 }
 0x301   : > { %9367 = vmatpush3.msra.mxu1 %v10504_v45  ;;  %9377 = vmatpush3.msra.mxu0 %v10559_v58 }
 0x302   : > { %9368 = vmatprep.mubr.msk.f32.mxu1 %vm10257_vm1, %v10256_v1  ;;  %9371 = vmatprep.subr.mxu1 %v10256_v1 }
 0x303   : > { %9369 = vmatmul.mubr.msk.f32.vlgmr.msra.gmra.mxu1 %vm1174_vm7, %v10634_v6  ;;  %9378 = vmatprep.mubr.msk.f32.mxu0 %vm10257_vm1, %v10256_v1 }
 0x304   : > { %9372 = vmatpush3.msra.mxu1 %v10521_v50  ;;  %9373 = vmatprep.mubr.msk.f32.mxu1 %vm10257_vm1, %v10256_v1 }
 0x305   : > { %9381 = vmatprep.subr.mxu1 %v10256_v1  ;;  %9392 = vmatprep.subr.mxu0 %v10256_v1 }
 0x306   : > { %9379 = vmatmul.mubr.msk.f32.vlgmr.msra.gmra.mxu0 %vm1174_vm7, %v10634_v6 }
 0x307   : > { %9374 = vmatmul.mubr.msk.f32.vlgmr.msra.gmra.mxu1 %vm1174_vm7, %v10634_v6  ;;  %9393 = vmatpush3.msra.mxu0 %v10568_v60 }
 0x308   : > { %9382 = vmatpush3.msra.mxu1 %v10526_v52  ;;  %9394 = vmatprep.subr.mxu0 %v10256_v1 }
 0x309   : > { %9383 = vmatprep.subr.mxu1 %v10256_v1  ;;  %9395 = vmatpush3.msra.mxu0 %v10583_v62 }
 0x30a   : > { %9384 = vmatpush3.msra.mxu1 %v10535_v53  ;;  %9396 = vmatprep.subr.mxu0 %v10256_v1 }
 0x30b   : > { %9385 = vmatprep.subr.mxu1 %v10256_v1  ;;  %9397 = vmatpush3.msra.mxu0 %v10597_v0 }
 0x30c   : > { %9386 = vmatpush3.msra.mxu1 %v10549_v55  ;;  %9398 = vmatprep.subr.mxu0 %v10256_v1 }
 0x30d   : > { %9387 = vmatprep.subr.mxu1 %v10256_v1  ;;  %9389 = vmatprep.mubr.msk.f32.mxu1 %vm10257_vm1, %v10256_v1 }
 0x30e   : > { %9388 = vmatpush3.msra.mxu1 %v10556_v57  ;;  %9399 = vmatpush3.msra.mxu0 %v10611_v3 }
 0x30f   : > { %9400 = vmatprep.mubr.msk.f32.mxu0 %vm10257_vm1, %v10256_v1  ;;  %9403 = vmatprep.subr.mxu1 %v10256_v1 }
 0x310   : > { %9414 = vmatprep.subr.mxu0 %v10256_v1 }
 0x3a5   : > { %v1244_v7 = vpop.f32.mrf.mxu0 }
 0x3a6   : > { %v1245_v15 = vadd.f32 %v1244_v7, %v1173_v12 }
 0x3a7   : > { %v9322_v8 = vpop.f32.mrf.mxu0 }
 0x3ad   : > { %v1315_v9 = vpop.f32.mrf.mxu0 }
 0x3ae   : > { %v1316_v25 = vadd.f32 %v1315_v9, %v1248_v22 }
 0x3af   : > { %v9327_v11 = vpop.f32.mrf.mxu0 }
 0x3b5   : > { %v1465_v14 = vpop.f32.mrf.mxu0 }
 0x3b6   : > { %v1466_v16 = vadd.f32 %v10683_v13, %v1465_v14  ;;  %v1386_v17 = vpop.f32.mrf.mxu1 }
 0x3b7   : > { %v9343_v18 = vpop.f32.mrf.mxu0  ;;  %v1387_v59 = vadd.f32 %v1386_v17, %v1319_v47 }
 0x3b8   : > { %v1621_v19 = vadd.f32 %v1466_v16, %v1245_v15  ;;  %v9332_v20 = vpop.f32.mrf.mxu1 }
 0x3ba   : > { %v8572_v21 = vmul.f32 -1.442695, %v1621_v19 }
 0x3bc   : > { %10132 = vpow2.f32 %v8572_v21 }
 0x3be   : > { %v1541_v24 = vpop.f32.mrf.mxu1 }
 0x3bf   : > { %v1542_v26 = vadd.f32 %v10691_v23, %v1541_v24 }
 0x3c0   : > { %v9354_v27 = vpop.f32.mrf.mxu1  ;;  %v1617_v28 = vpop.f32.mrf.mxu0 }
 0x3c1   : > { %v1628_v29 = vadd.f32 %v1542_v26, %v1316_v25  ;;  %v1618_v51 = vadd.f32 %v10701_v44, %v1617_v28 }
 0x3c2   : > { %v9365_v30 = vpop.f32.mrf.mxu0 }
 0x3c3   : > { %v8573_v31 = vmul.f32 -1.442695, %v1628_v29  ;;  %v1712_v32 = vpop.f32.mrf.mxu1 }
 0x3c5   : > { %v9370_v33 = vpop.f32.mrf.mxu1  ;;  %10134 = vpow2.f32 %v8573_v31 }
 0x3c6   : > { %v10694_v34 = vpop.f32.mrf.mxu0 }
 0x3c7   : > { %v10696_v35 = vpop.f32.mrf.mxu1 }
 0x3c8   : > { %v9380_v36 = vpop.f32.mrf.mxu0 }
 0x3c9   : > { %v10133_v37 = vpop.eup %10132  ;;  %v9375_v38 = vpop.f32.mrf.mxu1 }
 0x3ca   : > { %v1625_v39 = vadd.f32 1.0, %v10133_v37 }
 0x3cc   : > { %10136 = vrcp.f32 %v1625_v39 }
 0x3d2   : > { %v10135_v42 = vpop.eup %10134 }
 0x3d3   : > { %v1632_v49 = vadd.f32 1.0, %v10135_v42 }
 0x3d5   : > { %10138 = vrcp.f32 %v1632_v49 }
 0x3d9   : > { %v10137_v56 = vpop.eup %10136 }
 0x3da   : > { %v1635_v7 = vmul.f32 %v10137_v56, %v1618_v51 }
 0x3dc   : > { %v1636_v8 = vadd.f32 %v1635_v7, %v1387_v59 }
 0x3de   : > { %10140 = vtanh.f32 %v1636_v8 }
 0x3e2   : > { %v10139_v9 = vpop.eup %10138 }
 0x3e3   : > { %v1638_v11 = vsub.f32 1.0, %v10139_v9  ;;  %v1640_v15 = vmul.f32 0.0, %v10139_v9 }
 0x3eb   : > { %v10141_v12 = vpop.eup %10140 }
 0x3ec   : > { %v1639_v14 = vmul.f32 %v10141_v12, %v1638_v11 }
 0x3ee   : > { %v10706_v16 = vadd.f32 %v1640_v15, %v1639_v14 }
 0x3f0   : > { %9390 = vmatmul.mubr.msk.f32.vlgmr.msra.gmra.mxu1 %vm867_vm3, %v10706_v16  ;;  %9401 = vmatmul.mubr.msk.f32.vlgmr.msra.gmra.mxu0 %vm867_vm3, %v10706_v16 }
 0x3f1   : > { %9404 = vmatpush3.msra.mxu1 %v10573_v61  ;;  %9411 = vmatprep.mubr.msk.f32.mxu1 %vm10257_vm1, %v10256_v1 }
 0x3f2   : > { %9405 = vmatprep.subr.mxu1 %v10256_v1  ;;  %9415 = vmatpush3.msra.mxu0 %v10526_v52  ;;  %v10746_v52 = vsel %vm856_vm10, 1.0, %v10256_v1 }
 0x3f3   : > { %9406 = vmatpush3.msra.mxu1 %v10588_v63  ;;  %9416 = vmatprep.subr.mxu0 %v10256_v1  ;;  %v1787_v29 = vmul.f32 %v10544_v54, %v10746_v52  ;;  %v2329_v54 = vld [vmem:[%s12233_s27 + $0x18] sm:$0xff] }
 0x3f4   : > { %9407 = vmatprep.subr.mxu1 %v10256_v1  ;;  %9417 = vmatpush3.msra.mxu0 %v10535_v53  ;;  %v1642_v53 = vmul.f32 %v10500_v43, %v10746_v52 }
 0x3f5   : > { %9408 = vmatpush3.msra.mxu1 %v10602_v2  ;;  %9418 = vmatprep.subr.mxu0 %v10256_v1 }
 0x3f6   : > { %9409 = vmatprep.subr.mxu1 %v10256_v1  ;;  %9419 = vmatpush3.msra.mxu0 %v10549_v55 }
 0x3f7   : > { %9410 = vmatpush3.msra.mxu1 %v10618_v4  ;;  %9420 = vmatprep.subr.mxu0 %v10256_v1 }
 0x3f8   : > { %9412 = vmatmul.mubr.msk.f32.vlgmr.msra.gmra.mxu1 %vm867_vm3, %v10706_v16  ;;  %9425 = vmatprep.subr.mxu1 %v10256_v1 }
 0x3f9   : > { %9426 = vmatpush3.msra.mxu1 %v10568_v60  ;;  %9421 = vmatpush3.msra.mxu0 %v10556_v57  ;;  %v1713_v60 = vadd.f32 %v1712_v32, %v1642_v53  ;;  %v1855_v32 = vadd.f32 %v10694_v34, %v1787_v29  ;;  %v2457_v29 = vld [vmem:[%s12190_s13 + $0x10] sm:$0xff] }
 0x3fa   : > { %9427 = vmatprep.subr.mxu1 %v10256_v1  ;;  %9422 = vmatprep.mubr.msk.f32.mxu0 %vm10257_vm1, %v10256_v1 }
 0x3fb   : > { %9428 = vmatpush3.msra.mxu1 %v10583_v62  ;;  %9433 = vmatprep.mubr.msk.f32.mxu1 %vm10257_vm1, %v10256_v1 }
 0x3fc   : > { %9429 = vmatprep.subr.mxu1 %v10256_v1  ;;  %9436 = vmatprep.subr.mxu0 %v10256_v1 }
 0x3fd   : > { %9430 = vmatpush3.msra.mxu1 %v10597_v0 }
 0x3fe   : > { %9431 = vmatprep.subr.mxu1 %v10256_v1 }
 0x3ff   : > { %9432 = vmatpush3.msra.mxu1 %v10611_v3  ;;  %v1716_v3 = vmul.f32 %v10518_v48, %v10746_v52 }
 0x400   : > { %9447 = vmatprep.subr.mxu1 %v10256_v1 }
 0x401   : > { %v1784_v21 = vadd.f32 %v10696_v35, %v1716_v3 }
 0x4b0   : > { %v1927_v55 = vpop.f32.mrf.mxu1  ;;  %v1997_v57 = vpop.f32.mrf.mxu0 }
 0x4b1   : > { %v1928_v62 = vadd.f32 %v10683_v13, %v1927_v55  ;;  %v1998_v20 = vadd.f32 %v10691_v23, %v1997_v57 }
 0x4b2   : > { %v9391_v0 = vpop.f32.mrf.mxu1  ;;  %v9402_v17 = vpop.f32.mrf.mxu0 }
 0x4b3   : > { %v2071_v18 = vadd.f32 %v1928_v62, %v1713_v60  ;;  %v2078_v24 = vadd.f32 %v1998_v20, %v1784_v21 }
 0x4b5   : > { %v8580_v19 = vmul.f32 -1.442695, %v2071_v18  ;;  %v8581_v25 = vmul.f32 -1.442695, %v2078_v24 }
 0x4b7   : > { %10142 = vpow2.f32 %v8580_v19 }
 0x4b8   : > { %v2067_v22 = vpop.f32.mrf.mxu1  ;;  %10144 = vpow2.f32 %v8581_v25 }
 0x4b9   : > { %v2068_v30 = vadd.f32 %v10701_v44, %v2067_v22 }
 0x4ba   : > { %v9413_v43 = vpop.f32.mrf.mxu1 }
 0x4c4   : > { %v10143_v26 = vpop.eup %10142 }
 0x4c5   : > { %v2075_v27 = vadd.f32 1.0, %v10143_v26  ;;  %v10145_v28 = vpop.eup %10144 }
 0x4c6   : > { %v2082_v48 = vadd.f32 1.0, %v10145_v28  ;;  %v2458_v28 = vld [vmem:[%s12190_s13 + $0x18] sm:$0xff] }
 0x4c7   : > { %10146 = vrcp.f32 %v2075_v27 }
 0x4c8   : > { %10148 = vrcp.f32 %v2082_v48  ;;  %v8596_v48 = vld [vmem:[%s12190_s13 + $0x90] sm:$0xff] }
 0x4d4   : > { %v10147_v31 = vpop.eup %10146 }
 0x4d5   : > { %v2085_v33 = vmul.f32 %v10147_v31, %v2068_v30  ;;  %v10149_v36 = vpop.eup %10148  ;;  %v2456_v30 = vld [vmem:[%s12190_s13 + $0x8] sm:$0xff] }
 0x4d6   : > { %v2088_v37 = vsub.f32 1.0, %v10149_v36  ;;  %v2090_v42 = vmul.f32 %v10149_v36, %v10706_v16  ;;  %v8595_v31 = vld [vmem:[%s12190_s13 + $0x88] sm:$0xff] }
 0x4d7   : > { %v2086_v35 = vadd.f32 %v2085_v33, %v1855_v32  ;;  %v2455_v32 = vld [vmem:[%s12190_s13] sm:$0xff] }
 0x4d8   : > { %v8594_v33 = vld [vmem:[%s12190_s13 + $0x80] sm:$0xff] }
 0x4d9   : > { %10150 = vtanh.f32 %v2086_v35 }
 0x4e6   : > { %v10151_v38 = vpop.eup %10150 }
 0x4e7   : > { %v2089_v39 = vmul.f32 %v10151_v38, %v2088_v37 }
 0x4e9   : > { %v2091_v47 = vadd.f32 %v2090_v42, %v2089_v39 }
 0x4eb   : > { %9423 = vmatmul.mubr.msk.f32.vlgmr.msra.gmra.mxu0 %vm867_vm3, %v2091_v47  ;;  %9434 = vmatmul.mubr.msk.f32.vlgmr.msra.gmra.mxu1 %vm867_vm3, %v2091_v47 }
 0x4ec   : > { %9437 = vmatpush3.msra.mxu0 %v10573_v61  ;;  %9444 = vmatprep.mubr.msk.f32.mxu0 %vm10257_vm1, %v10256_v1  ;;  %v2328_v61 = vld [vmem:[%s12233_s27 + $0x10] sm:$0xff] }
 0x4ed   : > { %9438 = vmatprep.subr.mxu0 %v10256_v1  ;;  %9455 = vmatprep.mubr.msk.f32.mxu1 %vm10257_vm1, %v10256_v1 }
 0x4ee   : > { %9439 = vmatpush3.msra.mxu0 %v10588_v63  ;;  %9448 = vmatpush3.msra.mxu1 %v2329_v54  ;;  %v2327_v63 = vld [vmem:[%s12233_s27 + $0x8] sm:$0xff] }
 0x4ef   : > { %9440 = vmatprep.subr.mxu0 %v10256_v1  ;;  %9449 = vmatprep.subr.mxu1 %v10256_v1 }
 0x4f0   : > { %9441 = vmatpush3.msra.mxu0 %v10602_v2  ;;  %9450 = vmatpush3.msra.mxu1 %v2328_v61  ;;  %v2326_v2 = vld [vmem:[%s12233_s27] sm:$0xff] }
 0x4f1   : > { %9442 = vmatprep.subr.mxu0 %v10256_v1  ;;  %9451 = vmatprep.subr.mxu1 %v10256_v1  ;;  %v8589_v61 = vld [vmem:[%s12188_s11] ss:$0 sm:$0xff] }
 0x4f2   : > { %9443 = vmatpush3.msra.mxu0 %v10618_v4  ;;  %9452 = vmatpush3.msra.mxu1 %v2327_v63 }
 0x4f3   : > { %9445 = vmatmul.mubr.msk.f32.vlgmr.msra.gmra.mxu0 %vm867_vm3, %v2091_v47  ;;  %9458 = vmatprep.subr.mxu0 %v10256_v1 }
 0x4f4   : > { %9466 = vmatprep.mubr.msk.f32.mxu0 %vm10257_vm1, %v10256_v1  ;;  %9453 = vmatprep.subr.mxu1 %v10256_v1 }
 0x4f5   : > { %9454 = vmatpush3.msra.mxu1 %v2326_v2  ;;  %9459 = vmatpush3.msra.mxu0 %v2458_v28  ;;  %v8628_v28 = vld [vmem:[%s12190_s13 + $0x130] sm:$0xff] }
 0x4f6   : > { %9469 = vmatprep.subr.mxu1 %v10256_v1  ;;  %9460 = vmatprep.subr.mxu0 %v10256_v1 }
 0x4f7   : > { %9461 = vmatpush3.msra.mxu0 %v2457_v29  ;;  %v8626_v29 = vld [vmem:[%s12190_s13 + $0x120] sm:$0xff] }
 0x4f8   : > { %9462 = vmatprep.subr.mxu0 %v10256_v1 }
 0x4f9   : > { %9463 = vmatpush3.msra.mxu0 %v2456_v30 }
 0x4fa   : > { %9464 = vmatprep.subr.mxu0 %v10256_v1 }
 0x4fb   : > { %9465 = vmatpush3.msra.mxu0 %v2455_v32 }
 0x4fc   : > { %9480 = vmatprep.subr.mxu0 %v10256_v1 }
 0x5ab   : > { %v2161_v4 = vpop.f32.mrf.mxu0  ;;  %v2231_v34 = vpop.f32.mrf.mxu1 }
 0x5ac   : > { %v2162_v49 = vadd.f32 %v10683_v13, %v2161_v4  ;;  %v2232_v8 = vadd.f32 %v10691_v23, %v2231_v34  ;;  %v8590_v4 = vld [vmem:[%s12189_s12] ss:$0 sm:$0xff] }
 0x5ad   : > { %v9424_v51 = vpop.f32.mrf.mxu0  ;;  %v9435_v56 = vpop.f32.mrf.mxu1 }
 0x5ae   : > { %v2305_v59 = vadd.f32 %v2162_v49, %v10504_v45  ;;  %v2312_v11 = vadd.f32 %v2232_v8, %v10521_v50  ;;  %v8604_v51 = vld [vmem:[%s12190_s13 + $0x118] sm:$0xff]  ;;  %v8603_v56 = vld [vmem:[%s12190_s13 + $0x110] sm:$0xff]  ;;  %v8599_v8 = vld [vmem:[%s12191_s14 + $0x4] ss:$0 sm:$0xff] }
 0x5b0   : > { %v8585_v7 = vmul.f32 -1.442695, %v2305_v59  ;;  %v8586_v14 = vmul.f32 -1.442695, %v2312_v11  ;;  %v8602_v59 = vld [vmem:[%s12190_s13 + $0x108] sm:$0xff] }
 0x5b2   : > { %10152 = vpow2.f32 %v8585_v7  ;;  %v8601_v7 = vld [vmem:[%s12190_s13 + $0x100] sm:$0xff] }
 0x5b3   : > { %v2301_v9 = vpop.f32.mrf.mxu0  ;;  %10154 = vpow2.f32 %v8586_v14 }
 0x5b4   : > { %v2302_v13 = vadd.f32 %v10701_v44, %v2301_v9  ;;  %v8587_v44 = vld [vmem:[%s12187_s10] ss:$0 sm:$0xff] }
 0x5b5   : > { %v9446_v12 = vpop.f32.mrf.mxu0 }
 0x5b6   : > { %v8592_v12 = vld [vmem:[%s12191_s14] ss:$0 sm:$0xff] }
 0x5bf   : > { %v10153_v15 = vpop.eup %10152 }
 0x5c0   : > { %v2309_v16 = vadd.f32 1.0, %v10153_v15  ;;  %v10155_v53 = vpop.eup %10154 }
 0x5c1   : > { %v2316_v55 = vadd.f32 1.0, %v10155_v53 }
 0x5c2   : > { %10156 = vrcp.f32 %v2309_v16 }
 0x5c3   : > { %10158 = vrcp.f32 %v2316_v55  ;;  %v8606_v55 = vld [vmem:[%s12191_s14 + $0x8] ss:$0 sm:$0xff] }
 0x5cf   : > { %v10157_v57 = vpop.eup %10156 }
 0x5d0   : > { %v2319_v45 = vmul.f32 %v10157_v57, %v2302_v13  ;;  %v10159_v23 = vpop.eup %10158 }
 0x5d1   : > { %v2322_v62 = vsub.f32 1.0, %v10159_v23  ;;  %v2324_v17 = vmul.f32 %v10159_v23, %v2091_v47 }
 0x5d2   : > { %v2320_v60 = vadd.f32 %v2319_v45, %v10559_v58 }
 0x5d4   : > { %10160 = vtanh.f32 %v2320_v60 }
 0x5e1   : > { %v10161_v0 = vpop.eup %10160 }
 0x5e2   : > { %v2323_v50 = vmul.f32 %v10161_v0, %v2322_v62 }
 0x5e4   : > { %v2325_v3 = vadd.f32 %v2324_v17, %v2323_v50 }
 0x5e6   : > { %9456 = vmatmul.mubr.msk.f32.vlgmr.msra.gmra.mxu1 %vm867_vm3, %v2325_v3 }
 0x5e7   : > { %9477 = vmatprep.mubr.msk.f32.mxu1 %vm10257_vm1, %v10256_v1 }
 0x6a6   : > { %v2406_v18 = vpop.f32.mrf.mxu1 }
 0x6a7   : > { %v2407_v19 = vadd.f32 %v8587_v44, %v2406_v18 }
 0x6a8   : > { %v9457_v20 = vpop.f32.mrf.mxu1 }
 0x6a9   : > { %v2410_v58 = vmax.f32 %v2407_v19, 0.0 }
 0x6ab   : > { %v10806_v21 = vadd.f32 %v2410_v58, %v10420_v5  ;;  %v8597_v5 = vld [vmem:[%s12190_s13 + $0x98] sm:$0xff] }
 0x6ac   : > { %9470 = vmatpush3.msra.mxu1 %v8597_v5  ;;  %v8627_v5 = vld [vmem:[%s12190_s13 + $0x128] sm:$0xff] }
 0x6ad   : > { %v2414_v22 = vsel %vm867_vm3, %v10806_v21, 0.0  ;;  %9471 = vmatprep.subr.mxu1 %v10256_v1 }
 0x6ae   : > { %2415 = vadd.xlane.f32.xlu1 %v2414_v22  ;;  %9472 = vmatpush3.msra.mxu1 %v8596_v48  ;;  %v8622_v48 = vld [vmem:[%s12190_s13 + $0xb8] sm:$0xff] }
 0x6af   : > { %9473 = vmatprep.subr.mxu1 %v10256_v1 }
 0x6b0   : > { %9474 = vmatpush3.msra.mxu1 %v8595_v31  ;;  %v8621_v31 = vld [vmem:[%s12190_s13 + $0xb0] sm:$0xff] }
 0x6b1   : > { %9475 = vmatprep.subr.mxu1 %v10256_v1 }
 0x6b2   : > { %9476 = vmatpush3.msra.mxu1 %v8594_v33  ;;  %v8620_v33 = vld [vmem:[%s12190_s13 + $0xa8] sm:$0xff] }
 0x6b3   : > { %9491 = vmatprep.subr.mxu1 %v10256_v1 }
 0x737   : > { %v2416_v24 = vpop.xlane.xlu1 %2415 }
 0x738   : > { %v2417_v43 = vmul.f32 0.03125, %v2416_v24  ;;  %v8615_v24 = vld [vmem:[%s12190_s13 + $0x38] sm:$0xff] }
 0x73a   : > { %v2418_v25 = vsub.f32 %v10806_v21, %v2417_v43  ;;  %v8614_v43 = vld [vmem:[%s12190_s13 + $0x30] sm:$0xff] }
 0x73c   : > { %v2419_v26 = vmul.f32 %v2418_v25, %v2418_v25  ;;  %v2430_v63 = vmul.f32 %v8589_v61, %v2418_v25  ;;  %v8613_v25 = vld [vmem:[%s12190_s13 + $0x28] sm:$0xff] }
 0x73e   : > { %v2420_v27 = vsel %vm867_vm3, %v2419_v26, 0.0  ;;  %v8612_v26 = vld [vmem:[%s12190_s13 + $0x20] sm:$0xff] }
 0x73f   : > { %2421 = vadd.xlane.f32.xlu1 %v2420_v27  ;;  %v8629_v27 = vld [vmem:[%s12190_s13 + $0x138] sm:$0xff] }
 0x7c8   : > { %v2422_v35 = vpop.xlane.xlu1 %2421 }
 0x7c9   : > { %v2423_v36 = vmul.f32 0.032258064, %v2422_v35  ;;  %v8619_v35 = vld [vmem:[%s12190_s13 + $0xa0] sm:$0xff] }
 0x7cb   : > { %10162 = vrsqrt.f32 %v2423_v36  ;;  %vm2433_vm11 = vcmp.eq.f32.partialorder %v2423_v36, inf  ;;  %v2436_v39 = vand.u32 2147483648, %v2423_v36  ;;  %vm2435_vm12 = vcmp.eq.f32.partialorder %v2423_v36, 0.0 }
 0x7d8   : > { %v10163_v37 = vpop.eup %10162 }
 0x7d9   : > { %v2432_v38 = vmul.f32 %v10163_v37, %v2423_v36 }
 0x7db   : > { %v2434_v42 = vsel %vm2433_vm11, %v2423_v36, %v2432_v38 }
 0x7dc   : > { %v2437_v47 = vsel %vm2435_vm12, %v2436_v39, %v2434_v42 }
 0x7dd   : > { %v2438_v54 = vadd.f32 1e-06, %v2437_v47 }
 0x7df   : > { %10164 = vrcp.f32 %v2438_v54  ;;  %v8624_v54 = vld [vmem:[%s12191_s14 + $0x5] ss:$0 sm:$0xff] }
 0x7ec   : > { %v10165_v2 = vpop.eup %10164 }
 0x7ed   : > { %v2440_v34 = vmul.f32 %v10165_v2, %v2430_v63  ;;  %v8617_v63 = vld [vmem:[%s12191_s14 + $0x1] ss:$0 sm:$0xff] }
 0x7ef   : > { %v10850_v49 = vadd.f32 %v8590_v4, %v2440_v34  ;;  %v8631_v4 = vld [vmem:[%s12191_s14 + $0x9] ss:$0 sm:$0xff] }
 0x7f1   : > { %9467 = vmatmul.mubr.msk.f32.vlgmr.msra.gmra.mxu0 %vm867_vm3, %v10850_v49  ;;  %9478 = vmatmul.mubr.msk.f32.vlgmr.msra.gmra.mxu1 %vm867_vm3, %v10850_v49 }
 0x7f2   : > { %9481 = vmatpush3.msra.mxu0 %v8604_v51  ;;  %9488 = vmatprep.mubr.msk.f32.mxu0 %vm10257_vm1, %v10256_v1 }
 0x7f3   : > { %9482 = vmatprep.subr.mxu0 %v10256_v1  ;;  %9493 = vmatprep.mubr.msk.f32.mxu1 %vm10257_vm1, %v10256_v1 }
 0x7f4   : > { %9483 = vmatpush3.msra.mxu0 %v8603_v56 }
 0x7f5   : > { %9484 = vmatprep.subr.mxu0 %v10256_v1 }
 0x7f6   : > { %9485 = vmatpush3.msra.mxu0 %v8602_v59 }
 0x7f7   : > { %9486 = vmatprep.subr.mxu0 %v10256_v1 }
 0x7f8   : > { %9487 = vmatpush3.msra.mxu0 %v8601_v7 }
 0x7f9   : > { %9489 = vmatmul.mubr.msk.f32.vlgmr.msra.gmra.mxu0 %vm867_vm3, %v10850_v49  ;;  %9496 = vmatprep.subr.mxu0 %v10256_v1 }
 0x7fa   : > { %9498 = vmatprep.mubr.msk.f32.mxu0 %vm10257_vm1, %v10256_v1 }
 0x8b1   : > { %v2535_v9 = vpop.f32.mrf.mxu0  ;;  %v2618_v11 = vpop.f32.mrf.mxu1 }
 0x8b2   : > { %v2619_v14 = vadd.f32 %v8599_v8, %v2618_v11  ;;  %v2536_v53 = vadd.f32 %v8592_v12, %v2535_v9 }
 0x8b3   : > { %v9468_v15 = vpop.f32.mrf.mxu0  ;;  %v9479_v16 = vpop.f32.mrf.mxu1 }
 0x8b4   : > { %9492 = vmatpush3.xpose.msk.msra.mxu1 %vm1174_vm7, %v2619_v14 }
 0x8b5   : > { %9501 = vmatprep.subr.mxu1 %v10256_v1 }
 0x8b7   : > { %9494 = vmatmul.mubr.msk.f32.vlgmr.msra.gmra.mxu1 %vm1174_vm7, %v2536_v53 }
 0x8b8   : > { %9503 = vmatprep.mubr.msk.f32.mxu1 %vm10257_vm1, %v10256_v1  ;;  %9502 = vmatpush3.msra.mxu1 %v2867_v40  ;;  %v8647_v40 = vld [vmem:[%s12190_s13 + $0xd0] sm:$0xff] }
 0x8b9   : > { %v2701_v13 = vpop.f32.mrf.mxu0  ;;  %9517 = vmatprep.subr.mxu1 %v10256_v1 }
 0x8ba   : > { %v2702_v57 = vadd.f32 %v8606_v55, %v2701_v13  ;;  %v8636_v55 = vld [vmem:[%s12192_s15 + $0x8] sm:$0xff] }
 0x8bb   : > { %v9490_v45 = vpop.f32.mrf.mxu0 }
 0x8bc   : > { %9497 = vmatpush3.msra.mxu0 %v2702_v57 }
 0x8bd   : > { %9506 = vmatprep.subr.mxu0 %v10256_v1 }
 0x977   : > { %v2777_v23 = vpop.f32.mrf.mxu1 }
 0x978   : > { %v2781_v62 = vmul.f32 0.35355338, %v2777_v23  ;;  %v8641_v23 = vld [vmem:[%s12190_s13 + $0x58] sm:$0xff] }
 0x979   : > { %v9495_v0 = vpop.f32.mrf.mxu1 }
 0x97a   : > { %v2782_v50 = vsel %vm10897_vm13, %v2781_v62, -1e+30  ;;  %v8640_v62 = vld [vmem:[%s12190_s13 + $0x50] sm:$0xff]  ;;  %v8639_v0 = vld [vmem:[%s12190_s13 + $0x48] sm:$0xff] }
 0x97b   : > { %v2783_v17 = vsel %vm1174_vm7, %v2782_v50, -inf }
 0x97c   : > { %2784 = vmax.xlane.f32.xlu0 %v2783_v17  ;;  %v8655_v17 = vld [vmem:[%s12190_s13 + $0x158] sm:$0xff] }
 0xa05   : > { %v2785_v3 = vpop.xlane.xlu0 %2784 }
 0xa06   : > { %v2786_v44 = vsub.f32 %v2782_v50, %v2785_v3  ;;  %v8638_v50 = vld [vmem:[%s12190_s13 + $0x40] sm:$0xff]  ;;  %v8654_v3 = vld [vmem:[%s12190_s13 + $0x150] sm:$0xff] }
 0xa08   : > { %v2787_v18 = vmul.f32 1.442695, %v2786_v44  ;;  %v8653_v44 = vld [vmem:[%s12190_s13 + $0x148] sm:$0xff] }
 0xa0a   : > { %10166 = vpow2.f32 %v2787_v18  ;;  %v8652_v18 = vld [vmem:[%s12190_s13 + $0x140] sm:$0xff] }
 0xa17   : > { %v10167_v19 = vpop.eup %10166 }
 0xa18   : > { %v2789_v20 = vsel %vm1174_vm7, %v10167_v19, 0.0 }
 0xa19   : > { %2790 = vadd.xlane.f32.xlu1 %v2789_v20 }
 0xaa2   : > { %v2791_v41 = vpop.xlane.xlu1 %2790 }
 0xaa3   : > { %10168 = vrcp.f32 %v2791_v41 }
 0xab0   : > { %v10169_v58 = vpop.eup %10168 }
 0xab1   : > { %v2793_v22 = vmul.f32 %v10169_v58, %v10167_v19  ;;  %v8648_v19 = vld [vmem:[%s12190_s13 + $0xd8] sm:$0xff]  ;;  %v8646_v58 = vld [vmem:[%s12190_s13 + $0xc8] sm:$0xff] }
 0xab3   : > { %9499 = vmatmul.mubr.msk.f32.vlgmr.msra.gmra.mxu0 %vm1174_vm7, %v2793_v22  ;;  %v8645_v22 = vld [vmem:[%s12190_s13 + $0xc0] sm:$0xff] }
 0xab4   : > { %9507 = vmatpush3.msra.mxu0 %v8615_v24  ;;  %9514 = vmatprep.mubr.msk.f32.mxu0 %vm10257_vm1, %v10256_v1 }
 0xab5   : > { %9508 = vmatprep.subr.mxu0 %v10256_v1 }
 0xab6   : > { %9509 = vmatpush3.msra.mxu0 %v8614_v43 }
 0xab7   : > { %9510 = vmatprep.subr.mxu0 %v10256_v1 }
 0xab8   : > { %9511 = vmatpush3.msra.mxu0 %v8613_v25 }
 0xab9   : > { %9512 = vmatprep.subr.mxu0 %v10256_v1 }
 0xaba   : > { %9513 = vmatpush3.msra.mxu0 %v8612_v26 }
 0xabb   : > { %9515 = vmatmul.mubr.msk.f32.vlgmr.msra.gmra.mxu0 %vm867_vm3, %v10850_v49  ;;  %9528 = vmatprep.subr.mxu0 %v10256_v1 }
 0xabc   : > { %9529 = vmatpush3.msra.mxu0 %v8629_v27  ;;  %9536 = vmatprep.mubr.msk.f32.mxu0 %vm10257_vm1, %v10256_v1  ;;  %v8591_v27 = vld [vmem:[%s12193_s16] ss:$0 sm:$0xff] }
 0xabd   : > { %9530 = vmatprep.subr.mxu0 %v10256_v1 }
 0xabe   : > { %9531 = vmatpush3.msra.mxu0 %v8628_v28 }
 0xabf   : > { %9532 = vmatprep.subr.mxu0 %v10256_v1 }
 0xac0   : > { %9533 = vmatpush3.msra.mxu0 %v8627_v5 }
 0xac1   : > { %9534 = vmatprep.subr.mxu0 %v10256_v1 }
 0xac2   : > { %9535 = vmatpush3.msra.mxu0 %v8626_v29 }
 0xac3   : > { %9537 = vmatmul.mubr.msk.f32.vlgmr.msra.gmra.mxu0 %vm867_vm3, %v10850_v49  ;;  %9549 = vmatprep.subr.mxu0 %v10256_v1 }
 0xac4   : > { %9551 = vmatprep.mubr.msk.f32.mxu0 %vm10257_vm1, %v10256_v1  ;;  %9550 = vmatpush3.msra.mxu0 %v8636_v55  ;;  %v8678_v55 = vld [vmem:[%s12190_s13 + $0x160] sm:$0xff] }
 0xac5   : > { %9565 = vmatprep.subr.mxu0 %v10256_v1 }
 0xb73   : > { %v2863_v30 = vpop.f32.mrf.mxu0 }
 0xb74   : > { %9504 = vmatmul.mubr.msk.f32.vlgmr.msra.gmra.mxu1 %vm1174_vm7, %v2863_v30  ;;  %v8650_v30 = vld [vmem:[%s12191_s14 + $0x6] ss:$0 sm:$0xff] }
 0xb75   : > { %9518 = vmatpush3.msra.mxu1 %v8622_v48  ;;  %v9500_v32 = vpop.f32.mrf.mxu0  ;;  %9525 = vmatprep.mubr.msk.f32.mxu1 %vm10257_vm1, %v10256_v1 }
 0xb76   : > { %9519 = vmatprep.subr.mxu1 %v10256_v1  ;;  %v8643_v32 = vld [vmem:[%s12191_s14 + $0x2] ss:$0 sm:$0xff] }
 0xb77   : > { %9520 = vmatpush3.msra.mxu1 %v8621_v31 }
 0xb78   : > { %9521 = vmatprep.subr.mxu1 %v10256_v1 }
 0xb79   : > { %9522 = vmatpush3.msra.mxu1 %v8620_v33 }
 0xb7a   : > { %9523 = vmatprep.subr.mxu1 %v10256_v1 }
 0xb7b   : > { %v3021_v36 = vpop.f32.mrf.mxu0  ;;  %9524 = vmatpush3.msra.mxu1 %v8619_v35  ;;  %v8657_v35 = vld [vmem:[%s12191_s14 + $0xa] ss:$0 sm:$0xff] }
 0xb7c   : > { %9526 = vmatmul.mubr.msk.f32.vlgmr.msra.gmra.mxu1 %vm867_vm3, %v10850_v49  ;;  %9539 = vmatprep.subr.mxu1 %v10256_v1  ;;  %v3022_v51 = vadd.f32 %v8617_v63, %v3021_v36 }
 0xb7d   : > { %v9516_v37 = vpop.f32.mrf.mxu0  ;;  %9541 = vmatprep.mubr.msk.f32.mxu1 %vm10257_vm1, %v10256_v1 }
 0xb83   : > { %v3187_v38 = vpop.f32.mrf.mxu0 }
 0xb84   : > { %v3188_v56 = vadd.f32 %v8631_v4, %v3187_v38 }
 0xb85   : > { %v9538_v39 = vpop.f32.mrf.mxu0 }
 0xc34   : > { %v10975_v42 = vpop.f32.mrf.mxu1 }
 0xc35   : > { %v2941_v28 = vadd.f32 %v8591_v27, %v10975_v42 }
 0xc36   : > { %v9505_v47 = vpop.f32.mrf.mxu1 }
 0xc3c   : > { %v3104_v61 = vpop.f32.mrf.mxu1 }
 0xc3d   : > { %v3105_v2 = vadd.f32 %v8624_v54, %v3104_v61 }
 0xc3e   : > { %v9527_v34 = vpop.f32.mrf.mxu1 }
 0xc3f   : > { %9540 = vmatpush3.xpose.msk.msra.mxu1 %vm1174_vm7, %v3105_v2 }
 0xc40   : > { %9544 = vmatprep.subr.mxu1 %v10256_v1 }
 0xc42   : > { %9542 = vmatmul.mubr.msk.f32.vlgmr.msra.gmra.mxu1 %vm1174_vm7, %v3022_v51 }
 0xc43   : > { %9545 = vmatpush3.msra.mxu1 %v3188_v56  ;;  %9546 = vmatprep.mubr.msk.f32.mxu1 %vm10257_vm1, %v10256_v1  ;;  %v8662_v56 = vld [vmem:[%s12192_s15 + $0x10] sm:$0xff] }
 0xc44   : > { %9554 = vmatprep.subr.mxu1 %v10256_v1 }
 0xd02   : > { %v3263_v59 = vpop.f32.mrf.mxu1 }
 0xd03   : > { %v3267_v7 = vmul.f32 0.35355338, %v3263_v59 }
 0xd04   : > { %v9543_v8 = vpop.f32.mrf.mxu1 }
 0xd05   : > { %v3268_v9 = vsel %vm10897_vm13, %v3267_v7, -1e+30 }
 0xd06   : > { %v3269_v11 = vsel %vm1174_vm7, %v3268_v9, -inf }
 0xd07   : > { %3270 = vmax.xlane.f32.xlu0 %v3269_v11  ;;  %v8666_v11 = vld [vmem:[%s12190_s13 + $0x70] sm:$0xff] }
 0xd90   : > { %v3271_v12 = vpop.xlane.xlu0 %3270 }
 0xd91   : > { %v3272_v14 = vsub.f32 %v3268_v9, %v3271_v12  ;;  %v8667_v9 = vld [vmem:[%s12190_s13 + $0x78] sm:$0xff]  ;;  %v8665_v12 = vld [vmem:[%s12190_s13 + $0x68] sm:$0xff] }
 0xd93   : > { %v3273_v15 = vmul.f32 1.442695, %v3272_v14  ;;  %v8664_v14 = vld [vmem:[%s12190_s13 + $0x60] sm:$0xff] }
 0xd95   : > { %10170 = vpow2.f32 %v3273_v15  ;;  %v8681_v15 = vld [vmem:[%s12190_s13 + $0x178] sm:$0xff] }
 0xda2   : > { %v10171_v16 = vpop.eup %10170 }
 0xda3   : > { %v3275_v53 = vsel %vm1174_vm7, %v10171_v16, 0.0 }
 0xda4   : > { %3276 = vadd.xlane.f32.xlu1 %v3275_v53  ;;  %v8679_v53 = vld [vmem:[%s12190_s13 + $0x168] sm:$0xff] }
 0xe2d   : > { %v3277_v13 = vpop.xlane.xlu1 %3276 }
 0xe2e   : > { %10172 = vrcp.f32 %v3277_v13  ;;  %v8674_v13 = vld [vmem:[%s12190_s13 + $0xf8] sm:$0xff] }
 0xe3b   : > { %v10173_v57 = vpop.eup %10172 }
 0xe3c   : > { %v3279_v45 = vmul.f32 %v10173_v57, %v10171_v16  ;;  %v8680_v16 = vld [vmem:[%s12190_s13 + $0x170] sm:$0xff] }
 0xe3e   : > { %9547 = vmatmul.mubr.msk.f32.vlgmr.msra.gmra.mxu1 %vm1174_vm7, %v3279_v45  ;;  %v8673_v45 = vld [vmem:[%s12190_s13 + $0xf0] sm:$0xff] }
 0xe3f   : > { %9555 = vmatpush3.msra.mxu1 %v8641_v23  ;;  %9562 = vmatprep.mubr.msk.f32.mxu1 %vm10257_vm1, %v10256_v1 }
 0xe40   : > { %9556 = vmatprep.subr.mxu1 %v10256_v1 }
 0xe41   : > { %9557 = vmatpush3.msra.mxu1 %v8640_v62  ;;  %v8672_v62 = vld [vmem:[%s12190_s13 + $0xe8] sm:$0xff] }
 0xe42   : > { %9558 = vmatprep.subr.mxu1 %v10256_v1 }
 0xe43   : > { %9559 = vmatpush3.msra.mxu1 %v8639_v0  ;;  %v8671_v0 = vld [vmem:[%s12190_s13 + $0xe0] sm:$0xff] }
 0xe44   : > { %9560 = vmatprep.subr.mxu1 %v10256_v1 }
 0xe45   : > { %9561 = vmatpush3.msra.mxu1 %v8638_v50 }
 0xe46   : > { %9563 = vmatmul.mubr.msk.f32.vlgmr.msra.gmra.mxu1 %vm867_vm3, %v10850_v49  ;;  %9576 = vmatprep.subr.mxu1 %v10256_v1 }
 0xe47   : > { %9577 = vmatpush3.msra.mxu1 %v8655_v17  ;;  %9584 = vmatprep.mubr.msk.f32.mxu1 %vm10257_vm1, %v10256_v1 }
 0xe48   : > { %9578 = vmatprep.subr.mxu1 %v10256_v1 }
 0xe49   : > { %9579 = vmatpush3.msra.mxu1 %v8654_v3 }
 0xe4a   : > { %9580 = vmatprep.subr.mxu1 %v10256_v1 }
 0xe4b   : > { %9581 = vmatpush3.msra.mxu1 %v8653_v44 }
 0xe4c   : > { %9582 = vmatprep.subr.mxu1 %v10256_v1 }
 0xe4d   : > { %9583 = vmatpush3.msra.mxu1 %v8652_v18 }
 0xe4e   : > { %9585 = vmatmul.mubr.msk.f32.vlgmr.msra.gmra.mxu1 %vm867_vm3, %v10850_v49  ;;  %9597 = vmatprep.subr.mxu1 %v10256_v1 }
 0xe4f   : > { %9599 = vmatprep.mubr.msk.f32.mxu1 %vm10257_vm1, %v10256_v1  ;;  %9598 = vmatpush3.msra.mxu1 %v8662_v56 }
 0xe50   : > { %9613 = vmatprep.subr.mxu1 %v10256_v1 }
 0xefe   : > { %v3349_v20 = vpop.f32.mrf.mxu1 }
 0xeff   : > { %9552 = vmatmul.mubr.msk.f32.vlgmr.msra.gmra.mxu0 %vm1174_vm7, %v3349_v20 }
 0xf00   : > { %9566 = vmatpush3.msra.mxu0 %v8648_v19  ;;  %v9548_v41 = vpop.f32.mrf.mxu1  ;;  %9573 = vmatprep.mubr.msk.f32.mxu0 %vm10257_vm1, %v10256_v1 }
 0xf01   : > { %9567 = vmatprep.subr.mxu0 %v10256_v1 }
 0xf02   : > { %9568 = vmatpush3.msra.mxu0 %v8647_v40  ;;  %v8676_v40 = vld [vmem:[%s12191_s14 + $0x7] ss:$0 sm:$0xff] }
 0xf03   : > { %9569 = vmatprep.subr.mxu0 %v10256_v1 }
 0xf04   : > { %9570 = vmatpush3.msra.mxu0 %v8646_v58 }
 0xf05   : > { %9571 = vmatprep.subr.mxu0 %v10256_v1 }
 0xf06   : > { %v3508_v24 = vpop.f32.mrf.mxu1  ;;  %9572 = vmatpush3.msra.mxu0 %v8645_v22  ;;  %v8683_v22 = vld [vmem:[%s12191_s14 + $0xb] ss:$0 sm:$0xff] }
 0xf07   : > { %9574 = vmatmul.mubr.msk.f32.vlgmr.msra.gmra.mxu0 %vm867_vm3, %v10850_v49  ;;  %9587 = vmatprep.subr.mxu0 %v10256_v1  ;;  %v3509_v37 = vadd.f32 %v8643_v32, %v3508_v24 }
 0xf08   : > { %v9564_v43 = vpop.f32.mrf.mxu1  ;;  %9589 = vmatprep.mubr.msk.f32.mxu0 %vm10257_vm1, %v10256_v1 }
 0xf0e   : > { %v3674_v25 = vpop.f32.mrf.mxu1 }
 0xf0f   : > { %v3675_v38 = vadd.f32 %v8657_v35, %v3674_v25  ;;  %v8688_v35 = vld [vmem:[%s12192_s15 + $0x18] sm:$0xff] }
 0xf10   : > { %v9586_v26 = vpop.f32.mrf.mxu1 }
 0xfbf   : > { %v3424_v5 = vpop.f32.mrf.mxu0 }
 0xfc0   : > { %v11070_v29 = vadd.f32 %v3424_v5, %v2941_v28 }
 0xfc1   : > { %v9553_v48 = vpop.f32.mrf.mxu0 }
 0xfc7   : > { %v3591_v31 = vpop.f32.mrf.mxu0 }
 0xfc8   : > { %v3592_v33 = vadd.f32 %v8650_v30, %v3591_v31 }
 0xfc9   : > { %v9575_v36 = vpop.f32.mrf.mxu0 }
 0xfca   : > { %9588 = vmatpush3.xpose.msk.msra.mxu0 %vm1174_vm7, %v3592_v33 }
 0xfcb   : > { %9592 = vmatprep.subr.mxu0 %v10256_v1 }
 0xfcd   : > { %9590 = vmatmul.mubr.msk.f32.vlgmr.msra.gmra.mxu0 %vm1174_vm7, %v3509_v37 }
 0xfce   : > { %9593 = vmatpush3.msra.mxu0 %v3675_v38  ;;  %9594 = vmatprep.mubr.msk.f32.mxu0 %vm10257_vm1, %v10256_v1 }
 0xfcf   : > { %9602 = vmatprep.subr.mxu0 %v10256_v1 }
0x108d   : > { %v3750_v39 = vpop.f32.mrf.mxu0 }
0x108e   : > { %v3754_v42 = vmul.f32 0.35355338, %v3750_v39 }
0x108f   : > { %v9591_v47 = vpop.f32.mrf.mxu0 }
0x1090   : > { %v3755_v54 = vsel %vm10897_vm13, %v3754_v42, -1e+30 }
0x1091   : > { %v3756_v61 = vsel %vm1174_vm7, %v3755_v54, -inf }
0x1092   : > { %3757 = vmax.xlane.f32.xlu0 %v3756_v61 }
0x111b   : > { %v3758_v63 = vpop.xlane.xlu0 %3757 }
0x111c   : > { %v3759_v2 = vsub.f32 %v3755_v54, %v3758_v63 }
0x111e   : > { %v3760_v4 = vmul.f32 1.442695, %v3759_v2 }
0x1120   : > { %10174 = vpow2.f32 %v3760_v4 }
0x112d   : > { %v10175_v34 = vpop.eup %10174 }
0x112e   : > { %v3762_v51 = vsel %vm1174_vm7, %v10175_v34, 0.0 }
0x112f   : > { %3763 = vadd.xlane.f32.xlu1 %v3762_v51 }
0x11b8   : > { %v3764_v59 = vpop.xlane.xlu1 %3763 }
0x11b9   : > { %10176 = vrcp.f32 %v3764_v59 }
0x11c6   : > { %v10177_v7 = vpop.eup %10176 }
0x11c7   : > { %v3766_v8 = vmul.f32 %v10177_v7, %v10175_v34  ;;  %v4442_v7 = vld [vmem:[%s12196_s19 + $0x10] sm:$0xff] }
0x11c9   : > { %9595 = vmatmul.mubr.msk.f32.vlgmr.msra.gmra.mxu0 %vm1174_vm7, %v3766_v8  ;;  %v4441_v8 = vld [vmem:[%s12196_s19 + $0x8] sm:$0xff] }
0x11ca   : > { %9603 = vmatpush3.msra.mxu0 %v8667_v9  ;;  %9610 = vmatprep.mubr.msk.f32.mxu0 %vm10257_vm1, %v10256_v1  ;;  %v4440_v9 = vld [vmem:[%s12196_s19] sm:$0xff] }
0x11cb   : > { %9604 = vmatprep.subr.mxu0 %v10256_v1 }
0x11cc   : > { %9605 = vmatpush3.msra.mxu0 %v8666_v11  ;;  %v4540_v11 = vld [vmem:[%s12198_s21 + $0x78] sm:$0xff] }
0x11cd   : > { %9606 = vmatprep.subr.mxu0 %v10256_v1 }
0x11ce   : > { %9607 = vmatpush3.msra.mxu0 %v8665_v12  ;;  %v4539_v12 = vld [vmem:[%s12198_s21 + $0x70] sm:$0xff] }
0x11cf   : > { %9608 = vmatprep.subr.mxu0 %v10256_v1 }
0x11d0   : > { %9609 = vmatpush3.msra.mxu0 %v8664_v14  ;;  %v4538_v14 = vld [vmem:[%s12198_s21 + $0x68] sm:$0xff] }
0x11d1   : > { %9611 = vmatmul.mubr.msk.f32.vlgmr.msra.gmra.mxu0 %vm867_vm3, %v10850_v49  ;;  %9624 = vmatprep.subr.mxu0 %v10256_v1 }
0x11d2   : > { %9625 = vmatpush3.msra.mxu0 %v8681_v15  ;;  %9632 = vmatprep.mubr.msk.f32.mxu0 %vm10257_vm1, %v10256_v1  ;;  %v4537_v15 = vld [vmem:[%s12198_s21 + $0x60] sm:$0xff] }
0x11d3   : > { %9626 = vmatprep.subr.mxu0 %v10256_v1 }
0x11d4   : > { %9627 = vmatpush3.msra.mxu0 %v8680_v16  ;;  %v4536_v16 = vld [vmem:[%s12198_s21 + $0x58] sm:$0xff] }
0x11d5   : > { %9628 = vmatprep.subr.mxu0 %v10256_v1 }
0x11d6   : > { %9629 = vmatpush3.msra.mxu0 %v8679_v53  ;;  %v4535_v53 = vld [vmem:[%s12198_s21 + $0x50] sm:$0xff] }
0x11d7   : > { %9630 = vmatprep.subr.mxu0 %v10256_v1 }
0x11d8   : > { %9631 = vmatpush3.msra.mxu0 %v8678_v55  ;;  %v4534_v55 = vld [vmem:[%s12198_s21 + $0x48] sm:$0xff] }
0x11d9   : > { %9633 = vmatmul.mubr.msk.f32.vlgmr.msra.gmra.mxu0 %vm867_vm3, %v10850_v49  ;;  %9645 = vmatprep.subr.mxu0 %v10256_v1 }
0x11da   : > { %9647 = vmatprep.mubr.msk.f32.mxu0 %vm10257_vm1, %v10256_v1  ;;  %9646 = vmatpush3.msra.mxu0 %v8688_v35 }
0x11db   : > { %9661 = vmatprep.subr.mxu0 %v10256_v1 }
0x1289   : > { %v3836_v57 = vpop.f32.mrf.mxu0 }
0x128a   : > { %9600 = vmatmul.mubr.msk.f32.vlgmr.msra.gmra.mxu1 %vm1174_vm7, %v3836_v57  ;;  %v4532_v57 = vld [vmem:[%s12198_s21 + $0x38] sm:$0xff] }
0x128b   : > { %9614 = vmatpush3.msra.mxu1 %v8674_v13  ;;  %v9596_v23 = vpop.f32.mrf.mxu0  ;;  %9621 = vmatprep.mubr.msk.f32.mxu1 %vm10257_vm1, %v10256_v1  ;;  %v4533_v13 = vld [vmem:[%s12198_s21 + $0x40] sm:$0xff] }
0x128c   : > { %9615 = vmatprep.subr.mxu1 %v10256_v1  ;;  %v4530_v23 = vld [vmem:[%s12198_s21 + $0x28] sm:$0xff] }
0x128d   : > { %9616 = vmatpush3.msra.mxu1 %v8673_v45  ;;  %v4531_v45 = vld [vmem:[%s12198_s21 + $0x30] sm:$0xff] }
0x128e   : > { %9617 = vmatprep.subr.mxu1 %v10256_v1 }
0x128f   : > { %9618 = vmatpush3.msra.mxu1 %v8672_v62  ;;  %v4529_v62 = vld [vmem:[%s12198_s21 + $0x20] sm:$0xff] }
0x1290   : > { %9619 = vmatprep.subr.mxu1 %v10256_v1 }
0x1291   : > { %v3995_v50 = vpop.f32.mrf.mxu0  ;;  %9620 = vmatpush3.msra.mxu1 %v8671_v0  ;;  %v4528_v0 = vld [vmem:[%s12198_s21 + $0x18] sm:$0xff] }
0x1292   : > { %9622 = vmatmul.mubr.msk.f32.vlgmr.msra.gmra.mxu1 %vm867_vm3, %v10850_v49  ;;  %9635 = vmatprep.subr.mxu1 %v10256_v1  ;;  %v8669_v49 = vld [vmem:[%s12191_s14 + $0x3] ss:$0 sm:$0xff] }
0x1293   : > { %v9612_v17 = vpop.f32.mrf.mxu0  ;;  %9637 = vmatprep.mubr.msk.f32.mxu1 %vm10257_vm1, %v10256_v1  ;;  %v3996_v43 = vadd.f32 %v8669_v49, %v3995_v50 }
0x1299   : > { %v4161_v3 = vpop.f32.mrf.mxu0 }
0x129a   : > { %v4162_v25 = vadd.f32 %v8683_v22, %v4161_v3  ;;  %v8691_v22 = vld [vmem:[%s12195_s18] ss:$0 sm:$0xff] }
0x129b   : > { %v9634_v44 = vpop.f32.mrf.mxu0 }
0x134a   : > { %v3911_v18 = vpop.f32.mrf.mxu1 }
0x134b   : > { %v3915_v19 = vadd.f32 %v3911_v18, %v11070_v29 }
0x134c   : > { %v9601_v20 = vpop.f32.mrf.mxu1 }
0x1352   : > { %v4078_v41 = vpop.f32.mrf.mxu1 }
0x1353   : > { %v4079_v58 = vadd.f32 %v8676_v40, %v4078_v41  ;;  %v8690_v41 = vld [vmem:[%s12194_s17] ss:$0 sm:$0xff] }
0x1354   : > { %v9623_v24 = vpop.f32.mrf.mxu1 }
0x1355   : > { %9636 = vmatpush3.xpose.msk.msra.mxu1 %vm1174_vm7, %v4079_v58 }
0x1356   : > { %9640 = vmatprep.subr.mxu1 %v10256_v1 }
0x1358   : > { %9638 = vmatmul.mubr.msk.f32.vlgmr.msra.gmra.mxu1 %vm1174_vm7, %v3996_v43 }
0x1359   : > { %9641 = vmatpush3.msra.mxu1 %v4162_v25  ;;  %9642 = vmatprep.mubr.msk.f32.mxu1 %vm10257_vm1, %v10256_v1  ;;  %v4527_v25 = vld [vmem:[%s12198_s21 + $0x10] sm:$0xff] }
0x135a   : > { %9650 = vmatprep.subr.mxu1 %v10256_v1 }
0x1418   : > { %v4237_v26 = vpop.f32.mrf.mxu1 }
0x1419   : > { %v4241_v27 = vmul.f32 0.35355338, %v4237_v26  ;;  %v4526_v26 = vld [vmem:[%s12198_s21 + $0x8] sm:$0xff] }
0x141a   : > { %v9639_v28 = vpop.f32.mrf.mxu1 }
0x141b   : > { %v4242_v5 = vsel %vm10897_vm13, %v4241_v27, -1e+30  ;;  %v4525_v27 = vld [vmem:[%s12198_s21] sm:$0xff] }
0x141c   : > { %v4243_v29 = vsel %vm1174_vm7, %v4242_v5, -inf  ;;  %v8692_v28 = vld [vmem:[%s12197_s20] ss:$0 sm:$0xff] }
0x141d   : > { %4244 = vmax.xlane.f32.xlu0 %v4243_v29 }
0x14a6   : > { %v4245_v48 = vpop.xlane.xlu0 %4244 }
0x14a7   : > { %v4246_v30 = vsub.f32 %v4242_v5, %v4245_v48 }
0x14a9   : > { %v4247_v31 = vmul.f32 1.442695, %v4246_v30 }
0x14ab   : > { %10178 = vpow2.f32 %v4247_v31  ;;  %v8694_v31 = vld [vmem:[%s12199_s22] ss:$0 sm:$0xff] }
0x14b8   : > { %v10179_v32 = vpop.eup %10178 }
0x14b9   : > { %v4249_v33 = vsel %vm1174_vm7, %v10179_v32, 0.0 }
0x14ba   : > { %4250 = vadd.xlane.f32.xlu1 %v4249_v33 }
0x1543   : > { %v4251_v36 = vpop.xlane.xlu1 %4250 }
0x1544   : > { %10180 = vrcp.f32 %v4251_v36 }
0x1551   : > { %v10181_v37 = vpop.eup %10180 }
0x1552   : > { %v4253_v38 = vmul.f32 %v10181_v37, %v10179_v32 }
0x1554   : > { %9643 = vmatmul.mubr.msk.f32.vlgmr.msra.gmra.mxu1 %vm1174_vm7, %v4253_v38 }
0x1555   : > { %9658 = vmatprep.mubr.msk.f32.mxu1 %vm10257_vm1, %v10256_v1 }
0x1614   : > { %v4323_v39 = vpop.f32.mrf.mxu1 }
0x1615   : > { %9648 = vmatmul.mubr.msk.f32.vlgmr.msra.gmra.mxu0 %vm1174_vm7, %v4323_v39 }
0x1616   : > { %v9644_v42 = vpop.f32.mrf.mxu1  ;;  %9693 = vmatprep.mubr.msk.f32.mxu0 %vm10257_vm1, %v10256_v1  ;;  %9662 = vmatpush3.msra.mxu0 %v4540_v11  ;;  %v8697_v11 = vld [vmem:[%s12228_s9 + $0x1] ss:$0 sm:$0xff] }
0x1617   : > { %9663 = vmatprep.subr.mxu0 %v10256_v1 }
0x1618   : > { %9664 = vmatpush3.msra.mxu0 %v4539_v12 }
0x1619   : > { %9665 = vmatprep.subr.mxu0 %v10256_v1 }
0x161a   : > { %9666 = vmatpush3.msra.mxu0 %v4538_v14 }
0x161b   : > { %9667 = vmatprep.subr.mxu0 %v10256_v1 }
0x161c   : > { %9668 = vmatpush3.msra.mxu0 %v4537_v15  ;;  %v8698_v15 = vld [vmem:[%s12229_s30 + $0x1] ss:$0 sm:$0xff] }
0x161d   : > { %9669 = vmatprep.subr.mxu0 %v10256_v1 }
0x161e   : > { %9670 = vmatpush3.msra.mxu0 %v4536_v16 }
0x161f   : > { %9671 = vmatprep.subr.mxu0 %v10256_v1 }
0x1620   : > { %9672 = vmatpush3.msra.mxu0 %v4535_v53 }
0x1621   : > { %9673 = vmatprep.subr.mxu0 %v10256_v1 }
0x1622   : > { %9674 = vmatpush3.msra.mxu0 %v4534_v55  ;;  %v8706_v55 = vld [vmem:[%s12227_s6 + $0x98] sm:$0xff] }
0x1623   : > { %9675 = vmatprep.subr.mxu0 %v10256_v1 }
0x1624   : > { %9676 = vmatpush3.msra.mxu0 %v4533_v13  ;;  %v8705_v13 = vld [vmem:[%s12227_s6 + $0x90] sm:$0xff] }
0x1625   : > { %9677 = vmatprep.subr.mxu0 %v10256_v1 }
0x1626   : > { %9678 = vmatpush3.msra.mxu0 %v4532_v57  ;;  %v8704_v57 = vld [vmem:[%s12227_s6 + $0x88] sm:$0xff] }
0x1627   : > { %9679 = vmatprep.subr.mxu0 %v10256_v1 }
0x1628   : > { %9680 = vmatpush3.msra.mxu0 %v4531_v45  ;;  %v8703_v45 = vld [vmem:[%s12227_s6 + $0x80] sm:$0xff] }
0x1629   : > { %9681 = vmatprep.subr.mxu0 %v10256_v1 }
0x162a   : > { %9682 = vmatpush3.msra.mxu0 %v4530_v23  ;;  %v8710_v23 = vld [vmem:[%s12227_s6 + $0xb8] sm:$0xff] }
0x162b   : > { %9683 = vmatprep.subr.mxu0 %v10256_v1 }
0x162c   : > { %9684 = vmatpush3.msra.mxu0 %v4529_v62  ;;  %v8709_v62 = vld [vmem:[%s12227_s6 + $0xb0] sm:$0xff] }
0x162d   : > { %9685 = vmatprep.subr.mxu0 %v10256_v1 }
0x162e   : > { %9686 = vmatpush3.msra.mxu0 %v4528_v0  ;;  %v8708_v0 = vld [vmem:[%s12227_s6 + $0xa8] sm:$0xff] }
0x162f   : > { %9687 = vmatprep.subr.mxu0 %v10256_v1 }
0x1630   : > { %9688 = vmatpush3.msra.mxu0 %v4527_v25  ;;  %v11425_v25 = vld [vmem:[%s12231_s4 + $0x60] sm:$0xff] }
0x1631   : > { %9689 = vmatprep.subr.mxu0 %v10256_v1 }
0x1632   : > { %9690 = vmatpush3.msra.mxu0 %v4526_v26 }
0x1633   : > { %9691 = vmatprep.subr.mxu0 %v10256_v1 }
0x1634   : > { %9692 = vmatpush3.msra.mxu0 %v4525_v27 }
0x1635   : > { %9734 = vmatprep.subr.mxu0 %v10256_v1 }
0x16d5   : > { %v4398_v47 = vpop.f32.mrf.mxu0 }
0x16d6   : > { %v4402_v54 = vadd.f32 %v4398_v47, %v3915_v19 }
0x16d7   : > { %v9649_v61 = vpop.f32.mrf.mxu0 }
0x16d8   : > { %v11192_v63 = vadd.f32 %v4402_v54, %v10806_v21  ;;  %v4443_v21 = vld [vmem:[%s12196_s19 + $0x18] sm:$0xff] }
0x16d9   : > { %9651 = vmatpush3.msra.mxu1 %v4443_v21  ;;  %v8702_v61 = vld [vmem:[%s12227_s6 + $0x78] sm:$0xff] }
0x16da   : > { %v4406_v2 = vsel %vm867_vm3, %v11192_v63, 0.0  ;;  %9652 = vmatprep.subr.mxu1 %v10256_v1 }
0x16db   : > { %4407 = vadd.xlane.f32.xlu0 %v4406_v2  ;;  %9653 = vmatpush3.msra.mxu1 %v4442_v7  ;;  %v8700_v2 = vld [vmem:[%s12227_s6 + $0x68] sm:$0xff] }
0x16dc   : > { %9654 = vmatprep.subr.mxu1 %v10256_v1 }
0x16dd   : > { %9655 = vmatpush3.msra.mxu1 %v4441_v8 }
0x16de   : > { %9656 = vmatprep.subr.mxu1 %v10256_v1 }
0x16df   : > { %9657 = vmatpush3.msra.mxu1 %v4440_v9 }
0x16e0   : > { %9696 = vmatprep.subr.mxu1 %v10256_v1 }
0x1764   : > { %v4408_v4 = vpop.xlane.xlu0 %4407 }
0x1765   : > { %v4409_v34 = vmul.f32 0.03125, %v4408_v4  ;;  %v8699_v4 = vld [vmem:[%s12227_s6 + $0x60] sm:$0xff] }
0x1767   : > { %v11197_v51 = vsub.f32 %v11192_v63, %v4409_v34 }
0x1769   : > { %v4411_v56 = vmul.f32 %v11197_v51, %v11197_v51  ;;  %v4422_v49 = vmul.f32 %v8690_v41, %v11197_v51 }
0x176b   : > { %v4412_v59 = vsel %vm867_vm3, %v4411_v56, 0.0 }
0x176c   : > { %4413 = vadd.xlane.f32.xlu1 %v4412_v59 }
0x17f5   : > { %v4414_v50 = vpop.xlane.xlu1 %4413 }
0x17f6   : > { %v4415_v17 = vmul.f32 0.032258064, %v4414_v50  ;;  %v8707_v50 = vld [vmem:[%s12227_s6 + $0xa0] sm:$0xff] }
0x17f8   : > { %10182 = vrsqrt.f32 %v4415_v17  ;;  %vm4425_vm14 = vcmp.eq.f32.partialorder %v4415_v17, inf  ;;  %v4428_v18 = vand.u32 2147483648, %v4415_v17  ;;  %vm4427_vm15 = vcmp.eq.f32.partialorder %v4415_v17, 0.0 }
0x1805   : > { %v10183_v3 = vpop.eup %10182 }
0x1806   : > { %v4424_v44 = vmul.f32 %v10183_v3, %v4415_v17 }
0x1808   : > { %v4426_v19 = vsel %vm4425_vm14, %v4415_v17, %v4424_v44  ;;  %v11373_v17 = vld [vmem:[%s12230_s7 + $0x3] ss:$0 sm:$0xff] }
0x1809   : > { %v4429_v20 = vsel %vm4427_vm15, %v4428_v18, %v4426_v19  ;;  %v11387_v19 = vld [vmem:[%s12230_s7 + $0x4] ss:$0 sm:$0xff] }
0x180a   : > { %v4430_v40 = vadd.f32 1e-06, %v4429_v20 }
0x180c   : > { %10184 = vrcp.f32 %v4430_v40 }
0x1819   : > { %v10185_v58 = vpop.eup %10184 }
0x181a   : > { %v4432_v24 = vmul.f32 %v10185_v58, %v4422_v49  ;;  %v11395_v49 = vld [vmem:[%s12231_s4 + $0x78] sm:$0xff]  ;;  %v11404_v58 = vld [vmem:[%s12231_s4 + $0x70] sm:$0xff] }
0x181c   : > { %v4439_v43 = vadd.f32 %v8691_v22, %v4432_v24  ;;  %v11413_v22 = vld [vmem:[%s12230_s7 + $0x5] ss:$0 sm:$0xff]  ;;  %v11418_v24 = vld [vmem:[%s12231_s4 + $0x68] sm:$0xff] }
0x181e   : > { %9659 = vmatmul.mubr.msk.f32.vlgmr.msra.gmra.mxu1 %vm867_vm3, %v4439_v43 }
0x181f   : > { %9704 = vmatprep.mubr.msk.f32.mxu1 %vm10257_vm1, %v10256_v1  ;;  %9697 = vmatpush3.msra.mxu1 %v8702_v61 }
0x1820   : > { %9698 = vmatprep.subr.mxu1 %v10256_v1 }
0x18de   : > { %v4520_v5 = vpop.f32.mrf.mxu1 }
0x18df   : > { %v4521_v29 = vadd.f32 %v8692_v28, %v4520_v5  ;;  %v11437_v28 = vld [vmem:[%s12231_s4 + $0x98] sm:$0xff] }
0x18e0   : > { %v9660_v48 = vpop.f32.mrf.mxu1  ;;  %v11442_v5 = vld [vmem:[%s12231_s4 + $0xb8] sm:$0xff] }
0x18e1   : > { %v4524_v30 = vmax.f32 %v4521_v29, 0.0  ;;  %v11452_v29 = vld [vmem:[%s12231_s4 + $0x90] sm:$0xff] }
0x18e2   : > { %v11457_v48 = vld [vmem:[%s12231_s4 + $0xb0] sm:$0xff] }
0x18e3   : > { %9694 = vmatmul.mubr.f32.vlgmr.msra.gmra.mxu0 %v4524_v30  ;;  %v11471_v30 = vld [vmem:[%s12231_s4 + $0xa8] sm:$0xff] }
0x18e4   : > { %9736 = vmatprep.mubr.msk.f32.mxu0 %vm10257_vm1, %v10256_v1 }
0x19a3   : > { %v4614_v32 = vpop.f32.mrf.mxu0 }
0x19a4   : > { %v4615_v33 = vadd.f32 %v8694_v31, %v4614_v32  ;;  %v11480_v31 = vld [vmem:[%s12231_s4 + $0x80] sm:$0xff] }
0x19a5   : > { %v9695_v35 = vpop.f32.mrf.mxu0  ;;  %v11487_v32 = vld [vmem:[%s12231_s4 + $0xa0] sm:$0xff] }
0x19a6   : > { %v11301_v36 = vadd.f32 %v4615_v33, %v11192_v63  ;;  %v8701_v63 = vld [vmem:[%s12227_s6 + $0x70] sm:$0xff] }
0x19a7   : > { %9699 = vmatpush3.msra.mxu1 %v8701_v63 }
0x19a8   : > { %v4623_v37 = vsel %vm867_vm3, %v11301_v36, 0.0  ;;  %9700 = vmatprep.subr.mxu1 %v10256_v1 }
0x19a9   : > { %4624 = vadd.xlane.f32.xlu0 %v4623_v37  ;;  %9701 = vmatpush3.msra.mxu1 %v8700_v2 }
0x19aa   : > { %9702 = vmatprep.subr.mxu1 %v10256_v1 }
0x19ab   : > { %9703 = vmatpush3.msra.mxu1 %v8699_v4 }
0x19ac   : > { %9707 = vmatprep.subr.mxu1 %v10256_v1 }
0x1a32   : > { %v4625_v38 = vpop.xlane.xlu0 %4624 }
0x1a33   : > { %v4626_v39 = vmul.f32 0.03125, %v4625_v38  ;;  %v4930_v38 = vmul.f32 %v11373_v17, %v10676_v10 }
0x1a35   : > { %v4627_v42 = vsub.f32 %v11301_v36, %v4626_v39  ;;  %v11544_v39 = vld [vmem:[%s12232_s8 + $0x3] ss:$0 sm:$0xff] }
0x1a37   : > { %v4628_v47 = vmul.f32 %v4627_v42, %v4627_v42  ;;  %v4639_v12 = vmul.f32 %v8697_v11, %v4627_v42 }
0x1a39   : > { %v4629_v54 = vsel %vm867_vm3, %v4628_v47, 0.0 }
0x1a3a   : > { %4630 = vadd.xlane.f32.xlu1 %v4629_v54 }
0x1ac3   : > { %v4631_v34 = vpop.xlane.xlu1 %4630 }
0x1ac4   : > { %v4632_v51 = vmul.f32 0.032258064, %v4631_v34 }
0x1ac6   : > { %10186 = vrsqrt.f32 %v4632_v51  ;;  %vm4642_vm0 = vcmp.eq.f32.partialorder %v4632_v51, inf  ;;  %v4645_v21 = vand.u32 2147483648, %v4632_v51  ;;  %vm4644_vm4 = vcmp.eq.f32.partialorder %v4632_v51, 0.0 }
0x1ad3   : > { %v10187_v56 = vpop.eup %10186 }
0x1ad4   : > { %v4641_v59 = vmul.f32 %v10187_v56, %v4632_v51  ;;  %v11552_v56 = vld [vmem:[%s12232_s8 + $0x4] ss:$0 sm:$0xff] }
0x1ad6   : > { %v4643_v7 = vsel %vm4642_vm0, %v4632_v51, %v4641_v59  ;;  %v5001_v51 = vmul.f32 %v11387_v19, %v10676_v10 }
0x1ad7   : > { %v4646_v8 = vsel %vm4644_vm4, %v4645_v21, %v4643_v7 }
0x1ad8   : > { %v4647_v9 = vadd.f32 1e-06, %v4646_v8 }
0x1ada   : > { %10188 = vrcp.f32 %v4647_v9 }
0x1ae7   : > { %v10189_v14 = vpop.eup %10188 }
0x1ae8   : > { %v4649_v16 = vmul.f32 %v10189_v14, %v4639_v12 }
0x1aea   : > { %v4656_v53 = vadd.f32 %v8698_v15, %v4649_v16 }
0x1aec   : > { %9705 = vmatmul.mubr.msk.f32.vlgmr.msra.gmra.mxu1 %vm867_vm3, %v4656_v53 }
0x1aed   : > { %9708 = vmatpush3.msra.mxu1 %v8706_v55  ;;  %9715 = vmatprep.mubr.msk.f32.mxu1 %vm10257_vm1, %v10256_v1 }
0x1aee   : > { %9709 = vmatprep.subr.mxu1 %v10256_v1 }
0x1aef   : > { %9710 = vmatpush3.msra.mxu1 %v8705_v13 }
0x1af0   : > { %9711 = vmatprep.subr.mxu1 %v10256_v1 }
0x1af1   : > { %9712 = vmatpush3.msra.mxu1 %v8704_v57 }
0x1af2   : > { %9713 = vmatprep.subr.mxu1 %v10256_v1 }
0x1af3   : > { %9714 = vmatpush3.msra.mxu1 %v8703_v45 }
0x1af4   : > { %9716 = vmatmul.mubr.msk.f32.vlgmr.msra.gmra.mxu1 %vm867_vm3, %v4656_v53  ;;  %9718 = vmatprep.subr.mxu1 %v10256_v1 }
0x1af5   : > { %9719 = vmatpush3.msra.mxu1 %v8710_v23  ;;  %9726 = vmatprep.mubr.msk.f32.mxu1 %vm10257_vm1, %v10256_v1 }
0x1af6   : > { %9720 = vmatprep.subr.mxu1 %v10256_v1 }
0x1af7   : > { %9721 = vmatpush3.msra.mxu1 %v8709_v62 }
0x1af8   : > { %9722 = vmatprep.subr.mxu1 %v10256_v1 }
0x1af9   : > { %9723 = vmatpush3.msra.mxu1 %v8708_v0  ;;  %v11562_v0 = vld [vmem:[%s12232_s8 + $0x5] ss:$0 sm:$0xff] }
0x1afa   : > { %9724 = vmatprep.subr.mxu1 %v10256_v1 }
0x1afb   : > { %9725 = vmatpush3.msra.mxu1 %v8707_v50  ;;  %v5072_v50 = vmul.f32 %v11413_v22, %v10676_v10  ;;  %v5392_v10 = vmul.f32 %v11373_v17, %v10746_v52 }
0x1afc   : > { %9727 = vmatmul.mubr.msk.f32.vlgmr.msra.gmra.mxu1 %vm867_vm3, %v4656_v53  ;;  %9729 = vmatprep.subr.mxu1 %v10256_v1 }
0x1afd   : > { %9731 = vmatprep.mubr.msk.f32.mxu1 %vm10257_vm1, %v10256_v1 }
0x1bac   : > { %v4774_v3 = vpop.f32.mrf.mxu1 }
0x1bad   : > { %v11376_v44 = vadd.f32 %v11373_v17, %v4774_v3 }
0x1bae   : > { %v9706_v18 = vpop.f32.mrf.mxu1 }
0x1baf   : > { %9730 = vmatpush3.msra.mxu1 %v11376_v44 }
0x1bb0   : > { %9732 = vmatmul.mubr.msk.f32.vlgmr.msra.gmra.mxu1 %vm1174_vm7, %v10507_v46  ;;  %9739 = vmatprep.subr.mxu1 %v10256_v1 }
0x1bb1   : > { %9741 = vmatprep.mubr.msk.f32.mxu1 %vm10257_vm1, %v10256_v1 }
0x1bb4   : > { %v4850_v20 = vpop.f32.mrf.mxu1 }
0x1bb5   : > { %v11390_v40 = vadd.f32 %v11387_v19, %v4850_v20 }
0x1bb6   : > { %v9717_v41 = vpop.f32.mrf.mxu1 }
0x1bb7   : > { %9735 = vmatpush3.msra.mxu0 %v11390_v40 }
0x1bb8   : > { %9737 = vmatmul.mubr.msk.f32.vlgmr.msra.gmra.mxu0 %vm1174_vm7, %v10507_v46  ;;  %9744 = vmatprep.subr.mxu0 %v10256_v1 }
0x1bb9   : > { %9745 = vmatpush3.msra.mxu0 %v11395_v49  ;;  %9752 = vmatprep.mubr.msk.f32.mxu0 %vm10257_vm1, %v10256_v1 }
0x1bba   : > { %9746 = vmatprep.subr.mxu0 %v10256_v1 }
0x1bbb   : > { %9747 = vmatpush3.msra.mxu0 %v11404_v58 }
0x1bbc   : > { %v4926_v43 = vpop.f32.mrf.mxu1  ;;  %9748 = vmatprep.subr.mxu0 %v10256_v1 }
0x1bbd   : > { %v11428_v26 = vadd.f32 %v11413_v22, %v4926_v43  ;;  %9749 = vmatpush3.msra.mxu0 %v11418_v24 }
0x1bbe   : > { %v9728_v27 = vpop.f32.mrf.mxu1  ;;  %9750 = vmatprep.subr.mxu0 %v10256_v1 }
0x1bbf   : > { %9740 = vmatpush3.msra.mxu1 %v11428_v26  ;;  %9751 = vmatpush3.msra.mxu0 %v11425_v25 }
0x1bc0   : > { %9753 = vmatmul.mubr.f32.vlgmr.msra.gmra.mxu0 %v10256_v1  ;;  %9755 = vmatprep.subr.mxu1 %v10256_v1 }
0x1bc1   : > { %9766 = vmatprep.subr.mxu0 %v10256_v1  ;;  %9742 = vmatmul.mubr.msk.f32.vlgmr.msra.gmra.mxu1 %vm1174_vm7, %v10507_v46  ;;  %v11466_v46 = vld [vmem:[%s12231_s4 + $0x88] sm:$0xff] }
0x1bc2   : > { %9756 = vmatpush3.msra.mxu1 %v11437_v28  ;;  %9767 = vmatpush3.msra.mxu0 %v11442_v5 }
0x1bc3   : > { %9757 = vmatprep.subr.mxu1 %v10256_v1  ;;  %9768 = vmatprep.subr.mxu0 %v10256_v1 }
0x1bc4   : > { %9758 = vmatpush3.msra.mxu1 %v11452_v29  ;;  %9769 = vmatpush3.msra.mxu0 %v11457_v48 }
0x1bc5   : > { %9759 = vmatprep.subr.mxu1 %v10256_v1  ;;  %9770 = vmatprep.subr.mxu0 %v10256_v1 }
0x1bc6   : > { %9760 = vmatpush3.msra.mxu1 %v11466_v46  ;;  %9771 = vmatpush3.msra.mxu0 %v11471_v30 }
0x1bc7   : > { %9761 = vmatprep.subr.mxu1 %v10256_v1  ;;  %9772 = vmatprep.subr.mxu0 %v10256_v1 }
0x1bc8   : > { %9762 = vmatpush3.msra.mxu1 %v11480_v31  ;;  %9763 = vmatprep.mubr.msk.f32.mxu1 %vm10257_vm1, %v10256_v1 }
0x1bc9   : > { %9773 = vmatpush3.msra.mxu0 %v11487_v32  ;;  %9764 = vmatmul.mubr.f32.vlgmr.msra.gmra.mxu1 %v10256_v1 }
0x1bca   : > { %9774 = vmatprep.mubr.msk.f32.mxu0 %vm10257_vm1, %v10256_v1  ;;  %9777 = vmatprep.subr.mxu1 %v10256_v1 }
0x1bcb   : > { %9787 = vmatprep.subr.mxu0 %v10256_v1  ;;  %9775 = vmatmul.mubr.f32.vlgmr.msra.gmra.mxu0 %v10256_v1 }
0x1bcc   : > { %9778 = vmatpush3.msra.mxu1 %v11376_v44  ;;  %9788 = vmatpush3.msra.mxu0 %v11428_v26 }
0x1bcd   : > { %9779 = vmatprep.mubr.msk.f32.mxu1 %vm10257_vm1, %v10256_v1  ;;  %9782 = vmatprep.subr.mxu1 %v10256_v1 }
0x1bce   : > { %9780 = vmatmul.mubr.msk.f32.vlgmr.msra.gmra.mxu1 %vm1174_vm7, %v10634_v6  ;;  %9789 = vmatprep.mubr.msk.f32.mxu0 %vm10257_vm1, %v10256_v1 }
0x1bcf   : > { %9783 = vmatpush3.msra.mxu1 %v11390_v40  ;;  %9784 = vmatprep.mubr.msk.f32.mxu1 %vm10257_vm1, %v10256_v1 }
0x1bd0   : > { %9792 = vmatprep.subr.mxu1 %v10256_v1  ;;  %9803 = vmatprep.subr.mxu0 %v10256_v1 }
0x1bd1   : > { %9790 = vmatmul.mubr.msk.f32.vlgmr.msra.gmra.mxu0 %vm1174_vm7, %v10634_v6 }
0x1bd2   : > { %9785 = vmatmul.mubr.msk.f32.vlgmr.msra.gmra.mxu1 %vm1174_vm7, %v10634_v6  ;;  %9804 = vmatpush3.msra.mxu0 %v11437_v28 }
0x1bd3   : > { %9793 = vmatpush3.msra.mxu1 %v11395_v49  ;;  %9805 = vmatprep.subr.mxu0 %v10256_v1 }
0x1bd4   : > { %9794 = vmatprep.subr.mxu1 %v10256_v1  ;;  %9806 = vmatpush3.msra.mxu0 %v11452_v29 }
0x1bd5   : > { %9795 = vmatpush3.msra.mxu1 %v11404_v58  ;;  %9807 = vmatprep.subr.mxu0 %v10256_v1 }
0x1bd6   : > { %9796 = vmatprep.subr.mxu1 %v10256_v1  ;;  %9808 = vmatpush3.msra.mxu0 %v11466_v46 }
0x1bd7   : > { %9797 = vmatpush3.msra.mxu1 %v11418_v24  ;;  %9809 = vmatprep.subr.mxu0 %v10256_v1 }
0x1bd8   : > { %9798 = vmatprep.subr.mxu1 %v10256_v1  ;;  %9800 = vmatprep.mubr.msk.f32.mxu1 %vm10257_vm1, %v10256_v1 }
0x1bd9   : > { %9799 = vmatpush3.msra.mxu1 %v11425_v25  ;;  %9810 = vmatpush3.msra.mxu0 %v11480_v31 }
0x1bda   : > { %9811 = vmatprep.mubr.msk.f32.mxu0 %vm10257_vm1, %v10256_v1  ;;  %9814 = vmatprep.subr.mxu1 %v10256_v1 }
0x1bdb   : > { %9825 = vmatprep.subr.mxu0 %v10256_v1 }
0x1c70   : > { %v4997_v6 = vpop.f32.mrf.mxu1 }
0x1c71   : > { %v4998_v42 = vadd.f32 %v4997_v6, %v4930_v38 }
0x1c72   : > { %v9733_v33 = vpop.f32.mrf.mxu1 }
0x1c78   : > { %v5068_v35 = vpop.f32.mrf.mxu0 }
0x1c79   : > { %v5069_v21 = vadd.f32 %v5068_v35, %v5001_v51 }
0x1c7a   : > { %v9738_v37 = vpop.f32.mrf.mxu0 }
0x1c80   : > { %v5215_v47 = vpop.f32.mrf.mxu0 }
0x1c81   : > { %v5216_v54 = vadd.f32 %v11544_v39, %v5215_v47  ;;  %v5139_v61 = vpop.f32.mrf.mxu1  ;;  %v5463_v47 = vmul.f32 %v11387_v19, %v10746_v52 }
0x1c82   : > { %v9754_v63 = vpop.f32.mrf.mxu0  ;;  %v5140_v41 = vadd.f32 %v5139_v61, %v5072_v50 }
0x1c83   : > { %v5371_v2 = vadd.f32 %v5216_v54, %v4998_v42  ;;  %v9743_v4 = vpop.f32.mrf.mxu1 }
0x1c85   : > { %v8741_v34 = vmul.f32 -1.442695, %v5371_v2 }
0x1c87   : > { %10190 = vpow2.f32 %v8741_v34 }
0x1c89   : > { %v5291_v59 = vpop.f32.mrf.mxu1 }
0x1c8a   : > { %v5292_v7 = vadd.f32 %v11552_v56, %v5291_v59 }
0x1c8b   : > { %v9765_v8 = vpop.f32.mrf.mxu1  ;;  %v5367_v9 = vpop.f32.mrf.mxu0 }
0x1c8c   : > { %v5378_v11 = vadd.f32 %v5292_v7, %v5069_v21  ;;  %v5368_v18 = vadd.f32 %v11562_v0, %v5367_v9  ;;  %v5534_v21 = vmul.f32 %v11413_v22, %v10746_v52  ;;  %v8759_v52 = vld [vmem:[%s12233_s27 + $0x38] sm:$0xff]  ;;  %v8758_v22 = vld [vmem:[%s12233_s27 + $0x30] sm:$0xff] }
0x1c8d   : > { %v9776_v12 = vpop.f32.mrf.mxu0 }
0x1c8e   : > { %v8742_v14 = vmul.f32 -1.442695, %v5378_v11  ;;  %v5459_v15 = vpop.f32.mrf.mxu1 }
0x1c90   : > { %v9781_v16 = vpop.f32.mrf.mxu1  ;;  %10192 = vpow2.f32 %v8742_v14 }
0x1c91   : > { %v11555_v53 = vpop.f32.mrf.mxu0 }
0x1c92   : > { %v11557_v55 = vpop.f32.mrf.mxu1  ;;  %v5602_v9 = vadd.f32 %v11555_v53, %v5534_v21  ;;  %v8776_v21 = vld [vmem:[%s12190_s13 + $0x200] sm:$0xff] }
0x1c93   : > { %v9791_v13 = vpop.f32.mrf.mxu0 }
0x1c94   : > { %v10191_v57 = vpop.eup %10190  ;;  %v9786_v45 = vpop.f32.mrf.mxu1 }
0x1c95   : > { %v5375_v23 = vadd.f32 1.0, %v10191_v57 }
0x1c97   : > { %10194 = vrcp.f32 %v5375_v23 }
0x1c9d   : > { %v10193_v62 = vpop.eup %10192 }
0x1c9e   : > { %v5382_v3 = vadd.f32 1.0, %v10193_v62 }
0x1ca0   : > { %10196 = vrcp.f32 %v5382_v3 }
0x1ca4   : > { %v10195_v20 = vpop.eup %10194 }
0x1ca5   : > { %v5385_v43 = vmul.f32 %v10195_v20, %v5368_v18 }
0x1ca7   : > { %v5386_v27 = vadd.f32 %v5385_v43, %v5140_v41 }
0x1ca9   : > { %10198 = vtanh.f32 %v5386_v27 }
0x1cad   : > { %v10197_v6 = vpop.eup %10196 }
0x1cae   : > { %v5388_v33 = vsub.f32 1.0, %v10197_v6  ;;  %v5390_v38 = vmul.f32 0.0, %v10197_v6 }
0x1cb6   : > { %v10199_v35 = vpop.eup %10198 }
0x1cb7   : > { %v5389_v37 = vmul.f32 %v10199_v35, %v5388_v33 }
0x1cb9   : > { %v11567_v42 = vadd.f32 %v5390_v38, %v5389_v37 }
0x1cbb   : > { %9801 = vmatmul.mubr.msk.f32.vlgmr.msra.gmra.mxu1 %vm867_vm3, %v11567_v42  ;;  %9812 = vmatmul.mubr.msk.f32.vlgmr.msra.gmra.mxu0 %vm867_vm3, %v11567_v42 }
0x1cbc   : > { %9815 = vmatpush3.msra.mxu1 %v11442_v5  ;;  %9822 = vmatprep.mubr.msk.f32.mxu1 %vm10257_vm1, %v10256_v1 }
0x1cbd   : > { %9816 = vmatprep.subr.mxu1 %v10256_v1  ;;  %9826 = vmatpush3.msra.mxu0 %v11395_v49 }
0x1cbe   : > { %9817 = vmatpush3.msra.mxu1 %v11457_v48  ;;  %9827 = vmatprep.subr.mxu0 %v10256_v1 }
0x1cbf   : > { %9818 = vmatprep.subr.mxu1 %v10256_v1  ;;  %9828 = vmatpush3.msra.mxu0 %v11404_v58 }
0x1cc0   : > { %9819 = vmatpush3.msra.mxu1 %v11471_v30  ;;  %9829 = vmatprep.subr.mxu0 %v10256_v1 }
0x1cc1   : > { %9820 = vmatprep.subr.mxu1 %v10256_v1  ;;  %9830 = vmatpush3.msra.mxu0 %v11418_v24  ;;  %v5460_v24 = vadd.f32 %v5459_v15, %v5392_v10 }
0x1cc2   : > { %9821 = vmatpush3.msra.mxu1 %v11487_v32  ;;  %9831 = vmatprep.subr.mxu0 %v10256_v1 }
0x1cc3   : > { %9823 = vmatmul.mubr.msk.f32.vlgmr.msra.gmra.mxu1 %vm867_vm3, %v11567_v42  ;;  %9836 = vmatprep.subr.mxu1 %v10256_v1 }
0x1cc4   : > { %9837 = vmatpush3.msra.mxu1 %v11437_v28  ;;  %9832 = vmatpush3.msra.mxu0 %v11425_v25 }
0x1cc5   : > { %9838 = vmatprep.subr.mxu1 %v10256_v1  ;;  %9833 = vmatprep.mubr.msk.f32.mxu0 %vm10257_vm1, %v10256_v1 }
0x1cc6   : > { %9839 = vmatpush3.msra.mxu1 %v11452_v29  ;;  %9844 = vmatprep.mubr.msk.f32.mxu1 %vm10257_vm1, %v10256_v1 }
0x1cc7   : > { %9840 = vmatprep.subr.mxu1 %v10256_v1  ;;  %9847 = vmatprep.subr.mxu0 %v10256_v1 }
0x1cc8   : > { %9841 = vmatpush3.msra.mxu1 %v11466_v46 }
0x1cc9   : > { %9842 = vmatprep.subr.mxu1 %v10256_v1 }
0x1cca   : > { %9843 = vmatpush3.msra.mxu1 %v11480_v31  ;;  %v5531_v31 = vadd.f32 %v11557_v55, %v5463_v47 }
0x1ccb   : > { %9858 = vmatprep.subr.mxu1 %v10256_v1 }
0x1d7b   : > { %v5674_v49 = vpop.f32.mrf.mxu1  ;;  %v5744_v58 = vpop.f32.mrf.mxu0 }
0x1d7c   : > { %v5675_v25 = vadd.f32 %v11544_v39, %v5674_v49  ;;  %v5745_v61 = vadd.f32 %v11552_v56, %v5744_v58 }
0x1d7d   : > { %v9802_v28 = vpop.f32.mrf.mxu1  ;;  %v9813_v29 = vpop.f32.mrf.mxu0 }
0x1d7e   : > { %v5818_v46 = vadd.f32 %v5675_v25, %v5460_v24  ;;  %v5825_v2 = vadd.f32 %v5745_v61, %v5531_v31 }
0x1d80   : > { %v8749_v54 = vmul.f32 -1.442695, %v5818_v46  ;;  %v8750_v4 = vmul.f32 -1.442695, %v5825_v2  ;;  %v8772_v2 = vld [vmem:[%s12190_s13 + $0x198] sm:$0xff] }
0x1d82   : > { %10200 = vpow2.f32 %v8749_v54 }
0x1d83   : > { %v5814_v63 = vpop.f32.mrf.mxu1  ;;  %10202 = vpow2.f32 %v8750_v4  ;;  %v8778_v4 = vld [vmem:[%s12190_s13 + $0x210] sm:$0xff] }
0x1d84   : > { %v5815_v7 = vadd.f32 %v11562_v0, %v5814_v63 }
0x1d85   : > { %v9824_v17 = vpop.f32.mrf.mxu1 }
0x1d86   : > { %v8771_v17 = vld [vmem:[%s12190_s13 + $0x190] sm:$0xff] }
0x1d8f   : > { %v10201_v34 = vpop.eup %10200 }
0x1d90   : > { %v5822_v51 = vadd.f32 1.0, %v10201_v34  ;;  %v10203_v59 = vpop.eup %10202  ;;  %v8770_v34 = vld [vmem:[%s12190_s13 + $0x188] sm:$0xff] }
0x1d91   : > { %v5829_v19 = vadd.f32 1.0, %v10203_v59  ;;  %v8769_v59 = vld [vmem:[%s12190_s13 + $0x180] sm:$0xff] }
0x1d92   : > { %10204 = vrcp.f32 %v5822_v51  ;;  %v8777_v51 = vld [vmem:[%s12190_s13 + $0x208] sm:$0xff] }
0x1d93   : > { %10206 = vrcp.f32 %v5829_v19 }
0x1d9f   : > { %v10205_v8 = vpop.eup %10204 }
0x1da0   : > { %v5832_v11 = vmul.f32 %v10205_v8, %v5815_v7  ;;  %v10207_v14 = vpop.eup %10206 }
0x1da1   : > { %v5835_v15 = vsub.f32 1.0, %v10207_v14  ;;  %v5837_v13 = vmul.f32 %v10207_v14, %v11567_v42 }
0x1da2   : > { %v5833_v12 = vadd.f32 %v5832_v11, %v5602_v9 }
0x1da4   : > { %10208 = vtanh.f32 %v5833_v12 }
0x1db1   : > { %v10209_v16 = vpop.eup %10208 }
0x1db2   : > { %v5836_v55 = vmul.f32 %v10209_v16, %v5835_v15  ;;  %v8765_v16 = vld [vmem:[%s12188_s11 + $0x1] ss:$0 sm:$0xff] }
0x1db4   : > { %v5838_v57 = vadd.f32 %v5837_v13, %v5836_v55 }
0x1db6   : > { %9834 = vmatmul.mubr.msk.f32.vlgmr.msra.gmra.mxu0 %vm867_vm3, %v5838_v57  ;;  %9845 = vmatmul.mubr.msk.f32.vlgmr.msra.gmra.mxu1 %vm867_vm3, %v5838_v57 }
0x1db7   : > { %9848 = vmatpush3.msra.mxu0 %v11442_v5  ;;  %9855 = vmatprep.mubr.msk.f32.mxu0 %vm10257_vm1, %v10256_v1  ;;  %v8757_v5 = vld [vmem:[%s12233_s27 + $0x28] sm:$0xff] }
0x1db8   : > { %9849 = vmatprep.subr.mxu0 %v10256_v1  ;;  %9866 = vmatprep.mubr.msk.f32.mxu1 %vm10257_vm1, %v10256_v1 }
0x1db9   : > { %9850 = vmatpush3.msra.mxu0 %v11457_v48  ;;  %9859 = vmatpush3.msra.mxu1 %v8759_v52  ;;  %v8756_v48 = vld [vmem:[%s12233_s27 + $0x20] sm:$0xff] }
0x1dba   : > { %9851 = vmatprep.subr.mxu0 %v10256_v1  ;;  %9860 = vmatprep.subr.mxu1 %v10256_v1 }
0x1dbb   : > { %9852 = vmatpush3.msra.mxu0 %v11471_v30  ;;  %9861 = vmatpush3.msra.mxu1 %v8758_v22 }
0x1dbc   : > { %9853 = vmatprep.subr.mxu0 %v10256_v1  ;;  %9862 = vmatprep.subr.mxu1 %v10256_v1 }
0x1dbd   : > { %9854 = vmatpush3.msra.mxu0 %v11487_v32  ;;  %9863 = vmatpush3.msra.mxu1 %v8757_v5  ;;  %v8786_v5 = vld [vmem:[%s12190_s13 + $0x298] sm:$0xff] }
0x1dbe   : > { %9856 = vmatmul.mubr.msk.f32.vlgmr.msra.gmra.mxu0 %vm867_vm3, %v5838_v57  ;;  %9869 = vmatprep.subr.mxu0 %v10256_v1 }
0x1dbf   : > { %9877 = vmatprep.mubr.msk.f32.mxu0 %vm10257_vm1, %v10256_v1  ;;  %9864 = vmatprep.subr.mxu1 %v10256_v1 }
0x1dc0   : > { %9865 = vmatpush3.msra.mxu1 %v8756_v48  ;;  %9870 = vmatpush3.msra.mxu0 %v8772_v2  ;;  %v8785_v48 = vld [vmem:[%s12190_s13 + $0x290] sm:$0xff] }
0x1dc1   : > { %9880 = vmatprep.subr.mxu1 %v10256_v1  ;;  %9871 = vmatprep.subr.mxu0 %v10256_v1 }
0x1dc2   : > { %9872 = vmatpush3.msra.mxu0 %v8771_v17 }
0x1dc3   : > { %9873 = vmatprep.subr.mxu0 %v10256_v1 }
0x1dc4   : > { %9874 = vmatpush3.msra.mxu0 %v8770_v34  ;;  %v8802_v34 = vld [vmem:[%s12190_s13 + $0x220] sm:$0xff] }
0x1dc5   : > { %9875 = vmatprep.subr.mxu0 %v10256_v1 }
0x1dc6   : > { %9876 = vmatpush3.msra.mxu0 %v8769_v59 }
0x1dc7   : > { %9891 = vmatprep.subr.mxu0 %v10256_v1 }
0x1e76   : > { %v5908_v30 = vpop.f32.mrf.mxu0  ;;  %v5978_v32 = vpop.f32.mrf.mxu1 }
0x1e77   : > { %v5909_v53 = vadd.f32 %v11544_v39, %v5908_v30  ;;  %v5979_v3 = vadd.f32 %v11552_v56, %v5978_v32  ;;  %v8784_v30 = vld [vmem:[%s12190_s13 + $0x288] sm:$0xff]  ;;  %v8783_v32 = vld [vmem:[%s12190_s13 + $0x280] sm:$0xff] }
0x1e78   : > { %v9835_v45 = vpop.f32.mrf.mxu0  ;;  %v9846_v23 = vpop.f32.mrf.mxu1 }
0x1e79   : > { %v6052_v62 = vadd.f32 %v5909_v53, %v11376_v44  ;;  %v6059_v20 = vadd.f32 %v5979_v3, %v11390_v40  ;;  %v8781_v53 = vld [vmem:[%s12191_s14 + $0x10] ss:$0 sm:$0xff] }
0x1e7b   : > { %v8754_v50 = vmul.f32 -1.442695, %v6052_v62  ;;  %v8755_v43 = vmul.f32 -1.442695, %v6059_v20  ;;  %v8774_v62 = vld [vmem:[%s12191_s14 + $0xc] ss:$0 sm:$0xff] }
0x1e7d   : > { %10210 = vpow2.f32 %v8754_v50 }
0x1e7e   : > { %v6048_v18 = vpop.f32.mrf.mxu0  ;;  %10212 = vpow2.f32 %v8755_v43 }
0x1e7f   : > { %v6049_v39 = vadd.f32 %v11562_v0, %v6048_v18  ;;  %v8761_v0 = vld [vmem:[%s12187_s10 + $0x1] ss:$0 sm:$0xff] }
0x1e80   : > { %v9857_v41 = vpop.f32.mrf.mxu0 }
0x1e81   : > { %v8788_v41 = vld [vmem:[%s12191_s14 + $0x14] ss:$0 sm:$0xff] }
0x1e8a   : > { %v10211_v27 = vpop.eup %10210 }
0x1e8b   : > { %v6056_v6 = vadd.f32 1.0, %v10211_v27  ;;  %v10213_v33 = vpop.eup %10212 }
0x1e8c   : > { %v6063_v35 = vadd.f32 1.0, %v10213_v33 }
0x1e8d   : > { %10214 = vrcp.f32 %v6056_v6 }
0x1e8e   : > { %10216 = vrcp.f32 %v6063_v35 }
0x1e9a   : > { %v10215_v37 = vpop.eup %10214 }
0x1e9b   : > { %v6066_v44 = vmul.f32 %v10215_v37, %v6049_v39  ;;  %v10217_v56 = vpop.eup %10216 }
0x1e9c   : > { %v6069_v42 = vsub.f32 1.0, %v10217_v56  ;;  %v6071_v49 = vmul.f32 %v10217_v56, %v5838_v57  ;;  %v8766_v57 = vld [vmem:[%s12189_s12 + $0x1] ss:$0 sm:$0xff] }
0x1e9d   : > { %v6067_v38 = vadd.f32 %v6066_v44, %v11428_v26 }
0x1e9f   : > { %10218 = vtanh.f32 %v6067_v38 }
0x1eac   : > { %v10219_v10 = vpop.eup %10218 }
0x1ead   : > { %v6070_v40 = vmul.f32 %v10219_v10, %v6069_v42 }
0x1eaf   : > { %v6072_v58 = vadd.f32 %v6071_v49, %v6070_v40  ;;  %v8793_v49 = vld [vmem:[%s12192_s15 + $0x20] sm:$0xff] }
0x1eb1   : > { %9867 = vmatmul.mubr.msk.f32.vlgmr.msra.gmra.mxu1 %vm867_vm3, %v6072_v58 }
0x1eb2   : > { %9888 = vmatprep.mubr.msk.f32.mxu1 %vm10257_vm1, %v10256_v1 }
0x1f71   : > { %v6155_v24 = vpop.f32.mrf.mxu1 }
0x1f72   : > { %v6156_v25 = vadd.f32 %v8761_v0, %v6155_v24 }
0x1f73   : > { %v9868_v28 = vpop.f32.mrf.mxu1 }
0x1f74   : > { %v6159_v26 = vmax.f32 %v6156_v25, 0.0  ;;  %v8798_v25 = vld [vmem:[%s12190_s13 + $0x1b8] sm:$0xff]  ;;  %v8797_v28 = vld [vmem:[%s12190_s13 + $0x1b0] sm:$0xff] }
0x1f76   : > { %v11663_v29 = vadd.f32 %v6159_v26, %v11301_v36  ;;  %v8779_v36 = vld [vmem:[%s12190_s13 + $0x218] sm:$0xff]  ;;  %v8796_v26 = vld [vmem:[%s12190_s13 + $0x1a8] sm:$0xff] }
0x1f77   : > { %9881 = vmatpush3.msra.mxu1 %v8779_v36  ;;  %v8804_v36 = vld [vmem:[%s12190_s13 + $0x230] sm:$0xff] }
0x1f78   : > { %v6165_v47 = vsel %vm867_vm3, %v11663_v29, 0.0  ;;  %9882 = vmatprep.subr.mxu1 %v10256_v1 }
0x1f79   : > { %6166 = vadd.xlane.f32.xlu0 %v6165_v47  ;;  %9883 = vmatpush3.msra.mxu1 %v8778_v4  ;;  %v8795_v47 = vld [vmem:[%s12190_s13 + $0x1a0] sm:$0xff]  ;;  %v8803_v4 = vld [vmem:[%s12190_s13 + $0x228] sm:$0xff] }
0x1f7a   : > { %9884 = vmatprep.subr.mxu1 %v10256_v1 }
0x1f7b   : > { %9885 = vmatpush3.msra.mxu1 %v8777_v51 }
0x1f7c   : > { %9886 = vmatprep.subr.mxu1 %v10256_v1 }
0x1f7d   : > { %9887 = vmatpush3.msra.mxu1 %v8776_v21 }
0x1f7e   : > { %9902 = vmatprep.subr.mxu1 %v10256_v1 }
0x2002   : > { %v6167_v46 = vpop.xlane.xlu0 %6166 }
0x2003   : > { %v6168_v54 = vmul.f32 0.03125, %v6167_v46  ;;  %v8812_v46 = vld [vmem:[%s12190_s13 + $0x2b8] sm:$0xff] }
0x2005   : > { %v6169_v61 = vsub.f32 %v11663_v29, %v6168_v54  ;;  %v8811_v54 = vld [vmem:[%s12190_s13 + $0x2b0] sm:$0xff] }
0x2007   : > { %v6170_v31 = vmul.f32 %v6169_v61, %v6169_v61  ;;  %v6181_v55 = vmul.f32 %v8765_v16, %v6169_v61  ;;  %v8810_v61 = vld [vmem:[%s12190_s13 + $0x2a8] sm:$0xff] }
0x2009   : > { %v6171_v63 = vsel %vm867_vm3, %v6170_v31, 0.0  ;;  %v8809_v31 = vld [vmem:[%s12190_s13 + $0x2a0] sm:$0xff] }
0x200a   : > { %6172 = vadd.xlane.f32.xlu1 %v6171_v63  ;;  %v8805_v63 = vld [vmem:[%s12190_s13 + $0x238] sm:$0xff] }
0x2093   : > { %v6173_v19 = vpop.xlane.xlu1 %6172 }
0x2094   : > { %v6174_v7 = vmul.f32 0.032258064, %v6173_v19 }
0x2096   : > { %10220 = vrsqrt.f32 %v6174_v7  ;;  %vm6184_vm5 = vcmp.eq.f32.partialorder %v6174_v7, inf  ;;  %v6187_v11 = vand.u32 2147483648, %v6174_v7  ;;  %vm6186_vm6 = vcmp.eq.f32.partialorder %v6174_v7, 0.0 }
0x20a3   : > { %v10221_v8 = vpop.eup %10220 }
0x20a4   : > { %v6183_v9 = vmul.f32 %v10221_v8, %v6174_v7 }
0x20a6   : > { %v6185_v12 = vsel %vm6184_vm5, %v6174_v7, %v6183_v9  ;;  %v8807_v9 = vld [vmem:[%s12191_s14 + $0x11] ss:$0 sm:$0xff] }
0x20a7   : > { %v6188_v14 = vsel %vm6186_vm6, %v6187_v11, %v6185_v12  ;;  %v8800_v12 = vld [vmem:[%s12191_s14 + $0xd] ss:$0 sm:$0xff] }
0x20a8   : > { %v6189_v15 = vadd.f32 1e-06, %v6188_v14 }
0x20aa   : > { %10222 = vrcp.f32 %v6189_v15  ;;  %v8814_v15 = vld [vmem:[%s12191_s14 + $0x15] ss:$0 sm:$0xff] }
0x20b7   : > { %v10223_v13 = vpop.eup %10222 }
0x20b8   : > { %v6191_v52 = vmul.f32 %v10223_v13, %v6181_v55 }
0x20ba   : > { %v11707_v22 = vadd.f32 %v8766_v57, %v6191_v52 }
0x20bc   : > { %9878 = vmatmul.mubr.msk.f32.vlgmr.msra.gmra.mxu0 %vm867_vm3, %v11707_v22  ;;  %9889 = vmatmul.mubr.msk.f32.vlgmr.msra.gmra.mxu1 %vm867_vm3, %v11707_v22 }
0x20bd   : > { %9892 = vmatpush3.msra.mxu0 %v8786_v5  ;;  %9899 = vmatprep.mubr.msk.f32.mxu0 %vm10257_vm1, %v10256_v1 }
0x20be   : > { %9893 = vmatprep.subr.mxu0 %v10256_v1  ;;  %9904 = vmatprep.mubr.msk.f32.mxu1 %vm10257_vm1, %v10256_v1 }
0x20bf   : > { %9894 = vmatpush3.msra.mxu0 %v8785_v48 }
0x20c0   : > { %9895 = vmatprep.subr.mxu0 %v10256_v1 }
0x20c1   : > { %9896 = vmatpush3.msra.mxu0 %v8784_v30 }
0x20c2   : > { %9897 = vmatprep.subr.mxu0 %v10256_v1 }
0x20c3   : > { %9898 = vmatpush3.msra.mxu0 %v8783_v32 }
0x20c4   : > { %9900 = vmatmul.mubr.msk.f32.vlgmr.msra.gmra.mxu0 %vm867_vm3, %v11707_v22  ;;  %9907 = vmatprep.subr.mxu0 %v10256_v1 }
0x20c5   : > { %9909 = vmatprep.mubr.msk.f32.mxu0 %vm10257_vm1, %v10256_v1 }
0x217c   : > { %v6289_v45 = vpop.f32.mrf.mxu0  ;;  %v6372_v23 = vpop.f32.mrf.mxu1 }
0x217d   : > { %v6373_v50 = vadd.f32 %v8781_v53, %v6372_v23  ;;  %v6290_v20 = vadd.f32 %v8774_v62, %v6289_v45 }
0x217e   : > { %v9879_v3 = vpop.f32.mrf.mxu0  ;;  %v9890_v18 = vpop.f32.mrf.mxu1 }
0x217f   : > { %9903 = vmatpush3.xpose.msk.msra.mxu1 %vm1174_vm7, %v6373_v50  ;;  %v8819_v50 = vld [vmem:[%s12192_s15 + $0x28] sm:$0xff] }
0x2180   : > { %9912 = vmatprep.subr.mxu1 %v10256_v1 }
0x2182   : > { %9905 = vmatmul.mubr.msk.f32.vlgmr.msra.gmra.mxu1 %vm1174_vm7, %v6290_v20 }
0x2183   : > { %9914 = vmatprep.mubr.msk.f32.mxu1 %vm10257_vm1, %v10256_v1  ;;  %9913 = vmatpush3.msra.mxu1 %v8793_v49 }
0x2184   : > { %v6455_v43 = vpop.f32.mrf.mxu0  ;;  %9928 = vmatprep.subr.mxu1 %v10256_v1 }
0x2185   : > { %v6456_v27 = vadd.f32 %v8788_v41, %v6455_v43  ;;  %v8824_v41 = vld [vmem:[%s12190_s13 + $0x1d8] sm:$0xff]  ;;  %v8823_v43 = vld [vmem:[%s12190_s13 + $0x1d0] sm:$0xff] }
0x2186   : > { %v9901_v6 = vpop.f32.mrf.mxu0 }
0x2187   : > { %9908 = vmatpush3.msra.mxu0 %v6456_v27  ;;  %v8822_v27 = vld [vmem:[%s12190_s13 + $0x1c8] sm:$0xff]  ;;  %v8821_v6 = vld [vmem:[%s12190_s13 + $0x1c0] sm:$0xff] }
0x2188   : > { %9917 = vmatprep.subr.mxu0 %v10256_v1 }
0x2242   : > { %v6531_v33 = vpop.f32.mrf.mxu1 }
0x2243   : > { %v6535_v35 = vmul.f32 0.35355338, %v6531_v33  ;;  %v8838_v33 = vld [vmem:[%s12190_s13 + $0x2d8] sm:$0xff] }
0x2244   : > { %v9906_v39 = vpop.f32.mrf.mxu1 }
0x2245   : > { %v6536_v37 = vsel %vm10897_vm13, %v6535_v35, -1e+30  ;;  %v8837_v35 = vld [vmem:[%s12190_s13 + $0x2d0] sm:$0xff]  ;;  %v8836_v39 = vld [vmem:[%s12190_s13 + $0x2c8] sm:$0xff] }
0x2246   : > { %v6537_v44 = vsel %vm1174_vm7, %v6536_v37, -inf }
0x2247   : > { %6538 = vmax.xlane.f32.xlu0 %v6537_v44  ;;  %v8831_v44 = vld [vmem:[%s12190_s13 + $0x258] sm:$0xff] }
0x22d0   : > { %v6539_v38 = vpop.xlane.xlu0 %6538 }
0x22d1   : > { %v6540_v56 = vsub.f32 %v6536_v37, %v6539_v38  ;;  %v8835_v37 = vld [vmem:[%s12190_s13 + $0x2c0] sm:$0xff] }
0x22d3   : > { %v6541_v42 = vmul.f32 1.442695, %v6540_v56  ;;  %v8830_v56 = vld [vmem:[%s12190_s13 + $0x250] sm:$0xff] }
0x22d5   : > { %10224 = vpow2.f32 %v6541_v42 }
0x22e2   : > { %v10225_v10 = vpop.eup %10224 }
0x22e3   : > { %v6543_v40 = vsel %vm1174_vm7, %v10225_v10, 0.0 }
0x22e4   : > { %6544 = vadd.xlane.f32.xlu1 %v6543_v40  ;;  %v8828_v40 = vld [vmem:[%s12190_s13 + $0x240] sm:$0xff] }
0x236d   : > { %v6545_v58 = vpop.xlane.xlu1 %6544 }
0x236e   : > { %10226 = vrcp.f32 %v6545_v58 }
0x237b   : > { %v10227_v0 = vpop.eup %10226 }
0x237c   : > { %v6547_v24 = vmul.f32 %v10227_v0, %v10225_v10  ;;  %v8829_v10 = vld [vmem:[%s12190_s13 + $0x248] sm:$0xff] }
0x237e   : > { %9910 = vmatmul.mubr.msk.f32.vlgmr.msra.gmra.mxu0 %vm1174_vm7, %v6547_v24 }
0x237f   : > { %9918 = vmatpush3.msra.mxu0 %v8798_v25  ;;  %9925 = vmatprep.mubr.msk.f32.mxu0 %vm10257_vm1, %v10256_v1  ;;  %v8768_v25 = vld [vmem:[%s12193_s16 + $0x1] ss:$0 sm:$0xff] }
0x2380   : > { %9919 = vmatprep.subr.mxu0 %v10256_v1 }
0x2381   : > { %9920 = vmatpush3.msra.mxu0 %v8797_v28 }
0x2382   : > { %9921 = vmatprep.subr.mxu0 %v10256_v1 }
0x2383   : > { %9922 = vmatpush3.msra.mxu0 %v8796_v26 }
0x2384   : > { %9923 = vmatprep.subr.mxu0 %v10256_v1 }
0x2385   : > { %9924 = vmatpush3.msra.mxu0 %v8795_v47 }
0x2386   : > { %9926 = vmatmul.mubr.msk.f32.vlgmr.msra.gmra.mxu0 %vm867_vm3, %v11707_v22  ;;  %9939 = vmatprep.subr.mxu0 %v10256_v1 }
0x2387   : > { %9940 = vmatpush3.msra.mxu0 %v8812_v46  ;;  %9947 = vmatprep.mubr.msk.f32.mxu0 %vm10257_vm1, %v10256_v1 }
0x2388   : > { %9941 = vmatprep.subr.mxu0 %v10256_v1 }
0x2389   : > { %9942 = vmatpush3.msra.mxu0 %v8811_v54  ;;  %v8833_v54 = vld [vmem:[%s12191_s14 + $0x12] ss:$0 sm:$0xff] }
0x238a   : > { %9943 = vmatprep.subr.mxu0 %v10256_v1 }
0x238b   : > { %9944 = vmatpush3.msra.mxu0 %v8810_v61 }
0x238c   : > { %9945 = vmatprep.subr.mxu0 %v10256_v1 }
0x238d   : > { %9946 = vmatpush3.msra.mxu0 %v8809_v31  ;;  %v8826_v31 = vld [vmem:[%s12191_s14 + $0xe] ss:$0 sm:$0xff] }
0x238e   : > { %9948 = vmatmul.mubr.msk.f32.vlgmr.msra.gmra.mxu0 %vm867_vm3, %v11707_v22  ;;  %9960 = vmatprep.subr.mxu0 %v10256_v1 }
0x238f   : > { %9962 = vmatprep.mubr.msk.f32.mxu0 %vm10257_vm1, %v10256_v1  ;;  %9961 = vmatpush3.msra.mxu0 %v8819_v50 }
0x2390   : > { %9976 = vmatprep.subr.mxu0 %v10256_v1 }
0x243e   : > { %v6617_v2 = vpop.f32.mrf.mxu0 }
0x243f   : > { %9915 = vmatmul.mubr.msk.f32.vlgmr.msra.gmra.mxu1 %vm1174_vm7, %v6617_v2  ;;  %v8840_v2 = vld [vmem:[%s12191_s14 + $0x16] ss:$0 sm:$0xff] }
0x2440   : > { %9929 = vmatpush3.msra.mxu1 %v8805_v63  ;;  %v9911_v17 = vpop.f32.mrf.mxu0  ;;  %9936 = vmatprep.mubr.msk.f32.mxu1 %vm10257_vm1, %v10256_v1 }
0x2441   : > { %9930 = vmatprep.subr.mxu1 %v10256_v1 }
0x2442   : > { %9931 = vmatpush3.msra.mxu1 %v8804_v36 }
0x2443   : > { %9932 = vmatprep.subr.mxu1 %v10256_v1 }
0x2444   : > { %9933 = vmatpush3.msra.mxu1 %v8803_v4 }
0x2445   : > { %9934 = vmatprep.subr.mxu1 %v10256_v1 }
0x2446   : > { %v6776_v51 = vpop.f32.mrf.mxu0  ;;  %9935 = vmatpush3.msra.mxu1 %v8802_v34 }
0x2447   : > { %9937 = vmatmul.mubr.msk.f32.vlgmr.msra.gmra.mxu1 %vm867_vm3, %v11707_v22  ;;  %9950 = vmatprep.subr.mxu1 %v10256_v1  ;;  %v6777_v55 = vadd.f32 %v8800_v12, %v6776_v51 }
0x2448   : > { %v9927_v59 = vpop.f32.mrf.mxu0  ;;  %9952 = vmatprep.mubr.msk.f32.mxu1 %vm10257_vm1, %v10256_v1 }
0x244e   : > { %v6942_v21 = vpop.f32.mrf.mxu0 }
0x244f   : > { %v6943_v13 = vadd.f32 %v8814_v15, %v6942_v21 }
0x2450   : > { %v9949_v19 = vpop.f32.mrf.mxu0 }
0x24ff   : > { %v11826_v7 = vpop.f32.mrf.mxu1 }
0x2500   : > { %v6696_v28 = vadd.f32 %v8768_v25, %v11826_v7 }
0x2501   : > { %v9916_v8 = vpop.f32.mrf.mxu1 }
0x2507   : > { %v6859_v11 = vpop.f32.mrf.mxu1 }
0x2508   : > { %v6860_v14 = vadd.f32 %v8807_v9, %v6859_v11 }
0x2509   : > { %v9938_v16 = vpop.f32.mrf.mxu1 }
0x250a   : > { %9951 = vmatpush3.xpose.msk.msra.mxu1 %vm1174_vm7, %v6860_v14  ;;  %v8845_v14 = vld [vmem:[%s12192_s15 + $0x30] sm:$0xff] }
0x250b   : > { %9955 = vmatprep.subr.mxu1 %v10256_v1 }
0x250d   : > { %9953 = vmatmul.mubr.msk.f32.vlgmr.msra.gmra.mxu1 %vm1174_vm7, %v6777_v55 }
0x250e   : > { %9956 = vmatpush3.msra.mxu1 %v6943_v13  ;;  %9957 = vmatprep.mubr.msk.f32.mxu1 %vm10257_vm1, %v10256_v1  ;;  %v8850_v13 = vld [vmem:[%s12190_s13 + $0x1f8] sm:$0xff] }
0x250f   : > { %9965 = vmatprep.subr.mxu1 %v10256_v1 }
0x25cd   : > { %v7018_v57 = vpop.f32.mrf.mxu1 }
0x25ce   : > { %v7022_v52 = vmul.f32 0.35355338, %v7018_v57  ;;  %v8849_v57 = vld [vmem:[%s12190_s13 + $0x1f0] sm:$0xff] }
0x25cf   : > { %v9954_v5 = vpop.f32.mrf.mxu1 }
0x25d0   : > { %v7023_v48 = vsel %vm10897_vm13, %v7022_v52, -1e+30  ;;  %v8848_v52 = vld [vmem:[%s12190_s13 + $0x1e8] sm:$0xff]  ;;  %v8847_v5 = vld [vmem:[%s12190_s13 + $0x1e0] sm:$0xff] }
0x25d1   : > { %v7024_v30 = vsel %vm1174_vm7, %v7023_v48, -inf }
0x25d2   : > { %7025 = vmax.xlane.f32.xlu0 %v7024_v30  ;;  %v8863_v30 = vld [vmem:[%s12190_s13 + $0x2f0] sm:$0xff] }
0x265b   : > { %v7026_v32 = vpop.xlane.xlu0 %7025 }
0x265c   : > { %v7027_v53 = vsub.f32 %v7023_v48, %v7026_v32  ;;  %v8864_v48 = vld [vmem:[%s12190_s13 + $0x2f8] sm:$0xff]  ;;  %v8862_v32 = vld [vmem:[%s12190_s13 + $0x2e8] sm:$0xff] }
0x265e   : > { %v7028_v45 = vmul.f32 1.442695, %v7027_v53  ;;  %v8861_v53 = vld [vmem:[%s12190_s13 + $0x2e0] sm:$0xff] }
0x2660   : > { %10228 = vpow2.f32 %v7028_v45  ;;  %v8857_v45 = vld [vmem:[%s12190_s13 + $0x278] sm:$0xff] }
0x266d   : > { %v10229_v23 = vpop.eup %10228 }
0x266e   : > { %v7030_v62 = vsel %vm1174_vm7, %v10229_v23, 0.0 }
0x266f   : > { %7031 = vadd.xlane.f32.xlu1 %v7030_v62  ;;  %v8856_v62 = vld [vmem:[%s12190_s13 + $0x270] sm:$0xff] }
0x26f8   : > { %v7032_v3 = vpop.xlane.xlu1 %7031 }
0x26f9   : > { %10230 = vrcp.f32 %v7032_v3  ;;  %v8855_v3 = vld [vmem:[%s12190_s13 + $0x268] sm:$0xff] }
0x2706   : > { %v10231_v18 = vpop.eup %10230 }
0x2707   : > { %v7034_v20 = vmul.f32 %v10231_v18, %v10229_v23  ;;  %v8854_v18 = vld [vmem:[%s12190_s13 + $0x260] sm:$0xff] }
0x2709   : > { %9958 = vmatmul.mubr.msk.f32.vlgmr.msra.gmra.mxu1 %vm1174_vm7, %v7034_v20 }
0x270a   : > { %9966 = vmatpush3.msra.mxu1 %v8824_v41  ;;  %9973 = vmatprep.mubr.msk.f32.mxu1 %vm10257_vm1, %v10256_v1 }
0x270b   : > { %9967 = vmatprep.subr.mxu1 %v10256_v1 }
0x270c   : > { %9968 = vmatpush3.msra.mxu1 %v8823_v43 }
0x270d   : > { %9969 = vmatprep.subr.mxu1 %v10256_v1 }
0x270e   : > { %9970 = vmatpush3.msra.mxu1 %v8822_v27 }
0x270f   : > { %9971 = vmatprep.subr.mxu1 %v10256_v1 }
0x2710   : > { %9972 = vmatpush3.msra.mxu1 %v8821_v6 }
0x2711   : > { %9974 = vmatmul.mubr.msk.f32.vlgmr.msra.gmra.mxu1 %vm867_vm3, %v11707_v22  ;;  %9987 = vmatprep.subr.mxu1 %v10256_v1 }
0x2712   : > { %9988 = vmatpush3.msra.mxu1 %v8838_v33  ;;  %9995 = vmatprep.mubr.msk.f32.mxu1 %vm10257_vm1, %v10256_v1 }
0x2713   : > { %9989 = vmatprep.subr.mxu1 %v10256_v1 }
0x2714   : > { %9990 = vmatpush3.msra.mxu1 %v8837_v35 }
0x2715   : > { %9991 = vmatprep.subr.mxu1 %v10256_v1 }
0x2716   : > { %9992 = vmatpush3.msra.mxu1 %v8836_v39  ;;  %v8859_v39 = vld [vmem:[%s12191_s14 + $0x13] ss:$0 sm:$0xff] }
0x2717   : > { %9993 = vmatprep.subr.mxu1 %v10256_v1 }
0x2718   : > { %9994 = vmatpush3.msra.mxu1 %v8835_v37 }
0x2719   : > { %9996 = vmatmul.mubr.msk.f32.vlgmr.msra.gmra.mxu1 %vm867_vm3, %v11707_v22  ;;  %10008 = vmatprep.subr.mxu1 %v10256_v1 }
0x271a   : > { %10010 = vmatprep.mubr.msk.f32.mxu1 %vm10257_vm1, %v10256_v1  ;;  %10009 = vmatpush3.msra.mxu1 %v8845_v14  ;;  %v8899_v14 = vld [vmem:[%s12198_s21 + $0xf8] sm:$0xff] }
0x271b   : > { %10024 = vmatprep.subr.mxu1 %v10256_v1 }
0x27c9   : > { %v7104_v38 = vpop.f32.mrf.mxu1 }
0x27ca   : > { %9963 = vmatmul.mubr.msk.f32.vlgmr.msra.gmra.mxu0 %vm1174_vm7, %v7104_v38  ;;  %v8866_v38 = vld [vmem:[%s12191_s14 + $0x17] ss:$0 sm:$0xff] }
0x27cb   : > { %9977 = vmatpush3.msra.mxu0 %v8831_v44  ;;  %v9959_v42 = vpop.f32.mrf.mxu1  ;;  %9984 = vmatprep.mubr.msk.f32.mxu0 %vm10257_vm1, %v10256_v1 }
0x27cc   : > { %9978 = vmatprep.subr.mxu0 %v10256_v1 }
0x27cd   : > { %9979 = vmatpush3.msra.mxu0 %v8830_v56 }
0x27ce   : > { %9980 = vmatprep.subr.mxu0 %v10256_v1 }
0x27cf   : > { %9981 = vmatpush3.msra.mxu0 %v8829_v10 }
0x27d0   : > { %9982 = vmatprep.subr.mxu0 %v10256_v1 }
0x27d1   : > { %v7263_v49 = vpop.f32.mrf.mxu1  ;;  %9983 = vmatpush3.msra.mxu0 %v8828_v40 }
0x27d2   : > { %9985 = vmatmul.mubr.msk.f32.vlgmr.msra.gmra.mxu0 %vm867_vm3, %v11707_v22  ;;  %9998 = vmatprep.subr.mxu0 %v10256_v1  ;;  %v7264_v17 = vadd.f32 %v8826_v31, %v7263_v49 }
0x27d3   : > { %v9975_v58 = vpop.f32.mrf.mxu1  ;;  %10000 = vmatprep.mubr.msk.f32.mxu0 %vm10257_vm1, %v10256_v1 }
0x27d9   : > { %v7429_v0 = vpop.f32.mrf.mxu1 }
0x27da   : > { %v7430_v4 = vadd.f32 %v8840_v2, %v7429_v0 }
0x27db   : > { %v9997_v24 = vpop.f32.mrf.mxu1 }
0x288a   : > { %v7179_v26 = vpop.f32.mrf.mxu0 }
0x288b   : > { %v11921_v47 = vadd.f32 %v7179_v26, %v6696_v28 }
0x288c   : > { %v9964_v46 = vpop.f32.mrf.mxu0 }
0x2892   : > { %v7346_v61 = vpop.f32.mrf.mxu0 }
0x2893   : > { %v7347_v63 = vadd.f32 %v8833_v54, %v7346_v61  ;;  %v8871_v54 = vld [vmem:[%s12192_s15 + $0x38] sm:$0xff] }
0x2894   : > { %v9986_v36 = vpop.f32.mrf.mxu0 }
0x2895   : > { %9999 = vmatpush3.xpose.msk.msra.mxu0 %vm1174_vm7, %v7347_v63 }
0x2896   : > { %10003 = vmatprep.subr.mxu0 %v10256_v1 }
0x2898   : > { %10001 = vmatmul.mubr.msk.f32.vlgmr.msra.gmra.mxu0 %vm1174_vm7, %v7264_v17 }
0x2899   : > { %10004 = vmatpush3.msra.mxu0 %v7430_v4  ;;  %10005 = vmatprep.mubr.msk.f32.mxu0 %vm10257_vm1, %v10256_v1 }
0x289a   : > { %10013 = vmatprep.subr.mxu0 %v10256_v1 }
0x2958   : > { %v7505_v34 = vpop.f32.mrf.mxu0 }
0x2959   : > { %v7509_v51 = vmul.f32 0.35355338, %v7505_v34 }
0x295a   : > { %v10002_v59 = vpop.f32.mrf.mxu0 }
0x295b   : > { %v7510_v21 = vsel %vm10897_vm13, %v7509_v51, -1e+30 }
0x295c   : > { %v7511_v19 = vsel %vm1174_vm7, %v7510_v21, -inf }
0x295d   : > { %7512 = vmax.xlane.f32.xlu0 %v7511_v19 }
0x29e6   : > { %v7513_v7 = vpop.xlane.xlu0 %7512 }
0x29e7   : > { %v7514_v8 = vsub.f32 %v7510_v21, %v7513_v7 }
0x29e9   : > { %v7515_v9 = vmul.f32 1.442695, %v7514_v8 }
0x29eb   : > { %10232 = vpow2.f32 %v7515_v9  ;;  %v8879_v9 = vld [vmem:[%s12196_s19 + $0x30] sm:$0xff] }
0x29f8   : > { %v10233_v11 = vpop.eup %10232 }
0x29f9   : > { %v7517_v12 = vsel %vm1174_vm7, %v10233_v11, 0.0 }
0x29fa   : > { %7518 = vadd.xlane.f32.xlu1 %v7517_v12  ;;  %v8877_v12 = vld [vmem:[%s12196_s19 + $0x20] sm:$0xff] }
0x2a83   : > { %v7519_v15 = vpop.xlane.xlu1 %7518 }
0x2a84   : > { %10234 = vrcp.f32 %v7519_v15  ;;  %v8898_v15 = vld [vmem:[%s12198_s21 + $0xf0] sm:$0xff] }
0x2a91   : > { %v10235_v16 = vpop.eup %10234 }
0x2a92   : > { %v7521_v55 = vmul.f32 %v10235_v16, %v10233_v11  ;;  %v8878_v11 = vld [vmem:[%s12196_s19 + $0x28] sm:$0xff] }
0x2a93   : > { %v8897_v16 = vld [vmem:[%s12198_s21 + $0xe8] sm:$0xff] }
0x2a94   : > { %10006 = vmatmul.mubr.msk.f32.vlgmr.msra.gmra.mxu0 %vm1174_vm7, %v7521_v55  ;;  %v8896_v55 = vld [vmem:[%s12198_s21 + $0xe0] sm:$0xff] }
0x2a95   : > { %10014 = vmatpush3.msra.mxu0 %v8850_v13  ;;  %10021 = vmatprep.mubr.msk.f32.mxu0 %vm10257_vm1, %v10256_v1  ;;  %v8895_v13 = vld [vmem:[%s12198_s21 + $0xd8] sm:$0xff] }
0x2a96   : > { %10015 = vmatprep.subr.mxu0 %v10256_v1 }
0x2a97   : > { %10016 = vmatpush3.msra.mxu0 %v8849_v57  ;;  %v8894_v57 = vld [vmem:[%s12198_s21 + $0xd0] sm:$0xff] }
0x2a98   : > { %10017 = vmatprep.subr.mxu0 %v10256_v1 }
0x2a99   : > { %10018 = vmatpush3.msra.mxu0 %v8848_v52  ;;  %v8893_v52 = vld [vmem:[%s12198_s21 + $0xc8] sm:$0xff] }
0x2a9a   : > { %10019 = vmatprep.subr.mxu0 %v10256_v1 }
0x2a9b   : > { %10020 = vmatpush3.msra.mxu0 %v8847_v5  ;;  %v8892_v5 = vld [vmem:[%s12198_s21 + $0xc0] sm:$0xff] }
0x2a9c   : > { %10022 = vmatmul.mubr.msk.f32.vlgmr.msra.gmra.mxu0 %vm867_vm3, %v11707_v22  ;;  %10035 = vmatprep.subr.mxu0 %v10256_v1 }
0x2a9d   : > { %10036 = vmatpush3.msra.mxu0 %v8864_v48  ;;  %10043 = vmatprep.mubr.msk.f32.mxu0 %vm10257_vm1, %v10256_v1  ;;  %v8891_v48 = vld [vmem:[%s12198_s21 + $0xb8] sm:$0xff] }
0x2a9e   : > { %10037 = vmatprep.subr.mxu0 %v10256_v1 }
0x2a9f   : > { %10038 = vmatpush3.msra.mxu0 %v8863_v30  ;;  %v8890_v30 = vld [vmem:[%s12198_s21 + $0xb0] sm:$0xff] }
0x2aa0   : > { %10039 = vmatprep.subr.mxu0 %v10256_v1 }
0x2aa1   : > { %10040 = vmatpush3.msra.mxu0 %v8862_v32  ;;  %v8889_v32 = vld [vmem:[%s12198_s21 + $0xa8] sm:$0xff] }
0x2aa2   : > { %10041 = vmatprep.subr.mxu0 %v10256_v1 }
0x2aa3   : > { %10042 = vmatpush3.msra.mxu0 %v8861_v53  ;;  %v8888_v53 = vld [vmem:[%s12198_s21 + $0xa0] sm:$0xff] }
0x2aa4   : > { %10044 = vmatmul.mubr.msk.f32.vlgmr.msra.gmra.mxu0 %vm867_vm3, %v11707_v22  ;;  %10056 = vmatprep.subr.mxu0 %v10256_v1 }
0x2aa5   : > { %10058 = vmatprep.mubr.msk.f32.mxu0 %vm10257_vm1, %v10256_v1  ;;  %10057 = vmatpush3.msra.mxu0 %v8871_v54 }
0x2aa6   : > { %10072 = vmatprep.subr.mxu0 %v10256_v1 }
0x2b54   : > { %v7591_v23 = vpop.f32.mrf.mxu0 }
0x2b55   : > { %10011 = vmatmul.mubr.msk.f32.vlgmr.msra.gmra.mxu1 %vm1174_vm7, %v7591_v23 }
0x2b56   : > { %10025 = vmatpush3.msra.mxu1 %v8857_v45  ;;  %v10007_v50 = vpop.f32.mrf.mxu0  ;;  %10032 = vmatprep.mubr.msk.f32.mxu1 %vm10257_vm1, %v10256_v1  ;;  %v8887_v45 = vld [vmem:[%s12198_s21 + $0x98] sm:$0xff] }
0x2b57   : > { %10026 = vmatprep.subr.mxu1 %v10256_v1 }
0x2b58   : > { %10027 = vmatpush3.msra.mxu1 %v8856_v62 }
0x2b59   : > { %10028 = vmatprep.subr.mxu1 %v10256_v1 }
0x2b5a   : > { %10029 = vmatpush3.msra.mxu1 %v8855_v3 }
0x2b5b   : > { %10030 = vmatprep.subr.mxu1 %v10256_v1 }
0x2b5c   : > { %v7750_v20 = vpop.f32.mrf.mxu0  ;;  %10031 = vmatpush3.msra.mxu1 %v8854_v18 }
0x2b5d   : > { %10033 = vmatmul.mubr.msk.f32.vlgmr.msra.gmra.mxu1 %vm867_vm3, %v11707_v22  ;;  %10046 = vmatprep.subr.mxu1 %v10256_v1  ;;  %v8852_v22 = vld [vmem:[%s12191_s14 + $0xf] ss:$0 sm:$0xff] }
0x2b5e   : > { %v10023_v41 = vpop.f32.mrf.mxu0  ;;  %10048 = vmatprep.mubr.msk.f32.mxu1 %vm10257_vm1, %v10256_v1  ;;  %v7751_v42 = vadd.f32 %v8852_v22, %v7750_v20  ;;  %v8886_v22 = vld [vmem:[%s12198_s21 + $0x90] sm:$0xff] }
0x2b64   : > { %v7916_v43 = vpop.f32.mrf.mxu0 }
0x2b65   : > { %v7917_v10 = vadd.f32 %v8866_v38, %v7916_v43  ;;  %v8884_v38 = vld [vmem:[%s12198_s21 + $0x80] sm:$0xff] }
0x2b66   : > { %v10045_v27 = vpop.f32.mrf.mxu0 }
0x2b67   : > { %v8875_v27 = vld [vmem:[%s12194_s17 + $0x1] ss:$0 sm:$0xff] }
0x2c15   : > { %v7666_v6 = vpop.f32.mrf.mxu1 }
0x2c16   : > { %v7670_v33 = vadd.f32 %v7666_v6, %v11921_v47 }
0x2c17   : > { %v10012_v35 = vpop.f32.mrf.mxu1 }
0x2c18   : > { %v8876_v35 = vld [vmem:[%s12195_s18 + $0x1] ss:$0 sm:$0xff] }
0x2c1d   : > { %v7833_v37 = vpop.f32.mrf.mxu1 }
0x2c1e   : > { %v7834_v44 = vadd.f32 %v8859_v39, %v7833_v37 }
0x2c1f   : > { %v10034_v56 = vpop.f32.mrf.mxu1 }
0x2c20   : > { %10047 = vmatpush3.xpose.msk.msra.mxu1 %vm1174_vm7, %v7834_v44  ;;  %v8885_v44 = vld [vmem:[%s12198_s21 + $0x88] sm:$0xff]  ;;  %v8383_v56 = vld [vmem:[%s12200_s23 + $0x18] sm:$0xff] }
0x2c21   : > { %10051 = vmatprep.subr.mxu1 %v10256_v1 }
0x2c23   : > { %10049 = vmatmul.mubr.msk.f32.vlgmr.msra.gmra.mxu1 %vm1174_vm7, %v7751_v42  ;;  %v8882_v42 = vld [vmem:[%s12197_s20 + $0x1] ss:$0 sm:$0xff] }
0x2c24   : > { %10052 = vmatpush3.msra.mxu1 %v7917_v10  ;;  %10053 = vmatprep.mubr.msk.f32.mxu1 %vm10257_vm1, %v10256_v1 }
0x2c25   : > { %10061 = vmatprep.subr.mxu1 %v10256_v1 }
0x2ce3   : > { %v7992_v40 = vpop.f32.mrf.mxu1 }
0x2ce4   : > { %v7996_v49 = vmul.f32 0.35355338, %v7992_v40 }
0x2ce5   : > { %v10050_v58 = vpop.f32.mrf.mxu1 }
0x2ce6   : > { %v7997_v0 = vsel %vm10897_vm13, %v7996_v49, -1e+30 }
0x2ce7   : > { %v7998_v24 = vsel %vm1174_vm7, %v7997_v0, -inf }
0x2ce8   : > { %7999 = vmax.xlane.f32.xlu0 %v7998_v24  ;;  %v8381_v24 = vld [vmem:[%s12200_s23 + $0x8] sm:$0xff] }
0x2d71   : > { %v8000_v25 = vpop.xlane.xlu0 %7999 }
0x2d72   : > { %v8001_v28 = vsub.f32 %v7997_v0, %v8000_v25  ;;  %v8382_v0 = vld [vmem:[%s12200_s23 + $0x10] sm:$0xff]  ;;  %v8380_v25 = vld [vmem:[%s12200_s23] sm:$0xff] }
0x2d74   : > { %v8002_v26 = vmul.f32 1.442695, %v8001_v28  ;;  %v8901_v28 = vld [vmem:[%s12199_s22 + $0x1] ss:$0 sm:$0xff] }
0x2d76   : > { %10236 = vpow2.f32 %v8002_v26 }
0x2d83   : > { %v10237_v47 = vpop.eup %10236 }
0x2d84   : > { %v8004_v46 = vsel %vm1174_vm7, %v10237_v47, 0.0 }
0x2d85   : > { %8005 = vadd.xlane.f32.xlu1 %v8004_v46 }
0x2e0e   : > { %v8006_v60 = vpop.xlane.xlu1 %8005 }
0x2e0f   : > { %10238 = vrcp.f32 %v8006_v60 }
0x2e1c   : > { %v10239_v61 = vpop.eup %10238 }
0x2e1d   : > { %v8008_v31 = vmul.f32 %v10239_v61, %v10237_v47 }
0x2e1f   : > { %10054 = vmatmul.mubr.msk.f32.vlgmr.msra.gmra.mxu1 %vm1174_vm7, %v8008_v31 }
0x2e20   : > { %10069 = vmatprep.mubr.msk.f32.mxu1 %vm10257_vm1, %v10256_v1 }
0x2edf   : > { %v8078_v63 = vpop.f32.mrf.mxu1 }
0x2ee0   : > { %10059 = vmatmul.mubr.msk.f32.vlgmr.msra.gmra.mxu0 %vm1174_vm7, %v8078_v63 }
0x2ee1   : > { %v10055_v2 = vpop.f32.mrf.mxu1  ;;  %10104 = vmatprep.mubr.msk.f32.mxu0 %vm10257_vm1, %v10256_v1  ;;  %10073 = vmatpush3.msra.mxu0 %v8899_v14 }
0x2ee2   : > { %10074 = vmatprep.subr.mxu0 %v10256_v1 }
0x2ee3   : > { %10075 = vmatpush3.msra.mxu0 %v8898_v15 }
0x2ee4   : > { %10076 = vmatprep.subr.mxu0 %v10256_v1 }
0x2ee5   : > { %10077 = vmatpush3.msra.mxu0 %v8897_v16 }
0x2ee6   : > { %10078 = vmatprep.subr.mxu0 %v10256_v1 }
0x2ee7   : > { %10079 = vmatpush3.msra.mxu0 %v8896_v55 }
0x2ee8   : > { %10080 = vmatprep.subr.mxu0 %v10256_v1 }
0x2ee9   : > { %10081 = vmatpush3.msra.mxu0 %v8895_v13 }
0x2eea   : > { %10082 = vmatprep.subr.mxu0 %v10256_v1 }
0x2eeb   : > { %10083 = vmatpush3.msra.mxu0 %v8894_v57 }
0x2eec   : > { %10084 = vmatprep.subr.mxu0 %v10256_v1 }
0x2eed   : > { %10085 = vmatpush3.msra.mxu0 %v8893_v52 }
0x2eee   : > { %10086 = vmatprep.subr.mxu0 %v10256_v1 }
0x2eef   : > { %10087 = vmatpush3.msra.mxu0 %v8892_v5 }
0x2ef0   : > { %10088 = vmatprep.subr.mxu0 %v10256_v1 }
0x2ef1   : > { %10089 = vmatpush3.msra.mxu0 %v8891_v48 }
0x2ef2   : > { %10090 = vmatprep.subr.mxu0 %v10256_v1 }
0x2ef3   : > { %10091 = vmatpush3.msra.mxu0 %v8890_v30 }
0x2ef4   : > { %10092 = vmatprep.subr.mxu0 %v10256_v1 }
0x2ef5   : > { %10093 = vmatpush3.msra.mxu0 %v8889_v32 }
0x2ef6   : > { %10094 = vmatprep.subr.mxu0 %v10256_v1 }
0x2ef7   : > { %10095 = vmatpush3.msra.mxu0 %v8888_v53 }
0x2ef8   : > { %10096 = vmatprep.subr.mxu0 %v10256_v1 }
0x2ef9   : > { %10097 = vmatpush3.msra.mxu0 %v8887_v45 }
0x2efa   : > { %10098 = vmatprep.subr.mxu0 %v10256_v1 }
0x2efb   : > { %10099 = vmatpush3.msra.mxu0 %v8886_v22 }
0x2efc   : > { %10100 = vmatprep.subr.mxu0 %v10256_v1 }
0x2efd   : > { %10101 = vmatpush3.msra.mxu0 %v8885_v44 }
0x2efe   : > { %10102 = vmatprep.subr.mxu0 %v10256_v1 }
0x2eff   : > { %10103 = vmatpush3.msra.mxu0 %v8884_v38 }
0x2fa0   : > { %v8153_v36 = vpop.f32.mrf.mxu0 }
0x2fa1   : > { %v8157_v17 = vadd.f32 %v8153_v36, %v7670_v33 }
0x2fa2   : > { %v10060_v4 = vpop.f32.mrf.mxu0 }
0x2fa3   : > { %v12043_v34 = vadd.f32 %v8157_v17, %v11663_v29  ;;  %v8880_v29 = vld [vmem:[%s12196_s19 + $0x38] sm:$0xff] }
0x2fa4   : > { %10062 = vmatpush3.msra.mxu1 %v8880_v29 }
0x2fa5   : > { %v8163_v51 = vsel %vm867_vm3, %v12043_v34, 0.0  ;;  %10063 = vmatprep.subr.mxu1 %v10256_v1 }
0x2fa6   : > { %8164 = vadd.xlane.f32.xlu0 %v8163_v51  ;;  %10064 = vmatpush3.msra.mxu1 %v8879_v9 }
0x2fa7   : > { %10065 = vmatprep.subr.mxu1 %v10256_v1 }
0x2fa8   : > { %10066 = vmatpush3.msra.mxu1 %v8878_v11 }
0x2fa9   : > { %10067 = vmatprep.subr.mxu1 %v10256_v1 }
0x2faa   : > { %10068 = vmatpush3.msra.mxu1 %v8877_v12 }
0x2fab   : > { %10107 = vmatprep.subr.mxu1 %v10256_v1 }
0x302f   : > { %v8165_v59 = vpop.xlane.xlu0 %8164 }
0x3030   : > { %v8166_v21 = vmul.f32 0.03125, %v8165_v59 }
0x3032   : > { %v12048_v19 = vsub.f32 %v12043_v34, %v8166_v21 }
0x3034   : > { %v8168_v7 = vmul.f32 %v12048_v19, %v12048_v19  ;;  %v8179_v6 = vmul.f32 %v8875_v27, %v12048_v19 }
0x3036   : > { %v8169_v8 = vsel %vm867_vm3, %v8168_v7, 0.0 }
0x3037   : > { %8170 = vadd.xlane.f32.xlu1 %v8169_v8 }
0x30c0   : > { %v8171_v23 = vpop.xlane.xlu1 %8170 }
0x30c1   : > { %v8172_v62 = vmul.f32 0.032258064, %v8171_v23 }
0x30c3   : > { %10240 = vrsqrt.f32 %v8172_v62  ;;  %vm8182_vm7 = vcmp.eq.f32.partialorder %v8172_v62, inf  ;;  %v8185_v18 = vand.u32 2147483648, %v8172_v62  ;;  %vm8184_vm8 = vcmp.eq.f32.partialorder %v8172_v62, 0.0 }
0x30d0   : > { %v10241_v50 = vpop.eup %10240 }
0x30d1   : > { %v8181_v3 = vmul.f32 %v10241_v50, %v8172_v62 }
0x30d3   : > { %v8183_v20 = vsel %vm8182_vm7, %v8172_v62, %v8181_v3 }
0x30d4   : > { %v8186_v41 = vsel %vm8184_vm8, %v8185_v18, %v8183_v20 }
0x30d5   : > { %v8187_v43 = vadd.f32 1e-06, %v8186_v41 }
0x30d7   : > { %10242 = vrcp.f32 %v8187_v43 }
0x30e4   : > { %v10243_v33 = vpop.eup %10242 }
0x30e5   : > { %v8189_v39 = vmul.f32 %v10243_v33, %v8179_v6 }
0x30e7   : > { %v8196_v37 = vadd.f32 %v8876_v35, %v8189_v39 }
0x30e9   : > { %10070 = vmatmul.mubr.msk.f32.vlgmr.msra.gmra.mxu1 %vm867_vm3, %v8196_v37 }
0x30ea   : > { %10115 = vmatprep.mubr.msk.f32.mxu1 %vm10257_vm1, %v10256_v1  ;;  %10108 = vmatpush3.msra.mxu1 %v8383_v56 }
0x30eb   : > { %10109 = vmatprep.subr.mxu1 %v10256_v1 }
0x30ec   : > { %10110 = vmatpush3.msra.mxu1 %v8382_v0 }
0x30ed   : > { %10111 = vmatprep.subr.mxu1 %v10256_v1 }
0x30ee   : > { %10112 = vmatpush3.msra.mxu1 %v8381_v24 }
0x30ef   : > { %10113 = vmatprep.subr.mxu1 %v10256_v1  ;;  %v8902_v1 = vld [vmem:[%s12201_s24] ss:$0 sm:$0xff] }
0x30f0   : > { %10114 = vmatpush3.msra.mxu1 %v8380_v25 }
0x31a9   : > { %v8279_v10 = vpop.f32.mrf.mxu1 }
0x31aa   : > { %v8280_v40 = vadd.f32 %v8882_v42, %v8279_v10 }
0x31ab   : > { %v10071_v49 = vpop.f32.mrf.mxu1 }
0x31ac   : > { %v8283_v58 = vmax.f32 %v8280_v40, 0.0 }
0x31ae   : > { %10105 = vmatmul.mubr.f32.vlgmr.msra.gmra.mxu0 %v8283_v58 }
0x326e   : > { %v8375_v26 = vpop.f32.mrf.mxu0 }
0x326f   : > { %v8376_v47 = vadd.f32 %v8901_v28, %v8375_v26 }
0x3270   : > { %v10106_v46 = vpop.f32.mrf.mxu0 }
0x3271   : > { %v8379_v54 = vadd.f32 %v8376_v47, %v12043_v34 }
0x3273   : > { %10116 = vmatmul.mubr.msk.f32.vlgmr.msra.gmra.mxu1 %vm867_vm3, %v8379_v54 }
0x3333   : > { %v8460_v60 = vpop.f32.mrf.mxu1 }
0x3334   : > { %v8461_v61 = vadd.f32 %v8902_v1, %v8460_v60 }
0x3335   : > { %v10117_v31 = vpop.f32.mrf.mxu1 }
0x3336   : > { %v8904_v63 = vmul.f32 -1.442695, %v8461_v61 }
0x3338   : > { %10244 = vpow2.f32 %v8904_v63 }
0x3345   : > { %v10245_v2 = vpop.eup %10244 }
0x3346   : > { %v8467_v36 = vadd.f32 1.0, %v10245_v2 }
0x3348   : > { %10246 = vrcp.f32 %v8467_v36 }
0x3355   : > { %v10247_v17 = vpop.eup %10246 }
0x3356   : > { %8470 = vst.msk [vmem:[%s759_s5] sm:$0xff] %vm769_vm2, %v10247_v17 }
0x3357 PF: > { %s12238_s0 = sld [smem:[#allocation2_spill]] }
0x335d   : > { %s35_s29 = sadd.s32 1, %s12238_s0  }
0x335e   : > { %p32_p4 = scmp.ge.s32.totalorder %s35_s29, 4  }
0x3360   :  { %34 = sbr.rel (!%p32_p4) target bundleno = 12 (0xc), region = 236 }

</bundles_post_ra>
